<compile_context>
chip_gen: v7x
topology: tpu7x:2x2x1
jax: 0.10.0
libtpu: 0.0.40
codegen_flags: <defaults>
</compile_context>

<pallas_src>
import functools

import jax
import jax.numpy as jnp
from jax.experimental import pallas as pl
from jax.experimental.pallas import tpu as pltpu


def _round_up(a, b):
    return (a + b - 1) // b * b


def _cdiv(a, b):
    return (a + b - 1) // b


def _device_generation():
    """Best-effort TPU generation (5, 6, 7, ...); 0 if unknown."""
    try:
        kind = jax.devices()[0].device_kind.lower()
    except Exception:
        return 0
    for g in (7, 6, 5, 4, 3, 2):
        if f"v{g}" in kind:
            return g
    return 0


def _gelu(h, *, approximate):
    """GELU with the transcendental evaluated in f32 (portable Mosaic lowering);
    the surrounding elementwise math stays in h.dtype (bf16 on v6e/v7x)."""
    if approximate:
        return jax.nn.gelu(h, approximate=True)
    # Exact erf GELU -- matches torch nn.GELU().
    cdf = 0.5 * (1.0 + jax.lax.erf(h.astype(jnp.float32) * 0.7071067811865476))
    return h * cdf.astype(h.dtype)


# ----------------------------------------------------------------------------
# Pallas kernel: gate-weighted sum of per-expert FFNs, one expert per grid step.
# ----------------------------------------------------------------------------
def _switch_moe_kernel(x_ref, g_ref, w1_ref, b1_ref, w2_ref, b2_ref, o_ref, *,
                       weights_resident, inner_chunk, bf16_elementwise,
                       approximate_gelu):
    e = pl.program_id(1)

    # Output block index depends only on the token-tile axis, so o_ref stays
    # resident in VMEM across the expert (reduction) axis: accumulate into it
    # directly (no scratch accumulator, no final copy pass).
    @pl.when(e == 0)
    def _():
        o_ref[...] = jnp.zeros_like(o_ref)

    we = e if weights_resident else 0           # static Python branch
    w1_e = w1_ref.at[we]                        # (dim, inner)      bf16 ref view
    w2_e = w2_ref.at[we]                        # (inner, dim_out)  bf16 ref view
    b1_e = b1_ref[e]                            # (1, inner)        f32
    b2_e = b2_ref[e]                            # (1, dim_out)      f32
    g_e = g_ref[e]                              # (tm, 1)           f32

    x = x_ref[...]                              # (tm, dim)         bf16
    tm = x.shape[0]
    inner = w1_e.shape[-1]
    dim_out = o_ref.shape[-1]
    act_dtype = jnp.bfloat16 if bf16_elementwise else jnp.float32

    # Expert FFN with f32 MXU accumulation; the inner (hidden) dim is chunked so
    # the live GELU intermediate is bounded to (tm, inner_chunk).
    y = jnp.zeros((tm, dim_out), jnp.float32)
    n_chunks = _cdiv(inner, inner_chunk)
    for c in range(n_chunks):                   # static unroll (n_chunks is small)
        ks = c * inner_chunk
        ke = min(inner, ks + inner_chunk)
        h = jnp.dot(x, w1_e[:, ks:ke], preferred_element_type=jnp.float32)
        h = (h + b1_e[:, ks:ke]).astype(act_dtype)    # fused bias-add + cast
        h = _gelu(h, approximate=approximate_gelu)
        y = y + jnp.dot(h.astype(w2_e.dtype), w2_e[ks:ke, :],
                        preferred_element_type=jnp.float32)
    y = y + b2_e

    # torch: stacked_expert_outputs[isnan(...)] = 0
    y = jnp.where(jnp.isnan(y), 0.0, y)

    # Gate-weighted accumulation over experts.
    o_ref[...] += g_e * y


def switch_moe_pallas(x, gate_scores, w1, b1, w2, b2, *, tm=None,
                      inner_chunk=None, weights_resident=None,
                      bf16_elementwise=None, approximate_gelu=False,
                      vmem_limit_bytes=None):
    """x: (N, dim) f32, gate_scores: (N, E) f32,
    w1: (E, dim, inner), b1: (E, inner), w2: (E, inner, dim_out), b2: (E, dim_out).
    Weights are stored (in, out) -- transposed relative to nn.Linear.weight."""
    n_tokens, dim = x.shape
    num_experts, _, inner = w1.shape
    dim_out = w2.shape[-1]

    gen = _device_generation()
    two_cores = gen >= 7                        # v7x: 2 TensorCores / chip
    if bf16_elementwise is None:
        bf16_elementwise = gen >= 6             # v5e has no bf16 VALU/EUP
    if tm is None:
        # Roofline-driven row tile for the weight-streaming regime:
        # v5e ~256, v7x ~512 (per TC), v6e ~1024.
        tm = {5: 256, 6: 1024, 7: 512}.get(gen, 512)

    # bf16 sublane tile is (16, 128): round tm to 16; on v7x keep >= 2 token
    # tiles so both TensorCores get work.
    tm = _round_up(max(16, min(int(tm), n_tokens)), 16)
    if two_cores and n_tokens > 32:
        tm = min(tm, _round_up(_cdiv(n_tokens, 2), 16))
    n_tiles = _cdiv(n_tokens, tm)

    if inner_chunk is None:
        inner_chunk = inner if inner <= 2048 else 1024
    inner_chunk = min(inner, max(128, int(inner_chunk)))

    # Hoist ALL expert weights VMEM-resident (constant index_map -> fetched once
    # for the whole grid) when they fit; otherwise stream one expert at a time
    # (re-fetched per token tile, amortized by the large tm).
    resident_bytes = 2 * num_experts * (dim * inner + inner * dim_out) * 2  # 2 bufs, bf16
    if weights_resident is None:
        budget = (20 << 20) if gen >= 7 else (48 << 20)
        weights_resident = resident_bytes <= budget

    if vmem_limit_bytes is None:
        vmem_limit_bytes = (48 << 20) if gen >= 7 else (80 << 20)

    # bf16 operands for the MXU; gate / biases / accumulator stay f32.
    x_bf = x.astype(jnp.bfloat16)
    w1_bf = w1.astype(jnp.bfloat16)
    w2_bf = w2.astype(jnp.bfloat16)
    b1_3d = b1.reshape(num_experts, 1, inner).astype(jnp.float32)
    b2_3d = b2.reshape(num_experts, 1, dim_out).astype(jnp.float32)
    # Gate laid out (E, N, 1): one (E, tm, 1) block stays resident per token tile.
    g_3d = jnp.transpose(gate_scores, (1, 0))[:, :, None].astype(jnp.float32)

    if weights_resident:
        w1_spec = pl.BlockSpec((num_experts, dim, inner), lambda i, e: (0, 0, 0))
        w2_spec = pl.BlockSpec((num_experts, inner, dim_out), lambda i, e: (0, 0, 0))
        w_reads = 1
    else:
        w1_spec = pl.BlockSpec((1, dim, inner), lambda i, e: (e, 0, 0))
        w2_spec = pl.BlockSpec((1, inner, dim_out), lambda i, e: (e, 0, 0))
        w_reads = n_tiles
        # TODO(synk): if profiling shows exposed weight-DMA bubbles on v6e, set
        # pipeline_mode=pl.Buffered(3) on these two specs.

    bf16_b, f32_b = 2, 4
    cost = pl.CostEstimate(
        flops=2 * n_tokens * num_experts * (dim * inner + inner * dim_out)
              + 4 * n_tokens * num_experts * dim_out,
        transcendentals=n_tokens * num_experts * inner,
        bytes_accessed=(x_bf.size * bf16_b + g_3d.size * f32_b
                        + b1_3d.size * f32_b + b2_3d.size * f32_b
                        + w_reads * (w1_bf.size + w2_bf.size) * bf16_b
                        + n_tokens * dim_out * f32_b),
    )

    kernel = functools.partial(_switch_moe_kernel,
                               weights_resident=weights_resident,
                               inner_chunk=inner_chunk,
                               bf16_elementwise=bf16_elementwise,
                               approximate_gelu=approximate_gelu)

    return pl.pallas_call(
        kernel,
        out_shape=jax.ShapeDtypeStruct((n_tokens, dim_out), jnp.float32),
        grid_spec=pltpu.PrefetchScalarGridSpec(
            num_scalar_prefetch=0,
            grid=(n_tiles, num_experts),
            in_specs=[
                pl.BlockSpec((tm, dim), lambda i, e: (i, 0)),                 # x row tile
                pl.BlockSpec((num_experts, tm, 1), lambda i, e: (0, i, 0)),   # gate (all experts)
                w1_spec,                                                      # W1 (resident or streamed)
                pl.BlockSpec((num_experts, 1, inner), lambda i, e: (0, 0, 0)),    # b1 resident
                w2_spec,                                                      # W2 (resident or streamed)
                pl.BlockSpec((num_experts, 1, dim_out), lambda i, e: (0, 0, 0)),  # b2 resident
            ],
            out_specs=pl.BlockSpec((tm, dim_out), lambda i, e: (i, 0)),
        ),
        compiler_params=pltpu.CompilerParams(
            dimension_semantics=("parallel", "arbitrary"),
            vmem_limit_bytes=vmem_limit_bytes),
        cost_estimate=cost,
    )(x_bf, g_3d, w1_bf, b1_3d, w2_bf, b2_3d)


# ----------------------------------------------------------------------------
# SwitchGate (tiny, global token reduction) -- plain JAX in the wrapper.
# ----------------------------------------------------------------------------
def switch_gate(gate_input, wg, bg, *, top_k, capacity_factor, epsilon=1e-6):
    n_tokens = gate_input.shape[0]
    num_experts = wg.shape[-1]
    gate_scores = jax.nn.softmax(gate_input @ wg + bg, axis=-1)       # (N, E)
    capacity = int(capacity_factor * n_tokens)
    _, top_idx = jax.lax.top_k(gate_scores, top_k)                    # (N, k)
    mask = jnp.max(jax.nn.one_hot(top_idx, num_experts,
                                  dtype=gate_scores.dtype), axis=-2)  # (N, E)
    masked = gate_scores * mask
    denom = masked.sum(axis=0, keepdims=True) + epsilon
    return masked / denom * capacity


def switch_moe_forward(x, gate_input, wg, bg, w1, b1, w2, b2, *,
                       top_k, capacity_factor, **kernel_kwargs):
    gate_scores = switch_gate(gate_input, wg, bg, top_k=top_k,
                              capacity_factor=capacity_factor)
    gate_scores = jnp.nan_to_num(gate_scores, nan=0.0)   # torch: gate_scores[isnan] = 0
    return switch_moe_pallas(x, gate_scores, w1, b1, w2, b2, **kernel_kwargs)


# ----------------------------------------------------------------------------
# References.
# ----------------------------------------------------------------------------
def _moe_ref(x, gate_scores, w1, b1, w2, b2, *, match_bf16):
    hp = jax.lax.Precision.HIGHEST
    if match_bf16:
        x = x.astype(jnp.bfloat16).astype(jnp.float32)
        w1 = w1.astype(jnp.bfloat16).astype(jnp.float32)
        w2 = w2.astype(jnp.bfloat16).astype(jnp.float32)
    outs = []
    for e in range(w1.shape[0]):
        h = jnp.dot(x, w1[e], precision=hp) + b1[e]
        h = jax.nn.gelu(h, approximate=False)
        if match_bf16:
            h = h.astype(jnp.bfloat16).astype(jnp.float32)
        outs.append(jnp.dot(h, w2[e], precision=hp) + b2[e])
    stacked = jnp.stack(outs, axis=-1)                     # (N, dim_out, E)
    return jnp.sum(gate_scores[:, None, :] * stacked, axis=-1)


if __name__ == "__main__":
    # Small, lane-aligned demo: 272 tokens (not a multiple of the row tile, to
    # exercise the ragged final block), dim = output_dim = 128, mult = 4 ->
    # inner = 512, 4 experts, top_k = 1 (Switch routing), capacity_factor = 1.0.
    n_tokens, dim, mult, num_experts, top_k = 272, 128, 4, 4, 1
    output_dim = dim
    inner = dim * mult
    capacity_factor = 1.0

    key = jax.random.PRNGKey(0)
    ks = jax.random.split(key, 8)

    def uinit(k, shape, fan_in):
        bound = 1.0 / jnp.sqrt(fan_in)
        return jax.random.uniform(k, shape, jnp.float32, -bound, bound)

    x = jax.random.normal(ks[0], (n_tokens, dim), jnp.float32)
    gate_input = jax.random.normal(ks[1], (n_tokens, dim), jnp.float32)
    # Weights stored (in, out) -- transposed relative to nn.Linear.weight.
    wg = uinit(ks[2], (dim, num_experts), dim)
    bg = uinit(ks[3], (num_experts,), dim)
    w1 = uinit(ks[4], (num_experts, dim, inner), dim)
    b1 = uinit(ks[5], (num_experts, inner), dim)
    w2 = uinit(ks[6], (num_experts, inner, output_dim), inner)
    b2 = uinit(ks[7], (num_experts, output_dim), inner)

    out = switch_moe_forward(x, gate_input, wg, bg, w1, b1, w2, b2,
                             top_k=top_k, capacity_factor=capacity_factor)
    jax.block_until_ready(out)

    gate = jnp.nan_to_num(
        switch_gate(gate_input, wg, bg, top_k=top_k,
                    capacity_factor=capacity_factor), nan=0.0)

    ref_match = _moe_ref(x, gate, w1, b1, w2, b2, match_bf16=True)
    ref_f32 = _moe_ref(x, gate, w1, b1, w2, b2, match_bf16=False)

    def rel_err(a, b):
        return float(jnp.linalg.norm(a - b) / (jnp.linalg.norm(b) + 1e-12))

    # Tight check vs a bf16-quantized reference; loose norm-relative check vs f32.
    assert jnp.allclose(out, ref_match, atol=3e-2, rtol=3e-2), \
        "mismatch vs bf16-matched reference"
    assert rel_err(out, ref_f32) < 5e-2, \
        f"relative error vs f32 reference too large: {rel_err(out, ref_f32)}"

    # Exercise the alternate code paths on small shapes and cross-check:
    # streamed weights, inner-dim chunking, f32 elementwise (v5e path).
    out_stream = switch_moe_pallas(x, gate, w1, b1, w2, b2, weights_resident=False)
    out_chunk = switch_moe_pallas(x, gate, w1, b1, w2, b2, inner_chunk=256)
    out_f32e = switch_moe_pallas(x, gate, w1, b1, w2, b2, bf16_elementwise=False)
    jax.block_until_ready((out_stream, out_chunk, out_f32e))
    for name, o in (("streamed", out_stream), ("chunked", out_chunk),
                    ("f32_elementwise", out_f32e)):
        assert rel_err(o, ref_f32) < 5e-2, f"{name} path mismatch vs f32 reference"

    print("KERNEL_OK")
</pallas_src>

<mosaic_0001>
module attributes {stable_mosaic.version = 11 : i64} {
  func.func @_switch_moe_kernel(%arg0: i32, %arg1: i32, %arg2: memref<272x128xbf16, #tpu.memory_space<vmem>>, %arg3: memref<4x272x1xf32, #tpu.memory_space<vmem>>, %arg4: memref<4x128x512xbf16, #tpu.memory_space<vmem>>, %arg5: memref<4x1x512xf32, #tpu.memory_space<vmem>>, %arg6: memref<4x512x128xbf16, #tpu.memory_space<vmem>>, %arg7: memref<4x1x128xf32, #tpu.memory_space<vmem>>, %arg8: memref<272x128xf32, #tpu.memory_space<vmem>>) attributes {dimension_semantics = [#tpu.dimension_semantics<parallel>, #tpu.dimension_semantics<arbitrary>], iteration_bounds = array<i64: 1, 4>, scalar_prefetch = 0 : i64, scratch_operands = 0 : i64, tpu.core_type = #tpu.core_type<tc>, window_params = [{transform_indices = @transform_0, window_bounds = array<i64: 272, 128>}, {transform_indices = @transform_1, window_bounds = array<i64: 4, 272, 1>}, {pipeline_mode = #tpu.pipeline_mode<synchronous>, transform_indices = @transform_2, window_bounds = array<i64: 4, 128, 512>}, {pipeline_mode = #tpu.pipeline_mode<synchronous>, transform_indices = @transform_3, window_bounds = array<i64: 4, 1, 512>}, {pipeline_mode = #tpu.pipeline_mode<synchronous>, transform_indices = @transform_4, window_bounds = array<i64: 4, 512, 128>}, {pipeline_mode = #tpu.pipeline_mode<synchronous>, transform_indices = @transform_5, window_bounds = array<i64: 4, 1, 128>}, {transform_indices = @transform_6, window_bounds = array<i64: 272, 128>}]} {
    %c0_i32 = arith.constant 0 : i32
    %0 = arith.cmpi eq, %arg1, %c0_i32 : i32
    %1 = arith.extui %0 : i1 to i32
    %c0_i32_0 = arith.constant 0 : i32
    %2 = arith.cmpi ne, %1, %c0_i32_0 : i32
    scf.if %2 {
      %cst_26 = arith.constant 0.000000e+00 : f32
      %44 = vector.broadcast %cst_26 : f32 to vector<272x128xf32>
      %c0_27 = arith.constant 0 : index
      %c0_28 = arith.constant 0 : index
      %45 = vector.load %arg8[%c0_27, %c0_28] : memref<272x128xf32, #tpu.memory_space<vmem>>, vector<272x128xf32>
      tpu.vector_store %arg8[%c0_27, %c0_28], %44 {strides = array<i32>} : memref<272x128xf32, #tpu.memory_space<vmem>>, vector<272x128xf32>,
    } else {
    }
    %3 = arith.index_cast %arg1 : i32 to index
    %c0 = arith.constant 0 : index
    %c0_1 = arith.constant 0 : index
    %4 = vector.load %arg5[%3, %c0, %c0_1] : memref<4x1x512xf32, #tpu.memory_space<vmem>>, vector<1x1x512xf32>
    %5 = vector.shape_cast %4 : vector<1x1x512xf32> to vector<1x512xf32>
    %6 = arith.index_cast %arg1 : i32 to index
    %c0_2 = arith.constant 0 : index
    %c0_3 = arith.constant 0 : index
    %7 = vector.load %arg7[%6, %c0_2, %c0_3] : memref<4x1x128xf32, #tpu.memory_space<vmem>>, vector<1x1x128xf32>
    %8 = vector.shape_cast %7 : vector<1x1x128xf32> to vector<1x128xf32>
    %9 = arith.index_cast %arg1 : i32 to index
    %c0_4 = arith.constant 0 : index
    %c0_5 = arith.constant 0 : index
    %10 = vector.load %arg3[%9, %c0_4, %c0_5] : memref<4x272x1xf32, #tpu.memory_space<vmem>>, vector<1x272x1xf32>
    %11 = vector.shape_cast %10 : vector<1x272x1xf32> to vector<272x1xf32>
    %c0_6 = arith.constant 0 : index
    %c0_7 = arith.constant 0 : index
    %12 = vector.load %arg2[%c0_6, %c0_7] : memref<272x128xbf16, #tpu.memory_space<vmem>>, vector<272x128xbf16>
    %cst = arith.constant 0.000000e+00 : f32
    %13 = vector.broadcast %cst : f32 to vector<272x128xf32>
    %c0_i32_8 = arith.constant 0 : i32
    %c0_i32_9 = arith.constant 0 : i32
    %14 = tpu.memref_slice %arg4[%arg1, %c0_i32_8, %c0_i32_9] : memref<4x128x512xbf16, #tpu.memory_space<vmem>> -> memref<1x128x512xbf16, #tpu.memory_space<vmem>>
    %15 = tpu.memref_squeeze %14 : memref<1x128x512xbf16, #tpu.memory_space<vmem>> -> memref<128x512xbf16, #tpu.memory_space<vmem>>
    %c0_10 = arith.constant 0 : index
    %c0_11 = arith.constant 0 : index
    %16 = vector.load %15[%c0_10, %c0_11] : memref<128x512xbf16, #tpu.memory_space<vmem>>, vector<128x512xbf16>
    %cst_12 = arith.constant dense<0.000000e+00> : vector<272x512xf32>
    %17 = tpu.matmul %12, %16, %cst_12 {dimension_numbers = #tpu.dot_dimension_numbers<[1], [0], [0], [1], [0, 0, 1, 1], [], []>} : vector<272x128xbf16>, vector<128x512xbf16>, vector<272x512xf32> -> vector<272x512xf32>
    %18 = vector.broadcast %5 : vector<1x512xf32> to vector<272x512xf32>
    %19 = arith.addf %17, %18 : vector<272x512xf32>
    %cst_13 = arith.constant 0.707106769 : f32
    %20 = vector.broadcast %cst_13 : f32 to vector<272x512xf32>
    %21 = arith.mulf %19, %20 : vector<272x512xf32>
    %22 = math.erf %21 : vector<272x512xf32>
    %cst_14 = arith.constant 1.000000e+00 : f32
    %23 = vector.broadcast %cst_14 : f32 to vector<272x512xf32>
    %24 = arith.addf %23, %22 : vector<272x512xf32>
    %cst_15 = arith.constant 5.000000e-01 : f32
    %25 = vector.broadcast %cst_15 : f32 to vector<272x512xf32>
    %26 = arith.mulf %25, %24 : vector<272x512xf32>
    %27 = arith.mulf %19, %26 : vector<272x512xf32>
    %28 = arith.truncf %27 : vector<272x512xf32> to vector<272x512xbf16>
    %c0_i32_16 = arith.constant 0 : i32
    %c0_i32_17 = arith.constant 0 : i32
    %29 = tpu.memref_slice %arg6[%arg1, %c0_i32_16, %c0_i32_17] : memref<4x512x128xbf16, #tpu.memory_space<vmem>> -> memref<1x512x128xbf16, #tpu.memory_space<vmem>>
    %30 = tpu.memref_squeeze %29 : memref<1x512x128xbf16, #tpu.memory_space<vmem>> -> memref<512x128xbf16, #tpu.memory_space<vmem>>
    %c0_18 = arith.constant 0 : index
    %c0_19 = arith.constant 0 : index
    %31 = vector.load %30[%c0_18, %c0_19] : memref<512x128xbf16, #tpu.memory_space<vmem>>, vector<512x128xbf16>
    %cst_20 = arith.constant dense<0.000000e+00> : vector<272x128xf32>
    %32 = tpu.matmul %28, %31, %cst_20 {dimension_numbers = #tpu.dot_dimension_numbers<[1], [0], [0], [1], [0, 0, 1, 1], [], []>} : vector<272x512xbf16>, vector<512x128xbf16>, vector<272x128xf32> -> vector<272x128xf32>
    %33 = arith.addf %13, %32 : vector<272x128xf32>
    %34 = vector.broadcast %8 : vector<1x128xf32> to vector<272x128xf32>
    %35 = arith.addf %33, %34 : vector<272x128xf32>
    %36 = arith.cmpf one, %35, %35 : vector<272x128xf32>
    %cst_21 = arith.constant 0.000000e+00 : f32
    %37 = vector.broadcast %cst_21 : f32 to vector<272x128xf32>
    %38 = arith.select %36, %37, %35 : vector<272x128xi1>, vector<272x128xf32>
    %c0_22 = arith.constant 0 : index
    %c0_23 = arith.constant 0 : index
    %39 = vector.load %arg8[%c0_22, %c0_23] : memref<272x128xf32, #tpu.memory_space<vmem>>, vector<272x128xf32>
    %40 = vector.broadcast %11 : vector<272x1xf32> to vector<272x128xf32>
    %41 = arith.mulf %40, %38 : vector<272x128xf32>
    %42 = arith.addf %39, %41 : vector<272x128xf32>
    %c0_24 = arith.constant 0 : index
    %c0_25 = arith.constant 0 : index
    %43 = vector.load %arg8[%c0_24, %c0_25] : memref<272x128xf32, #tpu.memory_space<vmem>>, vector<272x128xf32>
    tpu.vector_store %arg8[%c0_24, %c0_25], %42 {strides = array<i32>} : memref<272x128xf32, #tpu.memory_space<vmem>>, vector<272x128xf32>,
    return
  }
  func.func @transform_0(%arg0: i32, %arg1: i32) -> (i32, i32) {
    %c0_i32 = arith.constant 0 : i32
    %c0_i32_0 = arith.constant 0 : i32
    return %arg0, %c0_i32 : i32, i32
  }
  func.func @transform_1(%arg0: i32, %arg1: i32) -> (i32, i32, i32) {
    %c0_i32 = arith.constant 0 : i32
    %c0_i32_0 = arith.constant 0 : i32
    %c0_i32_1 = arith.constant 0 : i32
    return %c0_i32, %arg0, %c0_i32_0 : i32, i32, i32
  }
  func.func @transform_2(%arg0: i32, %arg1: i32) -> (i32, i32, i32) {
    %c0_i32 = arith.constant 0 : i32
    %c0_i32_0 = arith.constant 0 : i32
    %c0_i32_1 = arith.constant 0 : i32
    %c0_i32_2 = arith.constant 0 : i32
    return %c0_i32, %c0_i32_0, %c0_i32_1 : i32, i32, i32
  }
  func.func @transform_3(%arg0: i32, %arg1: i32) -> (i32, i32, i32) {
    %c0_i32 = arith.constant 0 : i32
    %c0_i32_0 = arith.constant 0 : i32
    %c0_i32_1 = arith.constant 0 : i32
    %c0_i32_2 = arith.constant 0 : i32
    return %c0_i32, %c0_i32_0, %c0_i32_1 : i32, i32, i32
  }
  func.func @transform_4(%arg0: i32, %arg1: i32) -> (i32, i32, i32) {
    %c0_i32 = arith.constant 0 : i32
    %c0_i32_0 = arith.constant 0 : i32
    %c0_i32_1 = arith.constant 0 : i32
    %c0_i32_2 = arith.constant 0 : i32
    return %c0_i32, %c0_i32_0, %c0_i32_1 : i32, i32, i32
  }
  func.func @transform_5(%arg0: i32, %arg1: i32) -> (i32, i32, i32) {
    %c0_i32 = arith.constant 0 : i32
    %c0_i32_0 = arith.constant 0 : i32
    %c0_i32_1 = arith.constant 0 : i32
    %c0_i32_2 = arith.constant 0 : i32
    return %c0_i32, %c0_i32_0, %c0_i32_1 : i32, i32, i32
  }
  func.func @transform_6(%arg0: i32, %arg1: i32) -> (i32, i32) {
    %c0_i32 = arith.constant 0 : i32
    %c0_i32_0 = arith.constant 0 : i32
    return %arg0, %c0_i32 : i32, i32
  }
}

</mosaic_0001>

<bundles_post_ra>
// kernel: tpu_custom_call.1
= control target key start
LH: loop header
LB: loop body
LE: loop exit
PB: predicated region body
PF: predicated region fallthrough
CT: control target
= control target key end

     0   :  { %11 = vsyncpa [#allocation3], 0  ;;  %s5842_s0 = inlined_call_operand.hbm [shape: bf16[272,128], index: 0, kind: input, shape index: {}]   ;;  %s5843_s1 = inlined_call_operand.hbm [shape: f32[4,272,1], index: 1, kind: input, shape index: {}]   ;;  %s5844_s2 = inlined_call_operand.hbm [shape: bf16[4,128,512], index: 2, kind: input, shape index: {}]   ;;  %s5845_s3 = inlined_call_operand.hbm [shape: f32[4,1,512], index: 3, kind: input, shape index: {}]   ;;  %s5846_s4 = inlined_call_operand.hbm [shape: bf16[4,512,128], index: 4, kind: input, shape index: {}]   ;;  %s5847_s5 = inlined_call_operand.hbm [shape: f32[4,1,128], index: 5, kind: input, shape index: {}]   ;;  %s5848_s6 = inlined_call_operand.hbm [shape: f32[272,128], index: 6, kind: output, shape index: {}]  }
   0x1   :  { %12 = vsyncpa [#allocation6], 0 }
   0x2   :  { %13 = vsyncpa [#allocation9], 0 }
   0x3   :  { %14 = vsyncpa [#allocation12], 0 }
   0x4   :  { %15 = vsyncpa [#allocation4], 0  ;;  %s3968_s21 = smov 0   ;;  %s3970_s22 = smov 0  }
   0x5   :  { %s3972_s23 = smov 0  }
   0x6 LB: > { %s3915_s24 = smov [#allocation5]   ;;  %s5852_s26 = sadd.s32 4294967295, %s3913_s23   ;;  %s3913_s23 = sphi %s3972_s23, %s21_s23   ;;  %s3909_s22 = sphi %s3970_s22, %s5990_s22   ;;  %s3905_s21 = sphi %s3968_s21, %s5989_s21  }
   0x7   : > { %s231_s25 = sshll.u32 %s3915_s24, 4  ;;  %p3028_p0 = scmp.ge.s32.totalorder %s3913_s23, 1  ;;  %s3992_s25 = int_to_ptr.vmem [resolvable:$true] %s231_s25 }
   0x8   : > { %p200_p1 = scmp.lt.s32.totalorder %s3913_s23, 5  ;;  %p3988_p2 = scmp.eq.s32.totalorder %s5852_s26, 0 }
   0x9   : > { %s3916_s30 = smov [#allocation8]   ;;  %s3677_s10 = scalar_lea.hbm %s5843_s1, 17408 }
   0xa   : > { %s5855_s27 = scalar_select %p3988_p2, 1, 0 }
   0xb   : > { %p3994_p3 = pnand %p3028_p0, %p200_p1  ;;  %s257_s7 = sshll.u32 %s3916_s30, 4  ;;  %s4006_s7 = int_to_ptr.vmem [resolvable:$true] %s257_s7 }
   0xc   : > { %p3678_p6 = scmp.ne.s32.totalorder %s5843_s1, %s3677_s10  ;;  %p3684_p10 = scmp.lt.u32.totalorder %s3677_s10, %s5843_s1 }
   0xd   : > { %s5856_s28 = scalar_select %p3994_p3, 1, 0 }
   0xe   : > { %p3231_p4 = pneg %p3994_p3 }
  0x10   : > { %p4002_p5 = pnand %p3988_p2, %p3231_p4 }
  0x12   : > { %p4016_p7 = pneg %p4002_p5 }
  0x14   : > { %p3680_p8 = pnand %p4016_p7, %p3678_p6 }
  0x16   : > { %p3681_p9 = pneg %p3680_p8 }
  0x18   : > { %p3686_p11 = pnand %p3684_p10, %p3681_p9 }
  0x1a   : > { %3689 = shalt.err (!%p3686_p11)
}
  0x1b   : > { %s3690_s16 = scalar_lea.vmem %s3992_s25, 17408  ;;  %p3698_p1 = scmp.lt.s32.totalorder %s3992_s25, %s3992_s25 }
  0x1c   : > { %p3691_p12 = scmp.ne.s32.totalorder %s3992_s25, %s3690_s16  ;;  %p3699_p4 = scmp.lt.s32.totalorder %s3690_s16, %s3690_s16 }
  0x1e   : > { %p3693_p13 = pnand %p3691_p12, %p4016_p7  ;;  %p3700_p6 = por %p3699_p4, %p3698_p1 }
  0x20   : > { %p3694_p0 = pneg %p3693_p13 }
  0x22   : > { %p3701_p8 = pnand %p3700_p6, %p3694_p0 }
  0x24   : > { %3704 = shalt.err (!%p3701_p8)
}
  0x25   : > { %s3917_s17 = smov 128   ;;  %s3918_s18 = smov 8  }
  0x26   : > { %3237 = dma.hbm_to_vmem [thread:$0]  (!%p4002_p5), %s5843_s1, 17408, %s3992_s25, [#allocation6], %s3917_s17, %s3917_s17, %s3918_s18  }
  0x27   : > { %s3705_s8 = scalar_lea.hbm %s5845_s3, 256 }
  0x28   : > { %p3706_p9 = scmp.ne.s32.totalorder %s5845_s3, %s3705_s8  ;;  %p3712_p12 = scmp.lt.u32.totalorder %s3705_s8, %s5845_s3 }
  0x2a   : > { %p3708_p10 = pnand %p3706_p9, %p4016_p7 }
  0x2c   : > { %p3709_p11 = pneg %p3708_p10 }
  0x2e   : > { %p3714_p13 = pnand %p3712_p12, %p3709_p11 }
  0x30   : > { %3717 = shalt.err (!%p3714_p13)
}
  0x31   : > { %s3718_s25 = scalar_lea.vmem %s4006_s7, 256  ;;  %p3726_p6 = scmp.lt.s32.totalorder %s4006_s7, %s4006_s7 }
  0x32   : > { %p3719_p0 = scmp.ne.s32.totalorder %s4006_s7, %s3718_s25  ;;  %p3727_p8 = scmp.lt.s32.totalorder %s3718_s25, %s3718_s25 }
  0x34   : > { %p3721_p1 = pnand %p3719_p0, %p4016_p7  ;;  %p3728_p9 = por %p3727_p8, %p3726_p6 }
  0x36   : > { %p3722_p4 = pneg %p3721_p1 }
  0x38   : > { %p3729_p10 = pnand %p3728_p9, %p3722_p4 }
  0x3a   : > { %3732 = shalt.err (!%p3729_p10)
}
  0x3b   : > { %s5853_s14 = smov 64   ;;  %s5854_s15 = smov 4  }
  0x3c   : > { %3243 = dma.hbm_to_vmem [thread:$0]  (!%p4002_p5), %s5845_s3, 256, %s4006_s7, [#allocation9], %s5853_s14, %s5853_s14, %s5854_s15  }
  0x3d   : > { %s30_s18 = sadd.s32 1, %s3909_s22  ;;  %s3921_s19 = smov [#allocation2]  }
  0x3e   : > { %p31_p11 = scmp.ge.s32.totalorder %s30_s18, 4  ;;  %s215_s20 = sshll.u32 %s3921_s19, 4  ;;  %s216_s20 = int_to_ptr.vmem [resolvable:$true] %s215_s20 }
  0x3f   : > { %s3922_s24 = smov [#allocation7]   ;;  %s3733_s10 = scalar_lea.hbm %s5842_s0, 2176 }
  0x40   : > { %s5992_s18 = smov (%p31_p11, %s30_s18), 0  ;;  %s244_s30 = sshll.u32 %s3922_s24, 4  ;;  %s245_s30 = int_to_ptr.vmem [resolvable:$true] %s244_s30 }
  0x41   : > { %p3734_p12 = scmp.ne.s32.totalorder %s5842_s0, %s3733_s10  ;;  %p3740_p1 = scmp.lt.u32.totalorder %s3733_s10, %s5842_s0 }
  0x43   : > { %p3736_p13 = pnand %p3734_p12, %p4016_p7 }
  0x45   : > { %p3737_p0 = pneg %p3736_p13 }
  0x47   : > { %p3742_p4 = pnand %p3740_p1, %p3737_p0 }
  0x49   : > { %3745 = shalt.err (!%p3742_p4)
}
  0x4a   : > { %s3746_s16 = scalar_lea.vmem %s216_s20, 2176  ;;  %p3754_p10 = scmp.lt.s32.totalorder %s216_s20, %s216_s20 }
  0x4b   : > { %p3747_p6 = scmp.ne.s32.totalorder %s216_s20, %s3746_s16  ;;  %p3755_p11 = scmp.lt.s32.totalorder %s3746_s16, %s3746_s16 }
  0x4d   : > { %p3749_p8 = pnand %p3747_p6, %p4016_p7  ;;  %p3756_p2 = por %p3755_p11, %p3754_p10 }
  0x4f   : > { %p3750_p9 = pneg %p3749_p8 }
  0x51   : > { %p3757_p3 = pnand %p3756_p2, %p3750_p9 }
  0x53   : > { %3760 = shalt.err (!%p3757_p3)
}
  0x54   : > { %3234 = dma.hbm_to_vmem [thread:$0]  (!%p4002_p5), %s5842_s0, 2176, %s216_s20, [#allocation3], %s5853_s14, %s5853_s14, %s5854_s15  }
  0x55   : > { %s3761_s9 = scalar_lea.hbm %s5844_s2, 16384 }
  0x56   : > { %p3762_p2 = scmp.ne.s32.totalorder %s5844_s2, %s3761_s9  ;;  %p3768_p13 = scmp.lt.u32.totalorder %s3761_s9, %s5844_s2 }
  0x58   : > { %p3764_p3 = pnand %p3762_p2, %p4016_p7 }
  0x5a   : > { %p3765_p12 = pneg %p3764_p3 }
  0x5c   : > { %p3770_p0 = pnand %p3768_p13, %p3765_p12 }
  0x5e   : > { %3773 = shalt.err (!%p3770_p0)
}
  0x5f   : > { %s3774_s25 = scalar_lea.vmem %s245_s30, 16384  ;;  %p3782_p8 = scmp.lt.s32.totalorder %s245_s30, %s245_s30 }
  0x60   : > { %p3775_p1 = scmp.ne.s32.totalorder %s245_s30, %s3774_s25  ;;  %p3783_p9 = scmp.lt.s32.totalorder %s3774_s25, %s3774_s25 }
  0x62   : > { %p3777_p4 = pnand %p3775_p1, %p4016_p7  ;;  %p3784_p10 = por %p3783_p9, %p3782_p8 }
  0x64   : > { %p3778_p6 = pneg %p3777_p4 }
  0x66   : > { %p3785_p11 = pnand %p3784_p10, %p3778_p6 }
  0x68   : > { %3788 = shalt.err (!%p3785_p11)
}
  0x69   : > { %s3923_s20 = smov 256   ;;  %s3924_s16 = smov 16  }
  0x6a   : > { %3240 = dma.hbm_to_vmem [thread:$0]  (!%p4002_p5), %s5844_s2, 16384, %s245_s30, [#allocation6], %s3923_s20, %s3923_s20, %s3924_s16  }
  0x6b   : > { %s3925_s24 = smov [#allocation10]   ;;  %s3926_s9 = smov [#allocation11]  }
  0x6c   : > { %s270_s8 = sshll.u32 %s3925_s24, 4  ;;  %s283_s10 = sshll.u32 %s3926_s9, 4  ;;  %s271_s8 = int_to_ptr.vmem [resolvable:$true] %s270_s8  ;;  %s284_s10 = int_to_ptr.vmem [resolvable:$true] %s283_s10 }
  0x6d   : > { %s3789_s7 = scalar_lea.hbm %s5846_s4, 16384 }
  0x6e   : > { %p3790_p2 = scmp.ne.s32.totalorder %s5846_s4, %s3789_s7  ;;  %p3796_p13 = scmp.lt.u32.totalorder %s3789_s7, %s5846_s4 }
  0x70   : > { %p3792_p3 = pnand %p3790_p2, %p4016_p7 }
  0x72   : > { %p3793_p12 = pneg %p3792_p3 }
  0x74   : > { %p3798_p0 = pnand %p3796_p13, %p3793_p12 }
  0x76   : > { %3801 = shalt.err (!%p3798_p0)
}
  0x77   : > { %s3802_s30 = scalar_lea.vmem %s271_s8, 16384  ;;  %p3810_p8 = scmp.lt.s32.totalorder %s271_s8, %s271_s8 }
  0x78   : > { %p3803_p1 = scmp.ne.s32.totalorder %s271_s8, %s3802_s30  ;;  %p3811_p9 = scmp.lt.s32.totalorder %s3802_s30, %s3802_s30 }
  0x7a   : > { %p3805_p4 = pnand %p3803_p1, %p4016_p7  ;;  %p3812_p10 = por %p3811_p9, %p3810_p8 }
  0x7c   : > { %p3806_p6 = pneg %p3805_p4 }
  0x7e   : > { %p3813_p11 = pnand %p3812_p10, %p3806_p6 }
  0x80   : > { %3816 = shalt.err (!%p3813_p11)
}
  0x81   : > { %s5859_s26 = smov 4   ;;  %s5860_s20 = smov 64  }
  0x82   : > { %3246 = dma.hbm_to_vmem [thread:$0]  (!%p4002_p5), %s5846_s4, 16384, %s271_s8, [#allocation9], %s5860_s20, %s5860_s20, %s5859_s26  }
  0x83   : > { %s3817_s24 = scalar_lea.hbm %s5847_s5, 64 }
  0x84   : > { %p3818_p2 = scmp.ne.s32.totalorder %s5847_s5, %s3817_s24  ;;  %p3824_p13 = scmp.lt.u32.totalorder %s3817_s24, %s5847_s5 }
  0x86   : > { %p3820_p3 = pnand %p3818_p2, %p4016_p7 }
  0x88   : > { %p3821_p12 = pneg %p3820_p3 }
  0x8a   : > { %p3826_p0 = pnand %p3824_p13, %p3821_p12 }
  0x8c   : > { %3829 = shalt.err (!%p3826_p0)
}
  0x8d   : > { %s3830_s25 = scalar_lea.vmem %s284_s10, 64  ;;  %p3838_p8 = scmp.lt.s32.totalorder %s284_s10, %s284_s10 }
  0x8e   : > { %p3831_p1 = scmp.ne.s32.totalorder %s284_s10, %s3830_s25  ;;  %p3839_p9 = scmp.lt.s32.totalorder %s3830_s25, %s3830_s25 }
  0x90   : > { %p3833_p4 = pnand %p3831_p1, %p4016_p7  ;;  %p3840_p10 = por %p3839_p9, %p3838_p8 }
  0x92   : > { %p3834_p6 = pneg %p3833_p4 }
  0x94   : > { %p3841_p11 = pnand %p3840_p10, %p3834_p6 }
  0x96   : > { %3844 = shalt.err (!%p3841_p11)
}
  0x97   : > { %s3927_s8 = smov 1   ;;  %p5861_p2 = scmp.ne.s32.totalorder %s5856_s28, 0 }
  0x98   : > { %3249 = dma.hbm_to_vmem [thread:$0]  (!%p4002_p5), %s5847_s5, 64, %s284_s10, [#allocation12], %s3924_s16, %s3924_s16, %s3927_s8  }
  0x99   : > { %299 = sbr.rel (%p5861_p2) target bundleno = 920 (0x398), region = 44 }
  0xa0   : > { %p5862_p7 = scmp.ne.s32.totalorder %s5855_s27, 0 }
  0xa2   : > { %3884 = dma.done.wait (%p5862_p7), [#allocation3], 2176  }
  0xa3   : > { %3886 = vsyncadd (%p5862_p7), [#allocation3], 4294965120 }
  0xa4   : > { %3888 = dma.done.wait (%p5862_p7), [#allocation6], 33792  }
  0xa5   : > { %3890 = vsyncadd (%p5862_p7), [#allocation6], 4294933504 }
  0xa6   : > { %3892 = dma.done.wait (%p5862_p7), [#allocation9], 16640  }
  0xa7   : > { %3894 = vsyncadd (%p5862_p7), [#allocation9], 4294950656 }
  0xa8   : > { %3896 = dma.done.wait (%p5862_p7), [#allocation12], 64  }
  0xa9   : > { %3898 = vsyncadd (%p5862_p7), [#allocation12], 4294967232  ;;  %p3042_p5 = scmp.ne.s32.totalorder %s3905_s21, 0 }
  0xaa   : > { %v3928_v0 = vmov (!%p3042_p5), 0.0  }
  0xab   : > { %346 = sbr.rel (%p3042_p5) target bundleno = 188 (0xbc), region = 72  ;;  %347 = vst [vmem:[#allocation13] sm:$0xff] (!%p3042_p5), %v3928_v0  ;;  %348 = vst [vmem:[#allocation13 + $0x8] sm:$0xff] (!%p3042_p5), %v3928_v0 }
  0xac   : > { %349 = vst [vmem:[#allocation13 + $0x10] sm:$0xff] (!%p3042_p5), %v3928_v0  ;;  %350 = vst [vmem:[#allocation13 + $0x18] sm:$0xff] (!%p3042_p5), %v3928_v0 }
  0xad   : > { %351 = vst [vmem:[#allocation13 + $0x20] sm:$0xff] (!%p3042_p5), %v3928_v0  ;;  %352 = vst [vmem:[#allocation13 + $0x28] sm:$0xff] (!%p3042_p5), %v3928_v0 }
  0xae   : > { %353 = vst [vmem:[#allocation13 + $0x30] sm:$0xff] (!%p3042_p5), %v3928_v0  ;;  %354 = vst [vmem:[#allocation13 + $0x38] sm:$0xff] (!%p3042_p5), %v3928_v0 }
  0xaf   : > { %355 = vst [vmem:[#allocation13 + $0x40] sm:$0xff] (!%p3042_p5), %v3928_v0  ;;  %356 = vst [vmem:[#allocation13 + $0x48] sm:$0xff] (!%p3042_p5), %v3928_v0 }
  0xb0   : > { %357 = vst [vmem:[#allocation13 + $0x50] sm:$0xff] (!%p3042_p5), %v3928_v0  ;;  %358 = vst [vmem:[#allocation13 + $0x58] sm:$0xff] (!%p3042_p5), %v3928_v0 }
  0xb1   : > { %359 = vst [vmem:[#allocation13 + $0x60] sm:$0xff] (!%p3042_p5), %v3928_v0  ;;  %360 = vst [vmem:[#allocation13 + $0x68] sm:$0xff] (!%p3042_p5), %v3928_v0 }
  0xb2   : > { %361 = vst [vmem:[#allocation13 + $0x70] sm:$0xff] %v3928_v0  ;;  %362 = vst [vmem:[#allocation13 + $0x78] sm:$0xff] %v3928_v0 }
  0xb3   : > { %363 = vst [vmem:[#allocation13 + $0x80] sm:$0xff] %v3928_v0  ;;  %364 = vst [vmem:[#allocation13 + $0x88] sm:$0xff] %v3928_v0 }
  0xb4   : > { %365 = vst [vmem:[#allocation13 + $0x90] sm:$0xff] %v3928_v0  ;;  %366 = vst [vmem:[#allocation13 + $0x98] sm:$0xff] %v3928_v0 }
  0xb5   : > { %367 = vst [vmem:[#allocation13 + $0xa0] sm:$0xff] %v3928_v0  ;;  %368 = vst [vmem:[#allocation13 + $0xa8] sm:$0xff] %v3928_v0 }
  0xb6   : > { %369 = vst [vmem:[#allocation13 + $0xb0] sm:$0xff] %v3928_v0  ;;  %370 = vst [vmem:[#allocation13 + $0xb8] sm:$0xff] %v3928_v0 }
  0xb7   : > { %371 = vst [vmem:[#allocation13 + $0xc0] sm:$0xff] %v3928_v0  ;;  %372 = vst [vmem:[#allocation13 + $0xc8] sm:$0xff] %v3928_v0 }
  0xb8   : > { %373 = vst [vmem:[#allocation13 + $0xd0] sm:$0xff] %v3928_v0  ;;  %374 = vst [vmem:[#allocation13 + $0xd8] sm:$0xff] %v3928_v0 }
  0xb9   : > { %375 = vst [vmem:[#allocation13 + $0xe0] sm:$0xff] %v3928_v0  ;;  %376 = vst [vmem:[#allocation13 + $0xe8] sm:$0xff] %v3928_v0 }
  0xba   : > { %377 = vst [vmem:[#allocation13 + $0xf0] sm:$0xff] %v3928_v0  ;;  %378 = vst [vmem:[#allocation13 + $0xf8] sm:$0xff] %v3928_v0 }
  0xbb   : > { %379 = vst [vmem:[#allocation13 + $0x100] sm:$0xff] %v3928_v0  ;;  %380 = vst [vmem:[#allocation13 + $0x108] sm:$0xff] %v3928_v0 }
  0xbc PF: > { %s3133_s27 = sshll.u32 %s3905_s21, 8  ;;  %v3929_v1 = vmov 0   ;;  %v3356_v34 = vld [vmem:[#allocation2] sm:$0xff]   ;;  %v3357_v39 = vld [vmem:[#allocation2 + $0x8] sm:$0xff]   ;;  %v3358_v44 = vld [vmem:[#allocation2 + $0x10] sm:$0xff]   ;;  %s3043_s13 = sshll.u32 %s3905_s21, 2 }
  0xbd   : > { %806 = vmatprep.mubr.bf16.mxu0 %v3929_v1  ;;  %1009 = vmatprep.mubr.bf16.mxu1 %v3929_v1  ;;  %s4171_s28 = scalar_lea.vmem [#allocation7], %s3133_s27  ;;  %s4209_s29 = scalar_lea.vmem [#allocation10], %s3133_s27  ;;  %v3359_v49 = vld [vmem:[#allocation2 + $0x18] sm:$0xff]   ;;  %v3360_v54 = vld [vmem:[#allocation2 + $0x20] sm:$0xff]   ;;  %v3361_v59 = vld [vmem:[#allocation2 + $0x28] sm:$0xff]  }
  0xbe   : > { %v3308_v2 = vld [vmem:[%s4171_s28 + $0x4] ss:$16 sps:$4 sm:$0xff]   ;;  %3306 = vset.pattern.permute.xlu0 %v3929_v1  ;;  %3307 = vset.pattern.permute.xlu1 %v3929_v1  ;;  %v3310_v3 = vld [vmem:[%s4171_s28 + $0xc] ss:$16 sps:$4 sm:$0xff]   ;;  %v3312_v4 = vld [vmem:[%s4171_s28] ss:$16 sps:$4 sm:$0xff]  }
  0xbf   : > { %774 = vmatprep.subr.bf16.mxu0 %v3308_v2  ;;  %v3313_v5 = vld [vmem:[%s4171_s28 + $0x8] ss:$16 sps:$4 sm:$0xff]   ;;  %977 = vmatprep.subr.bf16.mxu1 %v3310_v3  ;;  %v3314_v6 = vld [vmem:[%s4171_s28 + $0x24] ss:$16 sps:$4 sm:$0xff]   ;;  %v3316_v7 = vld [vmem:[%s4171_s28 + $0x2c] ss:$16 sps:$4 sm:$0xff]  }
  0xc0   : > { %775 = vmatpush1.bf16.msra.mxu0 %v3312_v4  ;;  %978 = vmatpush1.bf16.msra.mxu1 %v3313_v5  ;;  %v3318_v8 = vld [vmem:[%s4171_s28 + $0x20] ss:$16 sps:$4 sm:$0xff]   ;;  %v3319_v9 = vld [vmem:[%s4171_s28 + $0x28] ss:$16 sps:$4 sm:$0xff]   ;;  %v3320_v10 = vld [vmem:[%s4171_s28 + $0x44] ss:$16 sps:$4 sm:$0xff]  }
  0xc1   : > { %776 = vmatprep.subr.bf16.mxu0 %v3314_v6  ;;  %979 = vmatprep.subr.bf16.mxu1 %v3316_v7  ;;  %v3322_v11 = vld [vmem:[%s4171_s28 + $0x4c] ss:$16 sps:$4 sm:$0xff]   ;;  %v3324_v12 = vld [vmem:[%s4171_s28 + $0x40] ss:$16 sps:$4 sm:$0xff]   ;;  %v3325_v13 = vld [vmem:[%s4171_s28 + $0x48] ss:$16 sps:$4 sm:$0xff]  }
  0xc2   : > { %v3326_v14 = vld [vmem:[%s4171_s28 + $0x64] ss:$16 sps:$4 sm:$0xff]   ;;  %v3328_v15 = vld [vmem:[%s4171_s28 + $0x6c] ss:$16 sps:$4 sm:$0xff]   ;;  %v3330_v16 = vld [vmem:[%s4171_s28 + $0x60] ss:$16 sps:$4 sm:$0xff]  }
  0xc3   : > { %v3331_v17 = vld [vmem:[%s4171_s28 + $0x68] ss:$16 sps:$4 sm:$0xff]   ;;  %v3332_v18 = vld [vmem:[%s4171_s28 + $0x84] ss:$16 sps:$4 sm:$0xff]   ;;  %v3334_v19 = vld [vmem:[%s4171_s28 + $0x8c] ss:$16 sps:$4 sm:$0xff]  }
  0xc4   : > { %777 = vmatpush1.bf16.msra.mxu0 %v3318_v8  ;;  %980 = vmatpush1.bf16.msra.mxu1 %v3319_v9  ;;  %v3336_v20 = vld [vmem:[%s4171_s28 + $0x80] ss:$16 sps:$4 sm:$0xff]   ;;  %v3337_v21 = vld [vmem:[%s4171_s28 + $0x88] ss:$16 sps:$4 sm:$0xff]   ;;  %v3338_v22 = vld [vmem:[%s4171_s28 + $0xa4] ss:$16 sps:$4 sm:$0xff]  }
  0xc5   : > { %778 = vmatprep.subr.bf16.mxu0 %v3320_v10  ;;  %981 = vmatprep.subr.bf16.mxu1 %v3322_v11  ;;  %v3340_v23 = vld [vmem:[%s4171_s28 + $0xac] ss:$16 sps:$4 sm:$0xff]   ;;  %v3342_v24 = vld [vmem:[%s4171_s28 + $0xa0] ss:$16 sps:$4 sm:$0xff]   ;;  %v3343_v25 = vld [vmem:[%s4171_s28 + $0xa8] ss:$16 sps:$4 sm:$0xff]  }
  0xc6   : > { %v3344_v26 = vld [vmem:[%s4171_s28 + $0xc4] ss:$16 sps:$4 sm:$0xff]   ;;  %v3346_v27 = vld [vmem:[%s4171_s28 + $0xcc] ss:$16 sps:$4 sm:$0xff]   ;;  %v3348_v28 = vld [vmem:[%s4171_s28 + $0xc0] ss:$16 sps:$4 sm:$0xff]  }
  0xc7   : > { %v3349_v29 = vld [vmem:[%s4171_s28 + $0xc8] ss:$16 sps:$4 sm:$0xff]   ;;  %v3350_v30 = vld [vmem:[%s4171_s28 + $0xe4] ss:$16 sps:$4 sm:$0xff]   ;;  %v3352_v31 = vld [vmem:[%s4171_s28 + $0xec] ss:$16 sps:$4 sm:$0xff]  }
  0xc8   : > { %779 = vmatpush1.bf16.msra.mxu0 %v3324_v12  ;;  %982 = vmatpush1.bf16.msra.mxu1 %v3325_v13  ;;  %v3354_v32 = vld [vmem:[%s4171_s28 + $0xe0] ss:$16 sps:$4 sm:$0xff]   ;;  %v3355_v33 = vld [vmem:[%s4171_s28 + $0xe8] ss:$16 sps:$4 sm:$0xff]   ;;  %s382_s16 = scalar_lea.vmem [#allocation8], %s3043_s13  ;;  %s386_s10 = smul.u32 272, %s3905_s21 }
  0xc9   : > { %780 = vmatprep.subr.bf16.mxu0 %v3326_v14  ;;  %983 = vmatprep.subr.bf16.mxu1 %v3328_v15  ;;  %v3369_v35 = vld [vmem:[%s4209_s29] sm:$0xff]   ;;  %v3373_v37 = vld [vmem:[%s4209_s29 + $0x8] sm:$0xff]   ;;  %v3376_v40 = vld [vmem:[%s4209_s29 + $0x10] sm:$0xff]   ;;  %s384_s14 = scalar_lea.vmem [#allocation11], %s3905_s21  ;;  %s3930_s21 = smov [#allocation13]  }
  0xca   : > { %v3371_v36 = vld [vmem:[%s4209_s29 + $0x80] sm:$0xff]   ;;  %v3374_v38 = vld [vmem:[%s4209_s29 + $0x88] sm:$0xff]   ;;  %v3377_v41 = vld [vmem:[%s4209_s29 + $0x90] sm:$0xff]   ;;  %s4704_s20 = scalar_lea.vmem [#allocation5], %s386_s10  ;;  %s2913_s15 = sshll.u32 %s3930_s21, 4  ;;  %s2914_s15 = int_to_ptr.vmem [resolvable:$true] %s2913_s15 }
  0xcb   : > { %v3379_v42 = vld [vmem:[%s4209_s29 + $0x18] sm:$0xff]   ;;  %v3381_v45 = vld [vmem:[%s4209_s29 + $0x20] sm:$0xff]   ;;  %v3383_v47 = vld [vmem:[%s4209_s29 + $0x28] sm:$0xff]   ;;  %s5987_s17 = sadd.s32 4294967295, %s3913_s23   ;;  %s3845_s24 = scalar_lea.vmem %s2914_s15, 4352 }
  0xcc   : > { %781 = vmatpush1.bf16.msra.mxu0 %v3330_v16  ;;  %984 = vmatpush1.bf16.msra.mxu1 %v3331_v17  ;;  %v3380_v43 = vld [vmem:[%s4209_s29 + $0x98] sm:$0xff]   ;;  %v3382_v46 = vld [vmem:[%s4209_s29 + $0xa0] sm:$0xff]   ;;  %v3384_v48 = vld [vmem:[%s4209_s29 + $0xa8] sm:$0xff]   ;;  %p5807_p3 = scmp.eq.s32.totalorder %s5987_s17, 3  ;;  %p3846_p12 = scmp.ne.s32.totalorder %s2914_s15, %s3845_s24 }
  0xcd   : > { %782 = vmatprep.subr.bf16.mxu0 %v3332_v18  ;;  %985 = vmatprep.subr.bf16.mxu1 %v3334_v19  ;;  %v3385_v50 = vld [vmem:[%s4209_s29 + $0x30] sm:$0xff]   ;;  %v3387_v52 = vld [vmem:[%s4209_s29 + $0x38] sm:$0xff]   ;;  %v3389_v55 = vld [vmem:[%s4209_s29 + $0x40] sm:$0xff]   ;;  %p3852_p1 = scmp.lt.s32.totalorder %s2914_s15, %s2914_s15  ;;  %p3853_p4 = scmp.lt.s32.totalorder %s3845_s24, %s3845_s24 }
  0xce   : > { %v3386_v51 = vld [vmem:[%s4209_s29 + $0xb0] sm:$0xff]   ;;  %v3388_v53 = vld [vmem:[%s4209_s29 + $0xb8] sm:$0xff]   ;;  %v3390_v56 = vld [vmem:[%s4209_s29 + $0xc0] sm:$0xff]   ;;  %p3847_p13 = pnand %p3846_p12, %p5807_p3 }
  0xcf   : > { %v3391_v57 = vld [vmem:[%s4209_s29 + $0x48] sm:$0xff]   ;;  %v3393_v60 = vld [vmem:[%s4209_s29 + $0x50] sm:$0xff]   ;;  %v3395_v62 = vld [vmem:[%s4209_s29 + $0x58] sm:$0xff]   ;;  %p3854_p6 = por %p3853_p4, %p3852_p1 }
  0xd0   : > { %783 = vmatpush1.bf16.msra.mxu0 %v3336_v20  ;;  %986 = vmatpush1.bf16.msra.mxu1 %v3337_v21  ;;  %v3392_v58 = vld [vmem:[%s4209_s29 + $0xc8] sm:$0xff]   ;;  %v3394_v61 = vld [vmem:[%s4209_s29 + $0xd0] sm:$0xff]   ;;  %v3396_v63 = vld [vmem:[%s4209_s29 + $0xd8] sm:$0xff]   ;;  %v492_v20 = vlaneseq  ;;  %p3848_p0 = pneg %p3847_p13 }
  0xd1   : > { %784 = vmatprep.subr.bf16.mxu0 %v3338_v22  ;;  %987 = vmatprep.subr.bf16.mxu1 %v3340_v23  ;;  %v3362_v0 = vld [vmem:[#allocation2 + $0x30] sm:$0xff]   ;;  %v3397_v2 = vld [vmem:[%s4209_s29 + $0x60] sm:$0xff]   ;;  %v3363_v4 = vld [vmem:[#allocation2 + $0x38] sm:$0xff]  }
  0xd2   : > { %v3398_v3 = vld [vmem:[%s4209_s29 + $0xe0] sm:$0xff]   ;;  %v3365_v6 = vld [vmem:[#allocation2 + $0x48] sm:$0xff]   ;;  %v3366_v7 = vld [vmem:[#allocation2 + $0x50] sm:$0xff]   ;;  %v493_v21 = vshrl.u32 %v492_v20, 7  ;;  %p3855_p8 = pnand %p3854_p6, %p3848_p0 }
  0xd3   : > { %v3364_v5 = vld [vmem:[#allocation2 + $0x40] sm:$0xff]   ;;  %v3367_v8 = vld [vmem:[#allocation2 + $0x58] sm:$0xff]   ;;  %v3370_v10 = vld [vmem:[#allocation2 + $0x68] sm:$0xff]  }
  0xd4   : > { %785 = vmatpush1.bf16.msra.mxu0 %v3342_v24  ;;  %988 = vmatpush1.bf16.msra.mxu1 %v3343_v25  ;;  %v3368_v9 = vld [vmem:[#allocation2 + $0x60] sm:$0xff]   ;;  %v3399_v11 = vld [vmem:[%s4209_s29 + $0x68] sm:$0xff]   ;;  %v3401_v13 = vld [vmem:[%s4209_s29 + $0x70] sm:$0xff]   ;;  %v494_v22 = vsub.s32 0, %v493_v21  ;;  %v502_v23 = vsub.s32 2, %v493_v21  ;;  %v498_v25 = vsub.s32 1, %v493_v21 }
  0xd5   : > { %786 = vmatprep.subr.bf16.mxu0 %v3344_v26  ;;  %989 = vmatprep.subr.bf16.mxu1 %v3346_v27  ;;  %v3400_v12 = vld [vmem:[%s4209_s29 + $0xe8] sm:$0xff]   ;;  %v3402_v14 = vld [vmem:[%s4209_s29 + $0xf0] sm:$0xff]   ;;  %v3375_v16 = vld [vmem:[#allocation2 + $0x78] sm:$0xff]   ;;  %v506_v26 = vsub.s32 3, %v493_v21 }
  0xd6   : > { %v3372_v15 = vld [vmem:[#allocation2 + $0x70] sm:$0xff]   ;;  %v3403_v17 = vld [vmem:[%s4209_s29 + $0x78] sm:$0xff]   ;;  %v3378_v19 = vld [vmem:[#allocation2 + $0x80] sm:$0xff]  }
  0xd7   : > { %v3404_v18 = vld [vmem:[%s4209_s29 + $0xf8] sm:$0xff]   ;;  %v383_v24 = vld [vmem:[%s382_s16] sm:$0xf] }
  0xd8   : > { %787 = vmatpush1.bf16.msra.mxu0 %v3348_v28  ;;  %990 = vmatpush1.bf16.msra.mxu1 %v3349_v29  ;;  %v4308_v27 = vrot.slane %v383_v24, %v494_v22  ;;  %v4310_v28 = vrot.slane %v383_v24, %v502_v23  ;;  %v4314_v29 = vrot.slane %v383_v24, %v506_v26 }
  0xd9   : > { %788 = vmatprep.subr.bf16.mxu0 %v3350_v30  ;;  %991 = vmatprep.subr.bf16.mxu1 %v3352_v31 }
  0xdc   : > { %789 = vmatpush1.bf16.msra.mxu0 %v3354_v32  ;;  %992 = vmatpush1.bf16.msra.mxu1 %v3355_v33 }
  0xdd   : > { %2192 = vmatprep.subr.bf16.mxu1 %v3929_v1  ;;  %2361 = vmatprep.subr.bf16.mxu0 %v3929_v1 }
  0xdf   : > { %807 = vmatmul.mubr.bf16.vlgmr.msra.gmra.mrb[0].mxu0 %v3356_v34  ;;  %1010 = vmatmul.mubr.bf16.vlgmr.msra.gmra.mrb[0].mxu1 %v3356_v34 }
  0xe0   : > { %816 = vmatprep.mubr.bf16.mxu0 %v3929_v1  ;;  %1019 = vmatprep.mubr.bf16.mxu1 %v3929_v1 }
  0xe1   : > { %2193 = vmatpush1.bf16.msra.mxu1 %v3369_v35  ;;  %2362 = vmatpush1.bf16.msra.mxu0 %v3371_v36 }
  0xe2   : > { %2194 = vmatprep.subr.bf16.mxu1 %v3929_v1  ;;  %2363 = vmatprep.subr.bf16.mxu0 %v3929_v1 }
  0xe5   : > { %2195 = vmatpush1.bf16.msra.mxu1 %v3373_v37  ;;  %2364 = vmatpush1.bf16.msra.mxu0 %v3374_v38 }
  0xe6   : > { %2196 = vmatprep.subr.bf16.mxu1 %v3929_v1  ;;  %2365 = vmatprep.subr.bf16.mxu0 %v3929_v1 }
  0xe7   : > { %817 = vmatmul.mubr.bf16.gmra.mrb[4].mxu0 %v3357_v39  ;;  %1020 = vmatmul.mubr.bf16.gmra.mrb[4].mxu1 %v3357_v39 }
  0xe8   : > { %826 = vmatprep.mubr.bf16.mxu0 %v3929_v1  ;;  %1029 = vmatprep.mubr.bf16.mxu1 %v3929_v1 }
  0xe9   : > { %2197 = vmatpush1.bf16.msra.mxu1 %v3376_v40  ;;  %2366 = vmatpush1.bf16.msra.mxu0 %v3377_v41 }
  0xea   : > { %2198 = vmatprep.subr.bf16.mxu1 %v3929_v1  ;;  %2367 = vmatprep.subr.bf16.mxu0 %v3929_v1 }
  0xed   : > { %2199 = vmatpush1.bf16.msra.mxu1 %v3379_v42  ;;  %2368 = vmatpush1.bf16.msra.mxu0 %v3380_v43 }
  0xee   : > { %2200 = vmatprep.subr.bf16.mxu1 %v3929_v1  ;;  %2369 = vmatprep.subr.bf16.mxu0 %v3929_v1 }
  0xef   : > { %827 = vmatmul.mubr.bf16.gmra.mrb[8].mxu0 %v3358_v44  ;;  %1030 = vmatmul.mubr.bf16.gmra.mrb[8].mxu1 %v3358_v44 }
  0xf0   : > { %836 = vmatprep.mubr.bf16.mxu0 %v3929_v1  ;;  %1039 = vmatprep.mubr.bf16.mxu1 %v3929_v1 }
  0xf1   : > { %2201 = vmatpush1.bf16.msra.mxu1 %v3381_v45  ;;  %2370 = vmatpush1.bf16.msra.mxu0 %v3382_v46 }
  0xf2   : > { %2202 = vmatprep.subr.bf16.mxu1 %v3929_v1  ;;  %2371 = vmatprep.subr.bf16.mxu0 %v3929_v1 }
  0xf5   : > { %2203 = vmatpush1.bf16.msra.mxu1 %v3383_v47  ;;  %2372 = vmatpush1.bf16.msra.mxu0 %v3384_v48 }
  0xf6   : > { %2204 = vmatprep.subr.bf16.mxu1 %v3929_v1  ;;  %2373 = vmatprep.subr.bf16.mxu0 %v3929_v1 }
  0xf7   : > { %837 = vmatmul.mubr.bf16.gmra.mrb[12].mxu0 %v3359_v49  ;;  %1040 = vmatmul.mubr.bf16.gmra.mrb[12].mxu1 %v3359_v49 }
  0xf8   : > { %846 = vmatprep.mubr.bf16.mxu0 %v3929_v1  ;;  %1049 = vmatprep.mubr.bf16.mxu1 %v3929_v1 }
  0xf9   : > { %2205 = vmatpush1.bf16.msra.mxu1 %v3385_v50  ;;  %2374 = vmatpush1.bf16.msra.mxu0 %v3386_v51 }
  0xfa   : > { %2206 = vmatprep.subr.bf16.mxu1 %v3929_v1  ;;  %2375 = vmatprep.subr.bf16.mxu0 %v3929_v1 }
  0xfd   : > { %2207 = vmatpush1.bf16.msra.mxu1 %v3387_v52  ;;  %2376 = vmatpush1.bf16.msra.mxu0 %v3388_v53 }
  0xfe   : > { %2208 = vmatprep.subr.bf16.mxu1 %v3929_v1  ;;  %2377 = vmatprep.subr.bf16.mxu0 %v3929_v1 }
  0xff   : > { %847 = vmatmul.mubr.bf16.gmra.mrb[16].mxu0 %v3360_v54  ;;  %1050 = vmatmul.mubr.bf16.gmra.mrb[16].mxu1 %v3360_v54 }
 0x100   : > { %856 = vmatprep.mubr.bf16.mxu0 %v3929_v1  ;;  %1059 = vmatprep.mubr.bf16.mxu1 %v3929_v1 }
 0x101   : > { %2209 = vmatpush1.bf16.msra.mxu1 %v3389_v55  ;;  %2378 = vmatpush1.bf16.msra.mxu0 %v3390_v56 }
 0x102   : > { %2210 = vmatprep.subr.bf16.mxu1 %v3929_v1  ;;  %2379 = vmatprep.subr.bf16.mxu0 %v3929_v1 }
 0x105   : > { %2211 = vmatpush1.bf16.msra.mxu1 %v3391_v57  ;;  %2380 = vmatpush1.bf16.msra.mxu0 %v3392_v58 }
 0x106   : > { %2212 = vmatprep.subr.bf16.mxu1 %v3929_v1  ;;  %2381 = vmatprep.subr.bf16.mxu0 %v3929_v1 }
 0x107   : > { %857 = vmatmul.mubr.bf16.gmra.mrb[20].mxu0 %v3361_v59  ;;  %1060 = vmatmul.mubr.bf16.gmra.mrb[20].mxu1 %v3361_v59 }
 0x108   : > { %866 = vmatprep.mubr.bf16.mxu0 %v3929_v1  ;;  %1069 = vmatprep.mubr.bf16.mxu1 %v3929_v1 }
 0x109   : > { %2213 = vmatpush1.bf16.msra.mxu1 %v3393_v60  ;;  %2382 = vmatpush1.bf16.msra.mxu0 %v3394_v61 }
 0x10a   : > { %2214 = vmatprep.subr.bf16.mxu1 %v3929_v1  ;;  %2383 = vmatprep.subr.bf16.mxu0 %v3929_v1 }
 0x10d   : > { %2215 = vmatpush1.bf16.msra.mxu1 %v3395_v62  ;;  %2384 = vmatpush1.bf16.msra.mxu0 %v3396_v63 }
 0x10e   : > { %2216 = vmatprep.subr.bf16.mxu1 %v3929_v1  ;;  %2385 = vmatprep.subr.bf16.mxu0 %v3929_v1 }
 0x10f   : > { %867 = vmatmul.mubr.bf16.gmra.mrb[24].mxu0 %v3362_v0  ;;  %1070 = vmatmul.mubr.bf16.gmra.mrb[24].mxu1 %v3362_v0 }
 0x110   : > { %876 = vmatprep.mubr.bf16.mxu0 %v3929_v1  ;;  %1079 = vmatprep.mubr.bf16.mxu1 %v3929_v1 }
 0x111   : > { %2217 = vmatpush1.bf16.msra.mxu1 %v3397_v2  ;;  %2386 = vmatpush1.bf16.msra.mxu0 %v3398_v3 }
 0x112   : > { %2218 = vmatprep.subr.bf16.mxu1 %v3929_v1  ;;  %2387 = vmatprep.subr.bf16.mxu0 %v3929_v1 }
 0x115   : > { %2219 = vmatpush1.bf16.msra.mxu1 %v3399_v11  ;;  %2388 = vmatpush1.bf16.msra.mxu0 %v3400_v12 }
 0x116   : > { %2220 = vmatprep.subr.bf16.mxu1 %v3929_v1  ;;  %2389 = vmatprep.subr.bf16.mxu0 %v3929_v1 }
 0x117   : > { %877 = vmatmul.mubr.bf16.gmra.mrb[28].mxu0 %v3363_v4  ;;  %1080 = vmatmul.mubr.bf16.gmra.mrb[28].mxu1 %v3363_v4 }
 0x118   : > { %886 = vmatprep.mubr.bf16.mxu0 %v3929_v1  ;;  %1089 = vmatprep.mubr.bf16.mxu1 %v3929_v1 }
 0x119   : > { %2221 = vmatpush1.bf16.msra.mxu1 %v3401_v13  ;;  %2390 = vmatpush1.bf16.msra.mxu0 %v3402_v14 }
 0x11a   : > { %2222 = vmatprep.subr.bf16.mxu1 %v3929_v1  ;;  %2391 = vmatprep.subr.bf16.mxu0 %v3929_v1 }
 0x11d   : > { %2223 = vmatpush1.bf16.msra.mxu1 %v3403_v17  ;;  %2392 = vmatpush1.bf16.msra.mxu0 %v3404_v18 }
 0x11f   : > { %887 = vmatmul.mubr.bf16.gmra.mrb[32].mxu0 %v3364_v5  ;;  %1090 = vmatmul.mubr.bf16.gmra.mrb[32].mxu1 %v3364_v5 }
 0x120   : > { %896 = vmatprep.mubr.bf16.mxu0 %v3929_v1  ;;  %1099 = vmatprep.mubr.bf16.mxu1 %v3929_v1 }
 0x127   : > { %897 = vmatmul.mubr.bf16.gmra.mrb[36].mxu0 %v3365_v6  ;;  %1100 = vmatmul.mubr.bf16.gmra.mrb[36].mxu1 %v3365_v6 }
 0x128   : > { %906 = vmatprep.mubr.bf16.mxu0 %v3929_v1  ;;  %1109 = vmatprep.mubr.bf16.mxu1 %v3929_v1 }
 0x12f   : > { %907 = vmatmul.mubr.bf16.gmra.mrb[40].mxu0 %v3366_v7  ;;  %1110 = vmatmul.mubr.bf16.gmra.mrb[40].mxu1 %v3366_v7 }
 0x130   : > { %916 = vmatprep.mubr.bf16.mxu0 %v3929_v1  ;;  %1119 = vmatprep.mubr.bf16.mxu1 %v3929_v1 }
 0x137   : > { %917 = vmatmul.mubr.bf16.gmra.mrb[44].mxu0 %v3367_v8  ;;  %1120 = vmatmul.mubr.bf16.gmra.mrb[44].mxu1 %v3367_v8 }
 0x138   : > { %926 = vmatprep.mubr.bf16.mxu0 %v3929_v1  ;;  %1129 = vmatprep.mubr.bf16.mxu1 %v3929_v1 }
 0x13f   : > { %927 = vmatmul.mubr.bf16.gmra.mrb[48].mxu0 %v3368_v9  ;;  %1130 = vmatmul.mubr.bf16.gmra.mrb[48].mxu1 %v3368_v9 }
 0x140   : > { %936 = vmatprep.mubr.bf16.mxu0 %v3929_v1  ;;  %1139 = vmatprep.mubr.bf16.mxu1 %v3929_v1 }
 0x147   : > { %937 = vmatmul.mubr.bf16.gmra.mrb[52].mxu0 %v3370_v10  ;;  %1140 = vmatmul.mubr.bf16.gmra.mrb[52].mxu1 %v3370_v10 }
 0x148   : > { %946 = vmatprep.mubr.bf16.mxu0 %v3929_v1  ;;  %1149 = vmatprep.mubr.bf16.mxu1 %v3929_v1 }
 0x14f   : > { %947 = vmatmul.mubr.bf16.gmra.mrb[56].mxu0 %v3372_v15  ;;  %1150 = vmatmul.mubr.bf16.gmra.mrb[56].mxu1 %v3372_v15 }
 0x150   : > { %956 = vmatprep.mubr.bf16.mxu0 %v3929_v1  ;;  %1159 = vmatprep.mubr.bf16.mxu1 %v3929_v1 }
 0x157   : > { %957 = vmatmul.mubr.bf16.gmra.mrb[60].mxu0 %v3375_v16  ;;  %1160 = vmatmul.mubr.bf16.gmra.mrb[60].mxu1 %v3375_v16 }
 0x158   : > { %966 = vmatprep.mubr.bf16.mxu0 %v3929_v1  ;;  %1169 = vmatprep.mubr.bf16.mxu1 %v3929_v1  ;;  %v4312_v1 = vrot.slane %v383_v24, %v498_v25 }
 0x15f   : > { %967 = vmatmul.mubr.bf16.gmra.mrb[64].mxu0 %v3378_v19  ;;  %1170 = vmatmul.mubr.bf16.gmra.mrb[64].mxu1 %v3378_v19 }
 0x1b2   : > { %v808_v30 = vpop.f32.mrb[0].mxu0  ;;  %v1011_v31 = vpop.f32.mrb[0].mxu1 }
 0x1b3   : > { %v4317_v32 = vadd.f32 %v808_v30, %v4308_v27  ;;  %v4320_v33 = vadd.f32 %v1011_v31, %v4310_v28  ;;  %v810_v34 = vpop.f32.mrb[1].mxu0  ;;  %v1013_v35 = vpop.f32.mrb[1].mxu1 }
 0x1b4   : > { %v4323_v36 = vadd.f32 %v810_v34, %v4312_v1  ;;  %v4326_v37 = vadd.f32 %v1013_v35, %v4314_v29  ;;  %v812_v38 = vpop.f32.mrb[2].mxu0  ;;  %v1015_v39 = vpop.f32.mrb[2].mxu1 }
 0x1b5   : > { %v1180_v40 = vmul.f32 0.70710677, %v4317_v32  ;;  %v1182_v41 = vmul.f32 0.70710677, %v4320_v33  ;;  %v4331_v42 = vadd.f32 %v812_v38, %v4308_v27  ;;  %v4334_v43 = vadd.f32 %v1015_v39, %v4310_v28  ;;  %v814_v44 = vpop.f32.mrb[3].mxu0  ;;  %v1017_v45 = vpop.f32.mrb[3].mxu1 }
 0x1b6   : > { %v1181_v46 = vmul.f32 0.70710677, %v4323_v36  ;;  %v1183_v47 = vmul.f32 0.70710677, %v4326_v37  ;;  %v4339_v48 = vadd.f32 %v814_v44, %v4312_v1  ;;  %v4342_v49 = vadd.f32 %v1017_v45, %v4314_v29 }
 0x1b7   : > { %3405 = verf.f32 %v1180_v40  ;;  %v1184_v50 = vmul.f32 0.70710677, %v4331_v42  ;;  %v1186_v51 = vmul.f32 0.70710677, %v4334_v43 }
 0x1b8   : > { %3407 = verf.f32 %v1182_v41  ;;  %v1185_v52 = vmul.f32 0.70710677, %v4339_v48  ;;  %v1187_v53 = vmul.f32 0.70710677, %v4342_v49 }
 0x1b9   : > { %3409 = verf.f32 %v1181_v46 }
 0x1ba   : > { %3411 = verf.f32 %v1183_v47  ;;  %v818_v54 = vpop.f32.mrb[4].mxu0  ;;  %v1021_v55 = vpop.f32.mrb[4].mxu1 }
 0x1bb   : > { %3413 = verf.f32 %v1184_v50  ;;  %v4349_v56 = vadd.f32 %v818_v54, %v4308_v27  ;;  %v4352_v57 = vadd.f32 %v1021_v55, %v4310_v28  ;;  %v820_v58 = vpop.f32.mrb[5].mxu0  ;;  %v1023_v59 = vpop.f32.mrb[5].mxu1 }
 0x1bc   : > { %3415 = verf.f32 %v1186_v51  ;;  %v4355_v60 = vadd.f32 %v820_v58, %v4312_v1  ;;  %v4358_v61 = vadd.f32 %v1023_v59, %v4314_v29  ;;  %v822_v62 = vpop.f32.mrb[6].mxu0  ;;  %v1025_v63 = vpop.f32.mrb[6].mxu1 }
 0x1bd   : > { %3417 = verf.f32 %v1185_v52  ;;  %v1188_v0 = vmul.f32 0.70710677, %v4349_v56  ;;  %v1190_v2 = vmul.f32 0.70710677, %v4352_v57  ;;  %v4363_v3 = vadd.f32 %v822_v62, %v4308_v27  ;;  %v824_v4 = vpop.f32.mrb[7].mxu0  ;;  %v1027_v5 = vpop.f32.mrb[7].mxu1 }
 0x1be   : > { %3419 = verf.f32 %v1187_v53  ;;  %v1189_v6 = vmul.f32 0.70710677, %v4355_v60  ;;  %v1191_v7 = vmul.f32 0.70710677, %v4358_v61  ;;  %v4368_v8 = vadd.f32 %v1025_v63, %v4310_v28 }
 0x1bf   : > { %3421 = verf.f32 %v1188_v0  ;;  %v1192_v9 = vmul.f32 0.70710677, %v4363_v3  ;;  %v4372_v10 = vadd.f32 %v824_v4, %v4312_v1  ;;  %v4375_v11 = vadd.f32 %v1027_v5, %v4314_v29 }
 0x1c0   : > { %3423 = verf.f32 %v1190_v2  ;;  %v1194_v12 = vmul.f32 0.70710677, %v4368_v8 }
 0x1c1   : > { %v3406_v13 = vpop.eup %3405  ;;  %3425 = verf.f32 %v1189_v6  ;;  %v1193_v14 = vmul.f32 0.70710677, %v4372_v10  ;;  %v1195_v17 = vmul.f32 0.70710677, %v4375_v11 }
 0x1c2   : > { %v3408_v15 = vpop.eup %3407  ;;  %v1452_v16 = vadd.f32 1.0, %v3406_v13  ;;  %3427 = verf.f32 %v1191_v7  ;;  %v828_v18 = vpop.f32.mrb[8].mxu0 }
 0x1c3   : > { %v1031_v19 = vpop.f32.mrb[8].mxu1  ;;  %v3410_v20 = vpop.eup %3409  ;;  %v1454_v21 = vadd.f32 1.0, %v3408_v15  ;;  %3429 = verf.f32 %v1192_v9  ;;  %v4381_v22 = vadd.f32 %v828_v18, %v4308_v27 }
 0x1c4   : > { %v4384_v23 = vadd.f32 %v1031_v19, %v4310_v28  ;;  %v830_v24 = vpop.f32.mrb[9].mxu0  ;;  %v4386_v25 = vpop.f32.mrb[9].mxu1  ;;  %v1588_v30 = vmul.f32 0.5, %v1452_v16  ;;  %v1453_v31 = vadd.f32 1.0, %v3410_v20  ;;  %3431 = verf.f32 %v1194_v12 }
 0x1c5   : > { %v3412_v26 = vpop.eup %3411  ;;  %v4389_v34 = vadd.f32 %v830_v24, %v4312_v1  ;;  %v4391_v35 = vpop.f32.mrb[10].mxu0  ;;  %v1590_v40 = vmul.f32 0.5, %v1454_v21  ;;  %3433 = verf.f32 %v1193_v14  ;;  %v1196_v44 = vmul.f32 0.70710677, %v4381_v22 }
 0x1c6   : > { %v4393_v38 = vpop.f32.mrb[10].mxu1  ;;  %v3414_v39 = vpop.eup %3413  ;;  %v1455_v41 = vadd.f32 1.0, %v3412_v26  ;;  %v4401_v50 = vmul.f32 %v1588_v30, %v4317_v32  ;;  %v1589_v51 = vmul.f32 0.5, %v1453_v31  ;;  %3435 = verf.f32 %v1195_v17 }
 0x1c7   : > { %v4396_v45 = vpop.f32.mrb[11].mxu0  ;;  %v4398_v46 = vpop.f32.mrb[11].mxu1  ;;  %v1456_v52 = vadd.f32 1.0, %v3414_v39  ;;  %v4404_v54 = vmul.f32 %v1590_v40, %v4320_v33  ;;  %3437 = verf.f32 %v1196_v44  ;;  %v1198_v2 = vmul.f32 0.70710677, %v4384_v23 }
 0x1c8   : > { %v3416_v47 = vpop.eup %3415  ;;  %v1591_v55 = vmul.f32 0.5, %v1455_v41  ;;  %v4407_v62 = vmul.f32 %v1589_v51, %v4323_v36  ;;  %v1197_v33 = vmul.f32 0.70710677, %v4389_v34 }
 0x1c9   : > { %v3418_v53 = vpop.eup %3417  ;;  %v1458_v58 = vadd.f32 1.0, %v3416_v47  ;;  %v1592_v63 = vmul.f32 0.5, %v1456_v52  ;;  %3439 = verf.f32 %v1198_v2  ;;  %v4458_v2 = vadd.f32 %v4391_v35, %v4308_v27 }
 0x1ca   : > { %v3420_v59 = vpop.eup %3419  ;;  %v1457_v0 = vadd.f32 1.0, %v3418_v53  ;;  %v4411_v4 = vmul.f32 %v1591_v55, %v4326_v37  ;;  %v4417_v36 = vpop.f32.mrb[12].mxu0  ;;  %3441 = verf.f32 %v1197_v33 }
 0x1cb   : > { %v3422_v32 = vpop.eup %3421  ;;  %v1594_v5 = vmul.f32 0.5, %v1458_v58  ;;  %v1459_v6 = vadd.f32 1.0, %v3420_v59  ;;  %v4415_v9 = vmul.f32 %v1592_v63, %v4331_v42  ;;  %v4419_v14 = vpop.f32.mrb[12].mxu1  ;;  %v4451_v58 = vadd.f32 %v4386_v25, %v4314_v29 }
 0x1cc   : > { %v3424_v7 = vpop.eup %3423  ;;  %v1593_v12 = vmul.f32 0.5, %v1457_v0  ;;  %v1460_v13 = vadd.f32 1.0, %v3422_v32  ;;  %v4424_v18 = vpop.f32.mrb[13].mxu0 }
 0x1cd   : > { %v3426_v15 = vpop.eup %3425  ;;  %v4422_v16 = vmul.f32 %v1594_v5, %v4334_v43  ;;  %v1595_v37 = vmul.f32 0.5, %v1459_v6  ;;  %v1462_v17 = vadd.f32 1.0, %v3424_v7  ;;  %v4426_v19 = vpop.f32.mrb[13].mxu1  ;;  %v1860_v20 = vpack.c.bf16 %v4415_v9, %v4401_v50 }
 0x1ce   : > { %v3428_v42 = vpop.eup %3427  ;;  %v4431_v21 = vmul.f32 %v1593_v12, %v4339_v48  ;;  %v1596_v24 = vmul.f32 0.5, %v1460_v13  ;;  %v1461_v26 = vadd.f32 1.0, %v3426_v15  ;;  %v4433_v30 = vpop.f32.mrb[14].mxu0  ;;  %v1199_v33 = vmul.f32 0.70710677, %v4451_v58 }
 0x1cf   : > { %v4435_v43 = vpop.f32.mrb[14].mxu1  ;;  %v3430_v31 = vpop.eup %3429  ;;  %v1862_v39 = vpack.c.bf16 %v4422_v16, %v4404_v54  ;;  %v4440_v40 = vmul.f32 %v1595_v37, %v4342_v49  ;;  %v1598_v41 = vmul.f32 0.5, %v1462_v17  ;;  %v1463_v44 = vadd.f32 1.0, %v3428_v42 }
 0x1d0   : > { %v4442_v47 = vpop.f32.mrb[15].mxu0  ;;  %v4444_v51 = vpop.f32.mrb[15].mxu1  ;;  %v4447_v52 = vmul.f32 %v1596_v24, %v4349_v56  ;;  %v1597_v53 = vmul.f32 0.5, %v1461_v26  ;;  %v1464_v55 = vadd.f32 1.0, %v3430_v31  ;;  %v1200_v13 = vmul.f32 0.70710677, %v4458_v2 }
 0x1d1   : > { %v3432_v48 = vpop.eup %3431  ;;  %v4454_v49 = vmul.f32 %v1598_v41, %v4352_v57  ;;  %v1599_v63 = vmul.f32 0.5, %v1463_v44  ;;  %3443 = verf.f32 %v1199_v33 }
 0x1d2   : > { %v3434_v59 = vpop.eup %3433  ;;  %v1466_v0 = vadd.f32 1.0, %v3432_v48  ;;  %v4461_v56 = vmul.f32 %v1597_v53, %v4355_v60  ;;  %v1600_v5 = vmul.f32 0.5, %v1464_v55  ;;  %v4471_v60 = vpop.f32.mrb[16].mxu0  ;;  %3445 = verf.f32 %v1200_v13 }
 0x1d3   : > { %v3436_v32 = vpop.eup %3435  ;;  %v1465_v6 = vadd.f32 1.0, %v3434_v59  ;;  %v4465_v7 = vmul.f32 %v1599_v63, %v4358_v61  ;;  %v4473_v17 = vpop.f32.mrb[16].mxu1  ;;  %v4480_v61 = vadd.f32 %v4393_v38, %v4310_v28  ;;  %v4491_v48 = vadd.f32 %v4396_v45, %v4312_v1 }
 0x1d4   : > { %v3438_v25 = vpop.eup %3437  ;;  %v1602_v57 = vmul.f32 0.5, %v1466_v0  ;;  %v1467_v12 = vadd.f32 1.0, %v3436_v32  ;;  %v4469_v15 = vmul.f32 %v1600_v5, %v4363_v3  ;;  %v4482_v26 = vpop.f32.mrb[17].mxu0  ;;  %v4507_v0 = vadd.f32 %v4417_v36, %v4308_v27 }
 0x1d5   : > { %v1601_v35 = vmul.f32 0.5, %v1465_v6  ;;  %v1468_v37 = vadd.f32 1.0, %v3438_v25  ;;  %v4484_v3 = vpop.f32.mrb[17].mxu1  ;;  %v3440_v31 = vpop.eup %3439  ;;  %v1201_v6 = vmul.f32 0.70710677, %v4491_v48  ;;  %v4521_v36 = vadd.f32 %v4419_v14, %v4310_v28 }
 0x1d6   : > { %v4476_v42 = vmul.f32 %v1602_v57, %v4368_v8  ;;  %v1603_v24 = vmul.f32 0.5, %v1467_v12  ;;  %v4495_v8 = vadd.f32 %v4398_v46, %v4314_v29  ;;  %v4497_v53 = vpop.f32.mrb[18].mxu0  ;;  %v4499_v38 = vpop.f32.mrb[18].mxu1  ;;  %v1470_v63 = vadd.f32 1.0, %v3440_v31 }
 0x1d7   : > { %v4487_v41 = vmul.f32 %v1601_v35, %v4372_v10  ;;  %v1604_v44 = vmul.f32 0.5, %v1468_v37  ;;  %v3442_v55 = vpop.eup %3441  ;;  %v1202_v10 = vmul.f32 0.70710677, %v4480_v61  ;;  %v4509_v45 = vpop.f32.mrb[19].mxu0  ;;  %v1204_v25 = vmul.f32 0.70710677, %v4507_v0 }
 0x1d8   : > { %v4502_v59 = vmul.f32 %v1603_v24, %v4375_v11  ;;  %v4511_v32 = vpop.f32.mrb[19].mxu1  ;;  %v1469_v5 = vadd.f32 1.0, %v3442_v55  ;;  %v1203_v11 = vmul.f32 0.70710677, %v4495_v8  ;;  %v1606_v33 = vmul.f32 0.5, %v1470_v63 }
 0x1d9   : > { %v4514_v46 = vmul.f32 %v1604_v44, %v4381_v22  ;;  %3447 = verf.f32 %v1202_v10  ;;  %v4525_v12 = vadd.f32 %v4424_v18, %v4312_v1  ;;  %v4529_v22 = vadd.f32 %v4426_v19, %v4314_v29 }
 0x1da   : > { %v1605_v57 = vmul.f32 0.5, %v1469_v5  ;;  %3449 = verf.f32 %v1201_v6  ;;  %v4532_v13 = vmul.f32 %v1606_v33, %v4384_v23  ;;  %v1206_v35 = vmul.f32 0.70710677, %v4521_v36  ;;  %v4544_v19 = vpop.f32.mrb[20].mxu0  ;;  %v4546_v31 = vpop.f32.mrb[20].mxu1 }
 0x1db   : > { %3451 = verf.f32 %v1203_v11  ;;  %v4537_v14 = vadd.f32 %v4433_v30, %v4308_v27  ;;  %v1205_v18 = vmul.f32 0.70710677, %v4525_v12  ;;  %v1207_v24 = vmul.f32 0.70710677, %v4529_v22  ;;  %v4557_v30 = vpop.f32.mrb[21].mxu0  ;;  %v4559_v55 = vpop.f32.mrb[21].mxu1 }
 0x1dc   : > { %v4540_v37 = vmul.f32 %v1605_v57, %v4389_v34  ;;  %3453 = verf.f32 %v1204_v25  ;;  %v4551_v44 = vadd.f32 %v4435_v43, %v4310_v28  ;;  %v4555_v34 = vadd.f32 %v4442_v47, %v4312_v1  ;;  %v3444_v63 = vpop.eup %3443  ;;  %v4569_v6 = vpop.f32.mrb[22].mxu0 }
 0x1dd   : > { %3455 = verf.f32 %v1206_v35  ;;  %v1208_v23 = vmul.f32 0.70710677, %v4537_v14  ;;  %v4563_v10 = vadd.f32 %v4444_v51, %v4314_v29  ;;  %v1861_v5 = vpack.c.bf16 %v4431_v21, %v4407_v62  ;;  %v4571_v47 = vpop.f32.mrb[22].mxu1  ;;  %v3446_v11 = vpop.eup %3445 }
 0x1de   : > { %3457 = verf.f32 %v1205_v18  ;;  %v1863_v43 = vpack.c.bf16 %v4440_v40, %v4411_v4  ;;  %v1471_v33 = vadd.f32 1.0, %v3444_v63  ;;  %v1210_v25 = vmul.f32 0.70710677, %v4551_v44  ;;  %v4575_v35 = vpop.f32.mrb[23].mxu0  ;;  %v4582_v21 = vpop.f32.mrb[23].mxu1 }
 0x1df   : > { %3459 = verf.f32 %v1207_v24  ;;  %v1209_v57 = vmul.f32 0.70710677, %v4555_v34  ;;  %v1472_v51 = vadd.f32 1.0, %v3446_v11  ;;  %v1211_v62 = vmul.f32 0.70710677, %v4563_v10  ;;  %2224 = vmatprep.mubr.bf16.mxu1 %v1861_v5 }
 0x1e0   : > { %3461 = verf.f32 %v1208_v23  ;;  %2393 = vmatprep.mubr.bf16.mxu0 %v1863_v43  ;;  %v4580_v4 = vadd.f32 %v4471_v60, %v4308_v27  ;;  %v1607_v40 = vmul.f32 0.5, %v1471_v33  ;;  %2225 = vmatmul.mubr.bf16.vlgmr.msra.gmra.mrb[68].mxu1 %v1860_v20  ;;  %v4592_v18 = vadd.f32 %v4473_v17, %v4310_v28 }
 0x1e1   : > { %3463 = verf.f32 %v1210_v25  ;;  %2394 = vmatmul.mubr.bf16.vlgmr.msra.gmra.mrb[68].mxu0 %v1862_v39  ;;  %v4596_v60 = vadd.f32 %v4482_v26, %v4312_v1  ;;  %v1608_v24 = vmul.f32 0.5, %v1472_v51  ;;  %v4601_v50 = vadd.f32 %v4484_v3, %v4314_v29 }
 0x1e2   : > { %3465 = verf.f32 %v1209_v57  ;;  %v1212_v23 = vmul.f32 0.70710677, %v4580_v4  ;;  %v4604_v54 = vmul.f32 %v1607_v40, %v4451_v58  ;;  %v1214_v16 = vmul.f32 0.70710677, %v4592_v18  ;;  %v4612_v5 = vpop.f32.mrb[24].mxu0  ;;  %v4614_v3 = vpop.f32.mrb[24].mxu1 }
 0x1e3   : > { %v3448_v9 = vpop.eup %3447  ;;  %3467 = verf.f32 %v1211_v62  ;;  %v1213_v20 = vmul.f32 0.70710677, %v4596_v60  ;;  %v4609_v17 = vmul.f32 %v1608_v24, %v4458_v2  ;;  %v1215_v63 = vmul.f32 0.70710677, %v4601_v50  ;;  %5863 = vst [vmem:[#allocation19_spill] sm:$0xff] %v4612_v5  ;;  %5864 = vst [vmem:[#allocation20_spill] sm:$0xff] %v4614_v3 }
 0x1e4   : > { %v3450_v39 = vpop.eup %3449  ;;  %v1474_v26 = vadd.f32 1.0, %v3448_v9  ;;  %3469 = verf.f32 %v1212_v23  ;;  %v4618_v11 = vadd.f32 %v4497_v53, %v4308_v27  ;;  %v4622_v33 = vadd.f32 %v4499_v38, %v4310_v28  ;;  %v4624_v2 = vpop.f32.mrb[25].mxu0 }
 0x1e5   : > { %v3452_v43 = vpop.eup %3451  ;;  %v1473_v58 = vadd.f32 1.0, %v3450_v39  ;;  %3471 = verf.f32 %v1214_v16  ;;  %5865 = vst [vmem:[#allocation21_spill] sm:$0xff] %v4624_v2  ;;  %v4626_v25 = vpop.f32.mrb[25].mxu1  ;;  %v4630_v40 = vadd.f32 %v4509_v45, %v4312_v1 }
 0x1e6   : > { %5866 = vst [vmem:[#allocation22_spill] sm:$0xff] %v4626_v25  ;;  %v3454_v57 = vpop.eup %3453  ;;  %v1610_v51 = vmul.f32 0.5, %v1474_v26  ;;  %v1475_v62 = vadd.f32 1.0, %v3452_v43  ;;  %3473 = verf.f32 %v1213_v20  ;;  %v4632_v24 = vpop.f32.mrb[26].mxu0  ;;  %v1216_v16 = vmul.f32 0.70710677, %v4618_v11 }
 0x1e7   : > { %5867 = vst [vmem:[#allocation23_spill] sm:$0xff] %v4632_v24  ;;  %v4634_v53 = vpop.f32.mrb[26].mxu1  ;;  %v3456_v23 = vpop.eup %3455  ;;  %v1609_v9 = vmul.f32 0.5, %v1473_v58  ;;  %v1476_v38 = vadd.f32 1.0, %v3454_v57  ;;  %3475 = verf.f32 %v1215_v63  ;;  %v1218_v24 = vmul.f32 0.70710677, %v4622_v33 }
 0x1e8   : > { %5868 = vst [vmem:[#allocation24_spill] sm:$0xff] %v4634_v53  ;;  %v4637_v39 = vpop.f32.mrb[27].mxu0  ;;  %v4639_v25 = vpop.f32.mrb[27].mxu1  ;;  %v4642_v20 = vmul.f32 %v1610_v51, %v4480_v61  ;;  %v1611_v45 = vmul.f32 0.5, %v1475_v62  ;;  %v1478_v43 = vadd.f32 1.0, %v3456_v23  ;;  %3477 = verf.f32 %v1216_v16 }
 0x1e9   : > { %5869 = vst [vmem:[#allocation25_spill] sm:$0xff] %v4637_v39  ;;  %5870 = vst [vmem:[#allocation26_spill] sm:$0xff] %v4639_v25  ;;  %v3458_v26 = vpop.eup %3457  ;;  %v4646_v53 = vmul.f32 %v1609_v9, %v4491_v48  ;;  %v1612_v58 = vmul.f32 0.5, %v1476_v38  ;;  %3479 = verf.f32 %v1218_v24  ;;  %v1217_v5 = vmul.f32 0.70710677, %v4630_v40 }
 0x1ea   : > { %v3460_v2 = vpop.eup %3459  ;;  %v1477_v63 = vadd.f32 1.0, %v3458_v26  ;;  %v4649_v39 = vmul.f32 %v1611_v45, %v4495_v8  ;;  %v1614_v25 = vmul.f32 0.5, %v1478_v43  ;;  %v4660_v8 = vadd.f32 %v4511_v32, %v4314_v29  ;;  %v4664_v24 = vpop.f32.mrb[28].mxu1 }
 0x1eb   : > { %v3462_v57 = vpop.eup %3461  ;;  %v1479_v3 = vadd.f32 1.0, %v3460_v2  ;;  %v4652_v51 = vmul.f32 %v1612_v58, %v4507_v0  ;;  %v4662_v2 = vpop.f32.mrb[28].mxu0  ;;  %3481 = verf.f32 %v1217_v5 }
 0x1ec   : > { %v3464_v61 = vpop.eup %3463  ;;  %v1613_v62 = vmul.f32 0.5, %v1477_v63  ;;  %v1480_v23 = vadd.f32 1.0, %v3462_v57  ;;  %v4656_v9 = vmul.f32 %v1614_v25, %v4521_v36  ;;  %v4669_v58 = vpop.f32.mrb[29].mxu0  ;;  %v1219_v57 = vmul.f32 0.70710677, %v4660_v8 }
 0x1ed   : > { %v3466_v48 = vpop.eup %3465  ;;  %v1615_v38 = vmul.f32 0.5, %v1479_v3  ;;  %v1482_v16 = vadd.f32 1.0, %v3464_v61  ;;  %5871 = vst [vmem:[#allocation27_spill] sm:$0xff] %v4669_v58  ;;  %v4671_v36 = vpop.f32.mrb[29].mxu1 }
 0x1ee   : > { %v3468_v0 = vpop.eup %3467  ;;  %v4667_v26 = vmul.f32 %v1613_v62, %v4525_v12  ;;  %v1616_v45 = vmul.f32 0.5, %v1480_v23  ;;  %v1481_v43 = vadd.f32 1.0, %v3466_v48  ;;  %5872 = vst [vmem:[#allocation28_spill] sm:$0xff] %v4671_v36  ;;  %v4677_v61 = vpop.f32.mrb[30].mxu0  ;;  %v1865_v36 = vpack.c.bf16 %v4487_v41, %v4461_v56 }
 0x1ef   : > { %v3470_v3 = vpop.eup %3469  ;;  %v4674_v32 = vmul.f32 %v1615_v38, %v4529_v22  ;;  %v1618_v25 = vmul.f32 0.5, %v1482_v16  ;;  %v1483_v63 = vadd.f32 1.0, %v3468_v0  ;;  %5873 = vst [vmem:[#allocation29_spill] sm:$0xff] %v4677_v61  ;;  %v4679_v12 = vpop.f32.mrb[30].mxu1  ;;  %3483 = verf.f32 %v1219_v57 }
 0x1f0   : > { %5874 = vst [vmem:[#allocation30_spill] sm:$0xff] %v4679_v12  ;;  %v3472_v62 = vpop.eup %3471  ;;  %v4682_v5 = vmul.f32 %v1616_v45, %v4537_v14  ;;  %v1617_v23 = vmul.f32 0.5, %v1481_v43  ;;  %v1484_v48 = vadd.f32 1.0, %v3470_v3  ;;  %v4686_v58 = vpop.f32.mrb[31].mxu0  ;;  %2232 = vmatprep.mubr.bf16.mxu1 %v1865_v36  ;;  %v1867_v56 = vpack.c.bf16 %v4502_v59, %v4465_v7 }
 0x1f1   : > { %v4688_v22 = vpop.f32.mrb[31].mxu1  ;;  %v3474_v38 = vpop.eup %3473  ;;  %v4692_v16 = vmul.f32 %v1618_v25, %v4551_v44  ;;  %v1619_v0 = vmul.f32 0.5, %v1483_v63  ;;  %v1486_v12 = vadd.f32 1.0, %v3472_v62  ;;  %v1864_v44 = vpack.c.bf16 %v4469_v15, %v4447_v52  ;;  %v388_v25 = vld [vmem:[%s4704_s20] sm:$0xff] }
 0x1f2   : > { %5875 = vst [vmem:[#allocation31_spill] sm:$0xff] %v4688_v22  ;;  %v3476_v61 = vpop.eup %3475  ;;  %v4695_v14 = vmul.f32 %v1617_v23, %v4555_v34  ;;  %v1620_v45 = vmul.f32 0.5, %v1484_v48  ;;  %v1485_v43 = vadd.f32 1.0, %v3474_v38  ;;  %2401 = vmatprep.mubr.bf16.mxu0 %v1867_v56  ;;  %v1866_v7 = vpack.c.bf16 %v4476_v42, %v4454_v49  ;;  %2634 = vperm.xlu0 %3306, %v388_v25  }
 0x1f3   : > { %v4700_v41 = vmul.f32 %v1619_v0, %v4563_v10  ;;  %v1622_v3 = vmul.f32 0.5, %v1486_v12  ;;  %v1487_v22 = vadd.f32 1.0, %v3476_v61  ;;  %v3478_v34 = vpop.eup %3477  ;;  %v4714_v59 = vadd.f32 %v4544_v19, %v4308_v27  ;;  %2233 = vmatmul.mubr.bf16.gmra.mrb[72].mxu1 %v1864_v44  ;;  %v4723_v61 = vpop.f32.mrb[32].mxu0 }
 0x1f4   : > { %v4708_v63 = vmul.f32 %v1620_v45, %v4580_v4  ;;  %v1621_v36 = vmul.f32 0.5, %v1485_v43  ;;  %v3480_v10 = vpop.eup %3479  ;;  %v1488_v57 = vadd.f32 1.0, %v3478_v34  ;;  %v4721_v4 = vadd.f32 %v4546_v31, %v4310_v28  ;;  %v4725_v12 = vpop.f32.mrb[32].mxu1  ;;  %2402 = vmatmul.mubr.bf16.gmra.mrb[72].mxu0 %v1866_v7  ;;  %v390_v7 = vld [vmem:[%s4704_s20 + $0x10] sm:$0xff] }
 0x1f5   : > { %v4717_v52 = vmul.f32 %v1622_v3, %v4592_v18  ;;  %v1623_v15 = vmul.f32 0.5, %v1487_v22  ;;  %v1490_v42 = vadd.f32 1.0, %v3480_v10  ;;  %v1220_v19 = vmul.f32 0.70710677, %v4714_v59  ;;  %v4735_v62 = vpop.f32.mrb[33].mxu0  ;;  %v4737_v23 = vpop.f32.mrb[33].mxu1  ;;  %2644 = vperm.xlu1 %3307, %v390_v7  }
 0x1f6   : > { %v4728_v49 = vmul.f32 %v1621_v36, %v4596_v60  ;;  %v4733_v18 = vadd.f32 %v4557_v30, %v4312_v1  ;;  %v1624_v48 = vmul.f32 0.5, %v1488_v57  ;;  %v1222_v22 = vmul.f32 0.70710677, %v4721_v4  ;;  %v4747_v38 = vpop.f32.mrb[34].mxu0  ;;  %v4749_v0 = vpop.f32.mrb[34].mxu1  ;;  %v389_v10 = vld [vmem:[%s4704_s20 + $0x8] sm:$0xff] }
 0x1f7   : > { %v4740_v31 = vmul.f32 %v1623_v15, %v4601_v50  ;;  %v4745_v60 = vadd.f32 %v4559_v55, %v4314_v29  ;;  %v3482_v30 = vpop.eup %3481  ;;  %v1626_v45 = vmul.f32 0.5, %v1490_v42  ;;  %3485 = verf.f32 %v1220_v19  ;;  %v4756_v56 = vpop.f32.mrb[35].mxu0  ;;  %2639 = vperm.xlu0 %3306, %v389_v10   ;;  %v5883_v7 = vld [vmem:[#allocation21_spill] sm:$0xff]  ;;  %v5886_v10 = vld [vmem:[#allocation22_spill] sm:$0xff] }
 0x1f8   : > { %v1221_v43 = vmul.f32 0.70710677, %v4733_v18  ;;  %v4754_v50 = vadd.f32 %v4569_v6, %v4308_v27  ;;  %v4758_v3 = vpop.f32.mrb[35].mxu1  ;;  %v4761_v55 = vmul.f32 %v1624_v48, %v4618_v11  ;;  %v1489_v44 = vadd.f32 1.0, %v3482_v30 }
 0x1f9   : > { %5876 = vst [vmem:[#allocation32_spill] sm:$0xff] %v4758_v3  ;;  %3487 = verf.f32 %v1222_v22  ;;  %v1223_v25 = vmul.f32 0.70710677, %v4745_v60  ;;  %v4765_v34 = vmul.f32 %v1626_v45, %v4622_v33  ;;  %v4770_v6 = vadd.f32 %v4571_v47, %v4310_v28  ;;  %v3484_v15 = vpop.eup %3483 }
 0x1fa   : > { %3489 = verf.f32 %v1221_v43  ;;  %v1224_v36 = vmul.f32 0.70710677, %v4754_v50  ;;  %v1625_v57 = vmul.f32 0.5, %v1489_v44  ;;  %v4776_v11 = vadd.f32 %v4575_v35, %v4312_v1  ;;  %v4792_v30 = vpop.f32.mrb[36].mxu0  ;;  %v4794_v45 = vpop.f32.mrb[36].mxu1 }
 0x1fb   : > { %3491 = verf.f32 %v1223_v25  ;;  %v4780_v33 = vadd.f32 %v4582_v21, %v4314_v29  ;;  %v1491_v42 = vadd.f32 1.0, %v3484_v15  ;;  %v1226_v47 = vmul.f32 0.70710677, %v4770_v6  ;;  %5877 = vst [vmem:[#allocation33_spill] sm:$0xff] %v4792_v30  ;;  %5878 = vst [vmem:[#allocation34_spill] sm:$0xff] %v4794_v45  ;;  %v4802_v44 = vpop.f32.mrb[37].mxu1 }
 0x1fc   : > { %3493 = verf.f32 %v1224_v36  ;;  %v1869_v19 = vpack.c.bf16 %v4646_v53, %v4540_v37  ;;  %v4786_v48 = vmul.f32 %v1625_v57, %v4630_v40  ;;  %v1225_v22 = vmul.f32 0.70710677, %v4776_v11  ;;  %v4800_v53 = vpop.f32.mrb[37].mxu0  ;;  %5880 = vst [vmem:[#allocation36_spill] sm:$0xff] %v4802_v44  ;;  %v5882_v25 = vld [vmem:[#allocation20_spill] sm:$0xff]  ;;  %v5887_v57 = vld [vmem:[#allocation23_spill] sm:$0xff] }
 0x1fd   : > { %v1227_v35 = vmul.f32 0.70710677, %v4780_v33  ;;  %v1871_v21 = vpack.c.bf16 %v4649_v39, %v4604_v54  ;;  %v1627_v43 = vmul.f32 0.5, %v1491_v42  ;;  %3495 = verf.f32 %v1226_v47  ;;  %5879 = vst [vmem:[#allocation35_spill] sm:$0xff] %v4800_v53  ;;  %v5881_v54 = vld [vmem:[#allocation19_spill] sm:$0xff] }
 0x1fe   : > { %2240 = vmatprep.mubr.bf16.mxu1 %v1869_v19  ;;  %v1868_v37 = vpack.c.bf16 %v4609_v17, %v4514_v46  ;;  %v1870_v40 = vpack.c.bf16 %v4642_v20, %v4532_v13  ;;  %3497 = verf.f32 %v1225_v22  ;;  %v4806_v39 = vadd.f32 %v5881_v54, %v4308_v27  ;;  %v4816_v17 = vpop.f32.mrb[38].mxu0  ;;  %v4818_v13 = vpop.f32.mrb[38].mxu1 }
 0x1ff   : > { %2409 = vmatprep.mubr.bf16.mxu0 %v1871_v21  ;;  %v4810_v36 = vadd.f32 %v5882_v25, %v4310_v28  ;;  %v4814_v46 = vadd.f32 %v5883_v7, %v4312_v1  ;;  %5884 = vst [vmem:[#allocation19_spill] sm:$0xff] %v4816_v17  ;;  %5885 = vst [vmem:[#allocation20_spill] sm:$0xff] %v4818_v13  ;;  %v4821_v20 = vmul.f32 %v1627_v43, %v4660_v8  ;;  %v4831_v47 = vpop.f32.mrb[39].mxu0  ;;  %v4833_v19 = vpop.f32.mrb[39].mxu1  ;;  %v5890_v21 = vld [vmem:[#allocation24_spill] sm:$0xff]  ;;  %v5891_v25 = vld [vmem:[#allocation25_spill] sm:$0xff] }
 0x200   : > { %3499 = verf.f32 %v1227_v35  ;;  %2241 = vmatmul.mubr.bf16.gmra.mrb[76].mxu1 %v1868_v37  ;;  %2410 = vmatmul.mubr.bf16.gmra.mrb[76].mxu0 %v1870_v40  ;;  %v4825_v15 = vadd.f32 %v5886_v10, %v4314_v29  ;;  %v4829_v42 = vadd.f32 %v5887_v57, %v4308_v27  ;;  %5888 = vst [vmem:[#allocation21_spill] sm:$0xff] %v4831_v47  ;;  %5889 = vst [vmem:[#allocation22_spill] sm:$0xff] %v4833_v19  ;;  %v5892_v10 = vld [vmem:[#allocation26_spill] sm:$0xff]  ;;  %v391_v19 = vld [vmem:[%s4704_s20 + $0x18] sm:$0xff] }
 0x201   : > { %v1228_v22 = vmul.f32 0.70710677, %v4806_v39  ;;  %v1230_v8 = vmul.f32 0.70710677, %v4810_v36  ;;  %v1229_v35 = vmul.f32 0.70710677, %v4814_v46  ;;  %v4840_v43 = vadd.f32 %v5890_v21, %v4310_v28  ;;  %v3486_v37 = vpop.eup %3485  ;;  %2649 = vperm.xlu1 %3307, %v391_v19  }
 0x202   : > { %v1231_v40 = vmul.f32 0.70710677, %v4825_v15  ;;  %v1232_v54 = vmul.f32 0.70710677, %v4829_v42  ;;  %v4846_v7 = vadd.f32 %v5891_v25, %v4312_v1  ;;  %v4850_v57 = vadd.f32 %v5892_v10, %v4314_v29 }
 0x203   : > { %v3488_v47 = vpop.eup %3487  ;;  %v1492_v13 = vadd.f32 1.0, %v3486_v37  ;;  %3501 = verf.f32 %v1228_v22  ;;  %v1234_v21 = vmul.f32 0.70710677, %v4840_v43  ;;  %v1873_v17 = vpack.c.bf16 %v4695_v14, %v4667_v26  ;;  %v4860_v37 = vpop.f32.mrb[40].mxu0 }
 0x204   : > { %v3490_v44 = vpop.eup %3489  ;;  %v1494_v53 = vadd.f32 1.0, %v3488_v47  ;;  %3503 = verf.f32 %v1230_v8  ;;  %v1233_v25 = vmul.f32 0.70710677, %v4846_v7  ;;  %v1235_v45 = vmul.f32 0.70710677, %v4850_v57  ;;  %v4862_v26 = vpop.f32.mrb[40].mxu1 }
 0x205   : > { %v3492_v30 = vpop.eup %3491  ;;  %v1628_v10 = vmul.f32 0.5, %v1492_v13  ;;  %v1493_v3 = vadd.f32 1.0, %v3490_v44  ;;  %3505 = verf.f32 %v1229_v35  ;;  %2248 = vmatprep.mubr.bf16.mxu1 %v1873_v17  ;;  %v1875_v22 = vpack.c.bf16 %v4700_v41, %v4674_v32  ;;  %5893 = vst [vmem:[#allocation23_spill] sm:$0xff] %v4862_v26  ;;  %v4866_v13 = vpop.f32.mrb[41].mxu0 }
 0x206   : > { %v3494_v14 = vpop.eup %3493  ;;  %v1630_v47 = vmul.f32 0.5, %v1494_v53  ;;  %v1495_v19 = vadd.f32 1.0, %v3492_v30  ;;  %3507 = verf.f32 %v1231_v40  ;;  %v1872_v8 = vpack.c.bf16 %v4682_v5, %v4652_v51  ;;  %v4868_v44 = vpop.f32.mrb[41].mxu1  ;;  %v393_v30 = vld [vmem:[%s4704_s20 + $0x28] sm:$0xff]  ;;  %v392_v53 = vld [vmem:[%s4704_s20 + $0x20] sm:$0xff] }
 0x207   : > { %v4871_v17 = vmul.f32 %v1628_v10, %v4714_v59  ;;  %v1629_v32 = vmul.f32 0.5, %v1493_v3  ;;  %v1496_v41 = vadd.f32 1.0, %v3494_v14  ;;  %3509 = verf.f32 %v1232_v54  ;;  %2417 = vmatprep.mubr.bf16.mxu0 %v1875_v22  ;;  %v4873_v35 = vpop.f32.mrb[42].mxu0  ;;  %v4875_v26 = vpop.f32.mrb[42].mxu1  ;;  %2659 = vperm.xlu1 %3307, %v393_v30  }
 0x208   : > { %5894 = vst [vmem:[#allocation24_spill] sm:$0xff] %v4875_v26  ;;  %v3496_v40 = vpop.eup %3495  ;;  %v4880_v51 = vmul.f32 %v1630_v47, %v4721_v4  ;;  %v1631_v5 = vmul.f32 0.5, %v1495_v19  ;;  %3511 = verf.f32 %v1234_v21  ;;  %2249 = vmatmul.mubr.bf16.gmra.mrb[80].mxu1 %v1872_v8  ;;  %v1874_v59 = vpack.c.bf16 %v4692_v16, %v4656_v9  ;;  %v4884_v3 = vpop.f32.mrb[43].mxu0  ;;  %2654 = vperm.xlu0 %3306, %v392_v53   ;;  %v5899_v53 = vld [vmem:[#allocation29_spill] sm:$0xff] }
 0x209   : > { %5895 = vst [vmem:[#allocation25_spill] sm:$0xff] %v4884_v3  ;;  %v4886_v54 = vpop.f32.mrb[43].mxu1  ;;  %v3498_v10 = vpop.eup %3497  ;;  %v4889_v22 = vmul.f32 %v1629_v32, %v4733_v18  ;;  %v1632_v14 = vmul.f32 0.5, %v1496_v41  ;;  %v1498_v26 = vadd.f32 1.0, %v3496_v40  ;;  %3513 = verf.f32 %v1233_v25  ;;  %v5897_v32 = vld [vmem:[#allocation27_spill] sm:$0xff]  ;;  %v5898_v41 = vld [vmem:[#allocation28_spill] sm:$0xff] }
 0x20a   : > { %5896 = vst [vmem:[#allocation26_spill] sm:$0xff] %v4886_v54  ;;  %v3500_v4 = vpop.eup %3499  ;;  %v4892_v21 = vmul.f32 %v1631_v5, %v4745_v60  ;;  %v1497_v47 = vadd.f32 1.0, %v3498_v10  ;;  %3515 = verf.f32 %v1235_v45  ;;  %2418 = vmatmul.mubr.bf16.gmra.mrb[80].mxu0 %v1874_v59  ;;  %v4896_v9 = vadd.f32 %v4662_v2, %v4308_v27  ;;  %v4922_v5 = vpop.f32.mrb[44].mxu0 }
 0x20b   : > { %v4899_v16 = vmul.f32 %v1632_v14, %v4754_v50  ;;  %v1634_v18 = vmul.f32 0.5, %v1498_v26  ;;  %v1499_v19 = vadd.f32 1.0, %v3500_v4  ;;  %v4903_v25 = vadd.f32 %v4664_v24, %v4310_v28  ;;  %5900 = vst [vmem:[#allocation27_spill] sm:$0xff] %v4922_v5  ;;  %v4924_v59 = vpop.f32.mrb[44].mxu1 }
 0x20c   : > { %v1633_v8 = vmul.f32 0.5, %v1497_v47  ;;  %v1236_v60 = vmul.f32 0.70710677, %v4896_v9  ;;  %v4908_v45 = vadd.f32 %v5897_v32, %v4312_v1  ;;  %v4912_v2 = vadd.f32 %v5898_v41, %v4314_v29  ;;  %5901 = vst [vmem:[#allocation28_spill] sm:$0xff] %v4924_v59  ;;  %v4930_v47 = vpop.f32.mrb[45].mxu0 }
 0x20d   : > { %v3502_v50 = vpop.eup %3501  ;;  %v4915_v26 = vmul.f32 %v1634_v18, %v4770_v6  ;;  %v1635_v30 = vmul.f32 0.5, %v1499_v19  ;;  %v1238_v24 = vmul.f32 0.70710677, %v4903_v25  ;;  %v4920_v40 = vadd.f32 %v5899_v53, %v4308_v27  ;;  %5902 = vst [vmem:[#allocation29_spill] sm:$0xff] %v4930_v47  ;;  %v4932_v18 = vpop.f32.mrb[45].mxu1  ;;  %v395_v19 = vld [vmem:[%s4704_s20 + $0x38] sm:$0xff] }
 0x20e   : > { %v3504_v10 = vpop.eup %3503  ;;  %v4927_v14 = vmul.f32 %v1633_v8, %v4776_v11  ;;  %v1500_v4 = vadd.f32 1.0, %v3502_v50  ;;  %3517 = verf.f32 %v1236_v60  ;;  %v1237_v6 = vmul.f32 0.70710677, %v4908_v45  ;;  %5903 = vst [vmem:[#allocation37_spill] sm:$0xff] %v4932_v18  ;;  %v4939_v5 = vpop.f32.mrb[46].mxu0  ;;  %2669 = vperm.xlu1 %3307, %v395_v19   ;;  %v394_v8 = vld [vmem:[%s4704_s20 + $0x30] sm:$0xff] }
 0x20f   : > { %v3506_v32 = vpop.eup %3505  ;;  %v4936_v41 = vmul.f32 %v1635_v30, %v4780_v33  ;;  %v1502_v53 = vadd.f32 1.0, %v3504_v10  ;;  %3519 = verf.f32 %v1238_v24  ;;  %v1239_v59 = vmul.f32 0.70710677, %v4912_v2  ;;  %5904 = vst [vmem:[#allocation38_spill] sm:$0xff] %v4939_v5  ;;  %v4941_v11 = vpop.f32.mrb[46].mxu1  ;;  %2664 = vperm.xlu0 %3306, %v394_v8   ;;  %v5908_v5 = vld [vmem:[#allocation30_spill] sm:$0xff] }
 0x210   : > { %5905 = vst [vmem:[#allocation39_spill] sm:$0xff] %v4941_v11  ;;  %v3508_v60 = vpop.eup %3507  ;;  %v1636_v50 = vmul.f32 0.5, %v1500_v4  ;;  %v1501_v47 = vadd.f32 1.0, %v3506_v32  ;;  %3521 = verf.f32 %v1237_v6  ;;  %v1240_v18 = vmul.f32 0.70710677, %v4920_v40  ;;  %v4945_v54 = vpop.f32.mrb[47].mxu0 }
 0x211   : > { %5906 = vst [vmem:[#allocation40_spill] sm:$0xff] %v4945_v54  ;;  %v4947_v33 = vpop.f32.mrb[47].mxu1  ;;  %v3510_v30 = vpop.eup %3509  ;;  %v1638_v24 = vmul.f32 0.5, %v1502_v53  ;;  %v1503_v10 = vadd.f32 1.0, %v3508_v60  ;;  %3523 = verf.f32 %v1239_v59  ;;  %v4951_v11 = vadd.f32 %v5908_v5, %v4310_v28 }
 0x212   : > { %5907 = vst [vmem:[#allocation41_spill] sm:$0xff] %v4947_v33  ;;  %v3512_v19 = vpop.eup %3511  ;;  %v4954_v4 = vmul.f32 %v1636_v50, %v4806_v39  ;;  %v1637_v6 = vmul.f32 0.5, %v1501_v47  ;;  %v1504_v32 = vadd.f32 1.0, %v3510_v30  ;;  %3525 = verf.f32 %v1240_v18  ;;  %v4970_v30 = vpop.f32.mrb[48].mxu0 }
 0x213   : > { %v3514_v3 = vpop.eup %3513  ;;  %v4957_v33 = vmul.f32 %v1638_v24, %v4810_v36  ;;  %v1639_v53 = vmul.f32 0.5, %v1503_v10  ;;  %v1506_v8 = vadd.f32 1.0, %v3512_v19  ;;  %v1242_v59 = vmul.f32 0.70710677, %v4951_v11  ;;  %v4972_v24 = vpop.f32.mrb[48].mxu1  ;;  %v397_v10 = vld [vmem:[%s4704_s20 + $0x48] sm:$0xff] }
 0x214   : > { %v3516_v60 = vpop.eup %3515  ;;  %v4961_v5 = vmul.f32 %v1637_v6, %v4814_v46  ;;  %v1640_v54 = vmul.f32 0.5, %v1504_v32  ;;  %v1505_v39 = vadd.f32 1.0, %v3514_v3  ;;  %v4965_v47 = vadd.f32 %v4686_v58, %v4312_v1  ;;  %v396_v19 = vld [vmem:[%s4704_s20 + $0x40] sm:$0xff]  ;;  %v5909_v58 = vld [vmem:[#allocation31_spill] sm:$0xff]  ;;  %2679 = vperm.xlu1 %3307, %v397_v10  }
 0x215   : > { %v4968_v18 = vmul.f32 %v1639_v53, %v4825_v15  ;;  %v1642_v36 = vmul.f32 0.5, %v1506_v8  ;;  %v1507_v50 = vadd.f32 1.0, %v3516_v60  ;;  %3527 = verf.f32 %v1242_v59  ;;  %v4984_v15 = vpop.f32.mrb[49].mxu0  ;;  %v4986_v53 = vpop.f32.mrb[49].mxu1  ;;  %2674 = vperm.xlu0 %3306, %v396_v19  }
 0x216   : > { %v4977_v46 = vmul.f32 %v1640_v54, %v4829_v42  ;;  %v1641_v3 = vmul.f32 0.5, %v1505_v39  ;;  %v1241_v6 = vmul.f32 0.70710677, %v4965_v47  ;;  %v4982_v32 = vadd.f32 %v5909_v58, %v4314_v29  ;;  %v4995_v60 = vpop.f32.mrb[50].mxu0  ;;  %v4997_v39 = vpop.f32.mrb[50].mxu1 }
 0x217   : > { %v4989_v8 = vmul.f32 %v1642_v36, %v4840_v43  ;;  %v1643_v59 = vmul.f32 0.5, %v1507_v50  ;;  %v1877_v42 = vpack.c.bf16 %v4786_v48, %v4728_v49  ;;  %v1879_v54 = vpack.c.bf16 %v4821_v20, %v4740_v31  ;;  %v5005_v49 = vpop.f32.mrb[51].mxu0  ;;  %v5007_v48 = vpop.f32.mrb[51].mxu1 }
 0x218   : > { %v3518_v58 = vpop.eup %3517  ;;  %v5000_v10 = vmul.f32 %v1641_v3, %v4846_v7  ;;  %3529 = verf.f32 %v1241_v6  ;;  %v1243_v43 = vmul.f32 0.70710677, %v4982_v32  ;;  %v1876_v36 = vpack.c.bf16 %v4761_v55, %v4708_v63  ;;  %5910 = vst [vmem:[#allocation30_spill] sm:$0xff] %v5005_v49  ;;  %5911 = vst [vmem:[#allocation31_spill] sm:$0xff] %v5007_v48  ;;  %v399_v3 = vld [vmem:[%s4704_s20 + $0x58] sm:$0xff]  ;;  %v398_v63 = vld [vmem:[%s4704_s20 + $0x50] sm:$0xff] }
 0x219   : > { %v3520_v31 = vpop.eup %3519  ;;  %v5010_v20 = vmul.f32 %v1643_v59, %v4850_v57  ;;  %v1508_v50 = vadd.f32 1.0, %v3518_v58  ;;  %2256 = vmatprep.mubr.bf16.mxu1 %v1877_v42  ;;  %2425 = vmatprep.mubr.bf16.mxu0 %v1879_v54  ;;  %v1878_v7 = vpack.c.bf16 %v4765_v34, %v4717_v52  ;;  %v5016_v19 = vadd.f32 %v4723_v61, %v4308_v27  ;;  %v400_v48 = vld [vmem:[%s4704_s20 + $0x60] sm:$0xff] }
 0x21a   : > { %v3522_v55 = vpop.eup %3521  ;;  %v1510_v6 = vadd.f32 1.0, %v3520_v31  ;;  %3531 = verf.f32 %v1243_v43  ;;  %2257 = vmatmul.mubr.bf16.gmra.mrb[84].mxu1 %v1876_v36  ;;  %v5022_v57 = vadd.f32 %v4725_v12, %v4310_v28  ;;  %v5026_v59 = vadd.f32 %v4735_v62, %v4312_v1  ;;  %2689 = vperm.xlu1 %3307, %v399_v3   ;;  %v5038_v3 = vpop.f32.mrb[52].mxu0 }
 0x21b   : > { %v3524_v52 = vpop.eup %3523  ;;  %v1644_v34 = vmul.f32 0.5, %v1508_v50  ;;  %v1509_v42 = vadd.f32 1.0, %v3522_v55  ;;  %2426 = vmatmul.mubr.bf16.gmra.mrb[84].mxu0 %v1878_v7  ;;  %v1244_v61 = vmul.f32 0.70710677, %v5016_v19  ;;  %v5031_v54 = vadd.f32 %v4737_v23, %v4314_v29  ;;  %2684 = vperm.xlu0 %3306, %v398_v63   ;;  %v5040_v55 = vpop.f32.mrb[52].mxu1  ;;  %v401_v23 = vld [vmem:[%s4704_s20 + $0x68] sm:$0xff] }
 0x21c   : > { %v3526_v12 = vpop.eup %3525  ;;  %v1646_v58 = vmul.f32 0.5, %v1510_v6  ;;  %v1511_v43 = vadd.f32 1.0, %v3524_v52  ;;  %v1246_v62 = vmul.f32 0.70710677, %v5022_v57  ;;  %v1245_v36 = vmul.f32 0.70710677, %v5026_v59 }
 0x21d   : > { %v5036_v31 = vmul.f32 %v1644_v34, %v4896_v9  ;;  %v1645_v50 = vmul.f32 0.5, %v1509_v42  ;;  %v1512_v7 = vadd.f32 1.0, %v3526_v12  ;;  %3533 = verf.f32 %v1244_v61  ;;  %5912 = vst [vmem:[#allocation42_spill] sm:$0xff] %v5040_v55  ;;  %v5048_v49 = vpop.f32.mrb[53].mxu0  ;;  %v5050_v9 = vpop.f32.mrb[53].mxu1 }
 0x21e   : > { %v5045_v63 = vmul.f32 %v1646_v58, %v4903_v25  ;;  %v1647_v6 = vmul.f32 0.5, %v1511_v43  ;;  %3535 = verf.f32 %v1246_v62  ;;  %v1247_v52 = vmul.f32 0.70710677, %v5031_v54  ;;  %5913 = vst [vmem:[#allocation43_spill] sm:$0xff] %v5048_v49  ;;  %5914 = vst [vmem:[#allocation44_spill] sm:$0xff] %v5050_v9  ;;  %2699 = vperm.xlu1 %3307, %v401_v23   ;;  %v5059_v12 = vpop.f32.mrb[54].mxu0 }
 0x21f   : > { %v3528_v34 = vpop.eup %3527  ;;  %v5053_v42 = vmul.f32 %v1645_v50, %v4908_v45  ;;  %v1648_v61 = vmul.f32 0.5, %v1512_v7  ;;  %3537 = verf.f32 %v1245_v36  ;;  %v5057_v25 = vadd.f32 %v4747_v38, %v4308_v27  ;;  %5915 = vst [vmem:[#allocation45_spill] sm:$0xff] %v5059_v12  ;;  %v5061_v58 = vpop.f32.mrb[54].mxu1  ;;  %2694 = vperm.xlu0 %3306, %v400_v48   ;;  %v403_v43 = vld [vmem:[%s4704_s20 + $0x78] sm:$0xff]  ;;  %v402_v38 = vld [vmem:[%s4704_s20 + $0x70] sm:$0xff] }
 0x220   : > { %5916 = vst [vmem:[#allocation46_spill] sm:$0xff] %v5061_v58  ;;  %v5065_v62 = vmul.f32 %v1647_v6, %v4912_v2  ;;  %v1514_v23 = vadd.f32 1.0, %v3528_v34  ;;  %3539 = verf.f32 %v1247_v52  ;;  %v5069_v45 = vadd.f32 %v4749_v0, %v4310_v28  ;;  %v5071_v36 = vpop.f32.mrb[55].mxu0  ;;  %v5073_v50 = vpop.f32.mrb[55].mxu1  ;;  %v5919_v6 = vld [vmem:[#allocation32_spill] sm:$0xff] }
 0x221   : > { %5917 = vst [vmem:[#allocation47_spill] sm:$0xff] %v5071_v36  ;;  %5918 = vst [vmem:[#allocation48_spill] sm:$0xff] %v5073_v50  ;;  %v5077_v7 = vmul.f32 %v1648_v61, %v4920_v40  ;;  %v1248_v48 = vmul.f32 0.70710677, %v5057_v25  ;;  %v5082_v2 = vadd.f32 %v4756_v56, %v4312_v1  ;;  %v5086_v52 = vadd.f32 %v5919_v6, %v4314_v29 }
 0x222   : > { %v3530_v0 = vpop.eup %3529  ;;  %v1650_v34 = vmul.f32 0.5, %v1514_v23  ;;  %v1250_v36 = vmul.f32 0.70710677, %v5069_v45  ;;  %v1881_v50 = vpack.c.bf16 %v4927_v14, %v4889_v22  ;;  %v1883_v40 = vpack.c.bf16 %v4936_v41, %v4892_v21  ;;  %2709 = vperm.xlu1 %3307, %v403_v43   ;;  %v405_v14 = vld [vmem:[%s4704_s20 + $0x88] sm:$0xff]  ;;  %v404_v41 = vld [vmem:[%s4704_s20 + $0x80] sm:$0xff] }
 0x223   : > { %v1513_v61 = vadd.f32 1.0, %v3530_v0  ;;  %3541 = verf.f32 %v1248_v48  ;;  %v1249_v56 = vmul.f32 0.70710677, %v5082_v2  ;;  %v1251_v6 = vmul.f32 0.70710677, %v5086_v52  ;;  %2704 = vperm.xlu0 %3306, %v402_v38   ;;  %v5920_v38 = vld [vmem:[#allocation33_spill] sm:$0xff] }
 0x224   : > { %v3532_v58 = vpop.eup %3531  ;;  %v5096_v23 = vmul.f32 %v1650_v34, %v4951_v11  ;;  %3543 = verf.f32 %v1250_v36  ;;  %2264 = vmatprep.mubr.bf16.mxu1 %v1881_v50  ;;  %2433 = vmatprep.mubr.bf16.mxu0 %v1883_v40  ;;  %v1880_v22 = vpack.c.bf16 %v4899_v16, %v4871_v17  ;;  %v1882_v21 = vpack.c.bf16 %v4915_v26, %v4880_v51  ;;  %v5108_v11 = vpop.f32.mrb[56].mxu0  ;;  %v5923_v17 = vld [vmem:[#allocation34_spill] sm:$0xff]  ;;  %v5924_v16 = vld [vmem:[#allocation35_spill] sm:$0xff] }
 0x225   : > { %v1649_v43 = vmul.f32 0.5, %v1513_v61  ;;  %v1515_v48 = vadd.f32 1.0, %v3532_v58  ;;  %3545 = verf.f32 %v1249_v56  ;;  %v5106_v0 = vadd.f32 %v5920_v38, %v4308_v27  ;;  %5921 = vst [vmem:[#allocation32_spill] sm:$0xff] %v5108_v11  ;;  %v5110_v36 = vpop.f32.mrb[56].mxu1  ;;  %v5925_v58 = vld [vmem:[#allocation36_spill] sm:$0xff]  ;;  %v5124_v34 = vpop.f32.mrb[57].mxu0 }
 0x226   : > { %5922 = vst [vmem:[#allocation33_spill] sm:$0xff] %v5110_v36  ;;  %3547 = verf.f32 %v1251_v6  ;;  %2265 = vmatmul.mubr.bf16.gmra.mrb[88].mxu1 %v1880_v22  ;;  %2434 = vmatmul.mubr.bf16.gmra.mrb[88].mxu0 %v1882_v21  ;;  %v5114_v51 = vadd.f32 %v5923_v17, %v4310_v28  ;;  %v5118_v26 = vadd.f32 %v5924_v16, %v4312_v1  ;;  %5926 = vst [vmem:[#allocation34_spill] sm:$0xff] %v5124_v34  ;;  %v5126_v40 = vpop.f32.mrb[57].mxu1  ;;  %v407_v61 = vld [vmem:[%s4704_s20 + $0x98] sm:$0xff]  ;;  %v5928_v38 = vld [vmem:[#allocation19_spill] sm:$0xff]  ;;  %v5137_v16 = vpop.f32.mrb[58].mxu0 }
 0x227   : > { %v5122_v50 = vadd.f32 %v5925_v58, %v4314_v29  ;;  %5927 = vst [vmem:[#allocation35_spill] sm:$0xff] %v5126_v40  ;;  %v3534_v56 = vpop.eup %3533  ;;  %v5130_v6 = vmul.f32 %v1649_v43, %v4965_v47  ;;  %v1651_v22 = vmul.f32 0.5, %v1515_v48  ;;  %v1252_v21 = vmul.f32 0.70710677, %v5106_v0  ;;  %5929 = vst [vmem:[#allocation36_spill] sm:$0xff] %v5137_v16  ;;  %v5139_v58 = vpop.f32.mrb[58].mxu1  ;;  %2719 = vperm.xlu1 %3307, %v405_v14  }
 0x228   : > { %v5135_v17 = vadd.f32 %v5928_v38, %v4308_v27  ;;  %5930 = vst [vmem:[#allocation19_spill] sm:$0xff] %v5139_v58  ;;  %2714 = vperm.xlu0 %3306, %v404_v41   ;;  %v406_v34 = vld [vmem:[%s4704_s20 + $0x90] sm:$0xff]  ;;  %v3536_v40 = vpop.eup %3535  ;;  %v1516_v36 = vadd.f32 1.0, %v3534_v56  ;;  %v1254_v11 = vmul.f32 0.70710677, %v5114_v51  ;;  %v5148_v12 = vpop.f32.mrb[59].mxu0 }
 0x229   : > { %v1253_v47 = vmul.f32 0.70710677, %v5118_v26  ;;  %v5931_v43 = vld [vmem:[#allocation20_spill] sm:$0xff]  ;;  %v3538_v38 = vpop.eup %3537  ;;  %v5151_v16 = vmul.f32 %v1651_v22, %v4982_v32  ;;  %v1518_v58 = vadd.f32 1.0, %v3536_v40  ;;  %3549 = verf.f32 %v1252_v21  ;;  %v5154_v41 = vpop.f32.mrb[59].mxu1  ;;  %v5934_v21 = vld [vmem:[#allocation21_spill] sm:$0xff] }
 0x22a   : > { %v5146_v48 = vadd.f32 %v5931_v43, %v4310_v28  ;;  %5932 = vst [vmem:[#allocation20_spill] sm:$0xff] %v5148_v12  ;;  %v1255_v14 = vmul.f32 0.70710677, %v5122_v50  ;;  %5933 = vst [vmem:[#allocation49_spill] sm:$0xff] %v5154_v41  ;;  %v3540_v56 = vpop.eup %3539  ;;  %v1652_v9 = vmul.f32 0.5, %v1516_v36  ;;  %v1517_v49 = vadd.f32 1.0, %v3538_v38 }
 0x22b   : > { %3551 = verf.f32 %v1254_v11  ;;  %v1256_v43 = vmul.f32 0.70710677, %v5135_v17  ;;  %v1654_v55 = vmul.f32 0.5, %v1518_v58  ;;  %v1519_v12 = vadd.f32 1.0, %v3540_v56  ;;  %2729 = vperm.xlu1 %3307, %v407_v61   ;;  %v409_v36 = vld [vmem:[%s4704_s20 + $0xa8] sm:$0xff]  ;;  %v408_v11 = vld [vmem:[%s4704_s20 + $0xa0] sm:$0xff] }
 0x22c   : > { %3553 = verf.f32 %v1253_v47  ;;  %v1258_v32 = vmul.f32 0.70710677, %v5146_v48  ;;  %2724 = vperm.xlu0 %3306, %v406_v34   ;;  %v5159_v40 = vmul.f32 %v1652_v9, %v5016_v19  ;;  %v1653_v22 = vmul.f32 0.5, %v1517_v49  ;;  %v5935_v61 = vld [vmem:[#allocation22_spill] sm:$0xff]  ;;  %v5174_v19 = vpop.f32.mrb[60].mxu0  ;;  %v5176_v49 = vpop.f32.mrb[60].mxu1 }
 0x22d   : > { %3555 = verf.f32 %v1255_v14  ;;  %v5163_v41 = vadd.f32 %v5934_v21, %v4312_v1  ;;  %v3542_v38 = vpop.eup %3541  ;;  %v5168_v58 = vmul.f32 %v1654_v55, %v5022_v57  ;;  %v1655_v47 = vmul.f32 0.5, %v1519_v12  ;;  %5936 = vst [vmem:[#allocation21_spill] sm:$0xff] %v5174_v19  ;;  %5937 = vst [vmem:[#allocation22_spill] sm:$0xff] %v5176_v49  ;;  %v5182_v57 = vpop.f32.mrb[61].mxu0  ;;  %v411_v19 = vld [vmem:[%s4704_s20 + $0xb8] sm:$0xff] }
 0x22e   : > { %3557 = verf.f32 %v1256_v43  ;;  %v5172_v34 = vadd.f32 %v5935_v61, %v4314_v29  ;;  %v3544_v9 = vpop.eup %3543  ;;  %v5179_v14 = vmul.f32 %v1653_v22, %v5026_v59  ;;  %v1520_v56 = vadd.f32 1.0, %v3542_v38  ;;  %5938 = vst [vmem:[#allocation50_spill] sm:$0xff] %v5182_v57  ;;  %v5184_v55 = vpop.f32.mrb[61].mxu1 }
 0x22f   : > { %3559 = verf.f32 %v1258_v32  ;;  %v1257_v21 = vmul.f32 0.70710677, %v5163_v41  ;;  %5939 = vst [vmem:[#allocation51_spill] sm:$0xff] %v5184_v55  ;;  %v3546_v12 = vpop.eup %3545  ;;  %v5187_v43 = vmul.f32 %v1655_v47, %v5031_v54  ;;  %v1522_v61 = vadd.f32 1.0, %v3544_v9  ;;  %v5192_v22 = vpop.f32.mrb[62].mxu0  ;;  %2739 = vperm.xlu1 %3307, %v409_v36  }
 0x230   : > { %v1259_v49 = vmul.f32 0.70710677, %v5172_v34  ;;  %v1885_v59 = vpack.c.bf16 %v5000_v10, %v4961_v5  ;;  %v5194_v32 = vpop.f32.mrb[62].mxu1  ;;  %2734 = vperm.xlu0 %3306, %v408_v11   ;;  %v3548_v38 = vpop.eup %3547  ;;  %v1656_v55 = vmul.f32 0.5, %v1520_v56  ;;  %v1521_v57 = vadd.f32 1.0, %v3546_v12  ;;  %v410_v11 = vld [vmem:[%s4704_s20 + $0xb0] sm:$0xff] }
 0x231   : > { %3561 = verf.f32 %v1257_v21  ;;  %v1887_v54 = vpack.c.bf16 %v5010_v20, %v4968_v18  ;;  %v5198_v47 = vpop.f32.mrb[63].mxu0  ;;  %v5200_v9 = vpop.f32.mrb[63].mxu1  ;;  %v1658_v5 = vmul.f32 0.5, %v1522_v61  ;;  %v1523_v10 = vadd.f32 1.0, %v3548_v38  ;;  %v413_v61 = vld [vmem:[%s4704_s20 + $0xc8] sm:$0xff] }
 0x232   : > { %3563 = verf.f32 %v1259_v49  ;;  %2272 = vmatprep.mubr.bf16.mxu1 %v1885_v59  ;;  %v1884_v36 = vpack.c.bf16 %v4977_v46, %v4954_v4  ;;  %v5207_v56 = vmul.f32 %v1656_v55, %v5057_v25  ;;  %v1657_v21 = vmul.f32 0.5, %v1521_v57  ;;  %v5940_v46 = vld [vmem:[#allocation23_spill] sm:$0xff]  ;;  %v412_v59 = vld [vmem:[%s4704_s20 + $0xc0] sm:$0xff] }
 0x233   : > { %2441 = vmatprep.mubr.bf16.mxu0 %v1887_v54  ;;  %v1886_v18 = vpack.c.bf16 %v4989_v8, %v4957_v33  ;;  %v5213_v20 = vadd.f32 %v4860_v37, %v4308_v27  ;;  %v3550_v49 = vpop.eup %3549  ;;  %v5216_v12 = vmul.f32 %v1658_v5, %v5069_v45  ;;  %v1659_v4 = vmul.f32 0.5, %v1523_v10  ;;  %2749 = vperm.xlu1 %3307, %v411_v19   ;;  %v5241_v5 = vpop.f32.mrb[64].mxu0 }
 0x234   : > { %2273 = vmatmul.mubr.bf16.gmra.mrb[92].mxu1 %v1884_v36  ;;  %v5220_v25 = vadd.f32 %v5940_v46, %v4310_v28  ;;  %v5224_v57 = vadd.f32 %v4866_v13, %v4312_v1  ;;  %v5227_v37 = vmul.f32 %v1657_v21, %v5082_v2  ;;  %v1524_v8 = vadd.f32 1.0, %v3550_v49  ;;  %2744 = vperm.xlu0 %3306, %v410_v11   ;;  %v5244_v11 = vpop.f32.mrb[64].mxu1 }
 0x235   : > { %v3552_v33 = vpop.eup %3551  ;;  %2442 = vmatmul.mubr.bf16.gmra.mrb[92].mxu0 %v1886_v18  ;;  %v1260_v45 = vmul.f32 0.70710677, %v5213_v20  ;;  %v5232_v55 = vadd.f32 %v4868_v44, %v4314_v29  ;;  %v5237_v13 = vmul.f32 %v1659_v4, %v5086_v52  ;;  %5941 = vst [vmem:[#allocation23_spill] sm:$0xff] %v5241_v5  ;;  %5942 = vst [vmem:[#allocation52_spill] sm:$0xff] %v5244_v11  ;;  %v5246_v18 = vpop.f32.mrb[65].mxu0  ;;  %v414_v5 = vld [vmem:[%s4704_s20 + $0xd0] sm:$0xff] }
 0x236   : > { %v3554_v38 = vpop.eup %3553  ;;  %v1526_v19 = vadd.f32 1.0, %v3552_v33  ;;  %v1262_v54 = vmul.f32 0.70710677, %v5220_v25  ;;  %v1261_v2 = vmul.f32 0.70710677, %v5224_v57  ;;  %v1660_v36 = vmul.f32 0.5, %v1524_v8 }
 0x237   : > { %v3556_v10 = vpop.eup %3555  ;;  %v1525_v21 = vadd.f32 1.0, %v3554_v38  ;;  %3565 = verf.f32 %v1260_v45  ;;  %v1263_v44 = vmul.f32 0.70710677, %v5232_v55  ;;  %5943 = vst [vmem:[#allocation53_spill] sm:$0xff] %v5246_v18  ;;  %v5250_v46 = vadd.f32 %v4873_v35, %v4308_v27  ;;  %v5252_v33 = vpop.f32.mrb[65].mxu1  ;;  %2759 = vperm.xlu1 %3307, %v413_v61   ;;  %v415_v35 = vld [vmem:[%s4704_s20 + $0xd8] sm:$0xff] }
 0x238   : > { %v3558_v49 = vpop.eup %3557  ;;  %v1662_v52 = vmul.f32 0.5, %v1526_v19  ;;  %v1527_v4 = vadd.f32 1.0, %v3556_v10  ;;  %3567 = verf.f32 %v1262_v54  ;;  %5944 = vst [vmem:[#allocation54_spill] sm:$0xff] %v5252_v33  ;;  %v5254_v8 = vpop.f32.mrb[66].mxu0  ;;  %v5257_v38 = vmul.f32 %v1660_v36, %v5106_v0  ;;  %2754 = vperm.xlu0 %3306, %v412_v59   ;;  %v5948_v59 = vld [vmem:[#allocation24_spill] sm:$0xff] }
 0x239   : > { %5945 = vst [vmem:[#allocation55_spill] sm:$0xff] %v5254_v8  ;;  %v3560_v45 = vpop.eup %3559  ;;  %v1661_v18 = vmul.f32 0.5, %v1525_v21  ;;  %v1528_v11 = vadd.f32 1.0, %v3558_v49  ;;  %3569 = verf.f32 %v1261_v2  ;;  %v5259_v19 = vpop.f32.mrb[66].mxu1  ;;  %v1264_v21 = vmul.f32 0.70710677, %v5250_v46 }
 0x23a   : > { %v5261_v54 = vpop.f32.mrb[67].mxu0  ;;  %v5265_v10 = vmul.f32 %v1662_v52, %v5114_v51  ;;  %v1663_v33 = vmul.f32 0.5, %v1527_v4  ;;  %v1530_v8 = vadd.f32 1.0, %v3560_v45  ;;  %3571 = verf.f32 %v1263_v44  ;;  %v5267_v61 = vpop.f32.mrb[67].mxu1  ;;  %v5949_v45 = vld [vmem:[#allocation25_spill] sm:$0xff] }
 0x23b   : > { %5946 = vst [vmem:[#allocation56_spill] sm:$0xff] %v5261_v54  ;;  %5947 = vst [vmem:[#allocation57_spill] sm:$0xff] %v5267_v61  ;;  %v3562_v0 = vpop.eup %3561  ;;  %v5271_v36 = vmul.f32 %v1661_v18, %v5118_v26  ;;  %v1664_v2 = vmul.f32 0.5, %v1528_v11  ;;  %v5276_v49 = vadd.f32 %v5948_v59, %v4310_v28  ;;  %v5283_v61 = vadd.f32 %v5949_v45, %v4312_v1  ;;  %v417_v59 = vld [vmem:[%s4704_s20 + $0xe8] sm:$0xff] }
 0x23c   : > { %v3564_v51 = vpop.eup %3563  ;;  %v5279_v52 = vmul.f32 %v1663_v33, %v5122_v50  ;;  %v1666_v44 = vmul.f32 0.5, %v1530_v8  ;;  %v1529_v4 = vadd.f32 1.0, %v3562_v0  ;;  %2769 = vperm.xlu1 %3307, %v415_v35   ;;  %3573 = verf.f32 %v1264_v21  ;;  %2764 = vperm.xlu0 %3306, %v414_v5   ;;  %v5950_v0 = vld [vmem:[#allocation26_spill] sm:$0xff] }
 0x23d   : > { %v5286_v26 = vmul.f32 %v1664_v2, %v5135_v17  ;;  %v1531_v11 = vadd.f32 1.0, %v3564_v51  ;;  %v1266_v18 = vmul.f32 0.70710677, %v5276_v49  ;;  %v1265_v8 = vmul.f32 0.70710677, %v5283_v61  ;;  %v416_v2 = vld [vmem:[%s4704_s20 + $0xe0] sm:$0xff] }
 0x23e   : > { %v5291_v50 = vmul.f32 %v1666_v44, %v5146_v48  ;;  %v1665_v33 = vmul.f32 0.5, %v1529_v4  ;;  %v5296_v45 = vadd.f32 %v5950_v0, %v4314_v29  ;;  %v1889_v17 = vpack.c.bf16 %v5130_v6, %v5053_v42  ;;  %v5955_v0 = vld [vmem:[#allocation38_spill] sm:$0xff] }
 0x23f   : > { %v1667_v35 = vmul.f32 0.5, %v1531_v11  ;;  %3575 = verf.f32 %v1266_v18  ;;  %v1891_v5 = vpack.c.bf16 %v5151_v16, %v5065_v62  ;;  %v1888_v51 = vpack.c.bf16 %v5077_v7, %v5036_v31  ;;  %v5951_v62 = vld [vmem:[#allocation27_spill] sm:$0xff]  ;;  %v419_v16 = vld [vmem:[%s4704_s20 + $0xf8] sm:$0xff] }
 0x240   : > { %v5304_v48 = vmul.f32 %v1665_v33, %v5163_v41  ;;  %3577 = verf.f32 %v1265_v8  ;;  %v1267_v21 = vmul.f32 0.70710677, %v5296_v45  ;;  %2779 = vperm.xlu1 %3307, %v417_v59   ;;  %2280 = vmatprep.mubr.bf16.mxu1 %v1889_v17  ;;  %v1890_v42 = vpack.c.bf16 %v5096_v23, %v5045_v63  ;;  %v5952_v31 = vld [vmem:[#allocation28_spill] sm:$0xff]  ;;  %v5954_v33 = vld [vmem:[#allocation37_spill] sm:$0xff] }
 0x241   : > { %v3566_v44 = vpop.eup %3565  ;;  %v5310_v4 = vmul.f32 %v1667_v35, %v5172_v34  ;;  %2449 = vmatprep.mubr.bf16.mxu0 %v1891_v5  ;;  %v5316_v6 = vadd.f32 %v5951_v62, %v4308_v27  ;;  %2281 = vmatmul.mubr.bf16.gmra.mrb[96].mxu1 %v1888_v51  ;;  %v5321_v7 = vadd.f32 %v5952_v31, %v4310_v28  ;;  %v5953_v34 = vld [vmem:[#allocation29_spill] sm:$0xff]  ;;  %v418_v17 = vld [vmem:[%s4704_s20 + $0xf0] sm:$0xff]  ;;  %v421_v31 = vld [vmem:[%s4704_s20 + $0x108] sm:$0xff] }
 0x242   : > { %v3568_v41 = vpop.eup %3567  ;;  %v1532_v11 = vadd.f32 1.0, %v3566_v44  ;;  %3579 = verf.f32 %v1267_v21  ;;  %v5325_v18 = vadd.f32 %v5953_v34, %v4312_v1  ;;  %2774 = vperm.xlu0 %3306, %v416_v2   ;;  %2450 = vmatmul.mubr.bf16.gmra.mrb[96].mxu0 %v1890_v42  ;;  %v5330_v8 = vadd.f32 %v5954_v33, %v4314_v29 }
 0x243   : > { %v3570_v63 = vpop.eup %3569  ;;  %v1534_v23 = vadd.f32 1.0, %v3568_v41  ;;  %v1268_v59 = vmul.f32 0.70710677, %v5316_v6  ;;  %v5334_v35 = vadd.f32 %v5955_v0, %v4308_v27  ;;  %v1270_v2 = vmul.f32 0.70710677, %v5321_v7 }
 0x244   : > { %v3572_v5 = vpop.eup %3571  ;;  %v1668_v21 = vmul.f32 0.5, %v1532_v11  ;;  %v1533_v51 = vadd.f32 1.0, %v3570_v63  ;;  %v1269_v44 = vmul.f32 0.70710677, %v5325_v18  ;;  %2789 = vperm.xlu1 %3307, %v419_v16   ;;  %v1271_v41 = vmul.f32 0.70710677, %v5330_v8 }
 0x245   : > { %v1670_v42 = vmul.f32 0.5, %v1534_v23  ;;  %v1535_v62 = vadd.f32 1.0, %v3572_v5  ;;  %3581 = verf.f32 %v1268_v59  ;;  %v1272_v11 = vmul.f32 0.70710677, %v5334_v35  ;;  %v5956_v23 = vld [vmem:[#allocation39_spill] sm:$0xff]  ;;  %v420_v5 = vld [vmem:[%s4704_s20 + $0x100] sm:$0xff] }
 0x246   : > { %v5342_v34 = vmul.f32 %v1668_v21, %v5213_v20  ;;  %v1669_v33 = vmul.f32 0.5, %v1533_v51  ;;  %3583 = verf.f32 %v1270_v2  ;;  %2784 = vperm.xlu0 %3306, %v418_v17   ;;  %v3574_v63 = vpop.eup %3573  ;;  %v5350_v59 = vadd.f32 %v5956_v23, %v4310_v28  ;;  %v5957_v21 = vld [vmem:[#allocation40_spill] sm:$0xff] }
 0x247   : > { %v5346_v0 = vmul.f32 %v1670_v42, %v5220_v25  ;;  %v1671_v16 = vmul.f32 0.5, %v1535_v62  ;;  %3585 = verf.f32 %v1269_v44  ;;  %v1536_v20 = vadd.f32 1.0, %v3574_v63  ;;  %v5958_v44 = vld [vmem:[#allocation41_spill] sm:$0xff] }
 0x248   : > { %v5354_v54 = vmul.f32 %v1669_v33, %v5224_v57  ;;  %3587 = verf.f32 %v1271_v41  ;;  %v5358_v51 = vadd.f32 %v5957_v21, %v4312_v1  ;;  %2799 = vperm.xlu1 %3307, %v421_v31   ;;  %v1274_v2 = vmul.f32 0.70710677, %v5350_v59 }
 0x249   : > { %v3576_v17 = vpop.eup %3575  ;;  %v5361_v25 = vmul.f32 %v1671_v16, %v5232_v55  ;;  %3589 = verf.f32 %v1272_v11  ;;  %v5366_v42 = vadd.f32 %v5958_v44, %v4314_v29  ;;  %v1672_v62 = vmul.f32 0.5, %v1536_v20 }
 0x24a   : > { %v3578_v57 = vpop.eup %3577  ;;  %v1538_v33 = vadd.f32 1.0, %v3576_v17  ;;  %v1273_v41 = vmul.f32 0.70710677, %v5358_v51  ;;  %v1893_v63 = vpack.c.bf16 %v5227_v37, %v5179_v14  ;;  %2794 = vperm.xlu0 %3306, %v420_v5   ;;  %3591 = verf.f32 %v1274_v2 }
 0x24b   : > { %v1537_v31 = vadd.f32 1.0, %v3578_v57  ;;  %v1275_v55 = vmul.f32 0.70710677, %v5366_v42  ;;  %v1895_v11 = vpack.c.bf16 %v5237_v13, %v5187_v43  ;;  %v5375_v23 = vmul.f32 %v1672_v62, %v5250_v46 }
 0x24c   : > { %v3580_v16 = vpop.eup %3579  ;;  %v1674_v21 = vmul.f32 0.5, %v1538_v33  ;;  %3593 = verf.f32 %v1273_v41  ;;  %2288 = vmatprep.mubr.bf16.mxu1 %v1893_v63  ;;  %v1892_v20 = vpack.c.bf16 %v5207_v56, %v5159_v40  ;;  %v1894_v37 = vpack.c.bf16 %v5216_v12, %v5168_v58 }
 0x24d   : > { %v1673_v17 = vmul.f32 0.5, %v1537_v31  ;;  %v1539_v14 = vadd.f32 1.0, %v3580_v16  ;;  %3595 = verf.f32 %v1275_v55  ;;  %2457 = vmatprep.mubr.bf16.mxu0 %v1895_v11  ;;  %v5386_v43 = vadd.f32 %v4970_v30, %v4308_v27 }
 0x24e   : > { %v5382_v5 = vmul.f32 %v1674_v21, %v5276_v49  ;;  %2289 = vmatmul.mubr.bf16.gmra.mrb[100].mxu1 %v1892_v20  ;;  %v5390_v13 = vadd.f32 %v4972_v24, %v4310_v28  ;;  %v5394_v40 = vadd.f32 %v4984_v15, %v4312_v1  ;;  %2458 = vmatmul.mubr.bf16.gmra.mrb[100].mxu0 %v1894_v37 }
 0x24f   : > { %v3582_v56 = vpop.eup %3581  ;;  %v5397_v46 = vmul.f32 %v1673_v17, %v5283_v61  ;;  %v1675_v58 = vmul.f32 0.5, %v1539_v14  ;;  %v5401_v12 = vadd.f32 %v4986_v53, %v4314_v29  ;;  %v5405_v30 = vadd.f32 %v4995_v60, %v4308_v27 }
 0x250   : > { %v3584_v24 = vpop.eup %3583  ;;  %v1540_v49 = vadd.f32 1.0, %v3582_v56  ;;  %v1276_v2 = vmul.f32 0.70710677, %v5386_v43  ;;  %v1278_v15 = vmul.f32 0.70710677, %v5390_v13  ;;  %v5411_v61 = vadd.f32 %v4997_v39, %v4310_v28  ;;  %v5959_v56 = vld [vmem:[#allocation30_spill] sm:$0xff] }
 0x251   : > { %v3586_v44 = vpop.eup %3585  ;;  %v5414_v57 = vmul.f32 %v1675_v58, %v5296_v45  ;;  %v1542_v53 = vadd.f32 1.0, %v3584_v24  ;;  %v1277_v62 = vmul.f32 0.70710677, %v5394_v40  ;;  %v1279_v60 = vmul.f32 0.70710677, %v5401_v12 }
 0x252   : > { %v3588_v33 = vpop.eup %3587  ;;  %v1676_v41 = vmul.f32 0.5, %v1540_v49  ;;  %v1541_v63 = vadd.f32 1.0, %v3586_v44  ;;  %3597 = verf.f32 %v1276_v2  ;;  %v1280_v31 = vmul.f32 0.70710677, %v5405_v30 }
 0x253   : > { %v3590_v55 = vpop.eup %3589  ;;  %v1678_v11 = vmul.f32 0.5, %v1542_v53  ;;  %v1543_v16 = vadd.f32 1.0, %v3588_v33  ;;  %3599 = verf.f32 %v1278_v15  ;;  %v1282_v39 = vmul.f32 0.70710677, %v5411_v61 }
 0x254   : > { %v5421_v45 = vmul.f32 %v1676_v41, %v5316_v6  ;;  %v1677_v21 = vmul.f32 0.5, %v1541_v63  ;;  %v1544_v20 = vadd.f32 1.0, %v3590_v55  ;;  %3601 = verf.f32 %v1277_v62  ;;  %v3592_v17 = vpop.eup %3591  ;;  %v5960_v41 = vld [vmem:[#allocation31_spill] sm:$0xff] }
 0x255   : > { %v5424_v14 = vmul.f32 %v1678_v11, %v5321_v7  ;;  %v1679_v37 = vmul.f32 0.5, %v1543_v16  ;;  %3603 = verf.f32 %v1279_v60  ;;  %v5428_v58 = vadd.f32 %v5959_v56, %v4312_v1 }
 0x256   : > { %v3594_v24 = vpop.eup %3593  ;;  %v5431_v49 = vmul.f32 %v1677_v21, %v5325_v18  ;;  %v1680_v2 = vmul.f32 0.5, %v1544_v20  ;;  %v1546_v6 = vadd.f32 1.0, %v3592_v17  ;;  %3605 = verf.f32 %v1280_v31 }
 0x257   : > { %v3596_v15 = vpop.eup %3595  ;;  %v5434_v44 = vmul.f32 %v1679_v37, %v5330_v8  ;;  %v1545_v53 = vadd.f32 1.0, %v3594_v24  ;;  %3607 = verf.f32 %v1282_v39  ;;  %v1281_v7 = vmul.f32 0.70710677, %v5428_v58 }
 0x258   : > { %v5438_v62 = vmul.f32 %v1680_v2, %v5334_v35  ;;  %v1682_v60 = vmul.f32 0.5, %v1546_v6  ;;  %v1547_v33 = vadd.f32 1.0, %v3596_v15  ;;  %v5442_v18 = vadd.f32 %v5960_v41, %v4314_v29  ;;  %v5965_v6 = vld [vmem:[#allocation46_spill] sm:$0xff] }
 0x259   : > { %v1681_v63 = vmul.f32 0.5, %v1545_v53  ;;  %3609 = verf.f32 %v1281_v7  ;;  %v1897_v31 = vpack.c.bf16 %v5304_v48, %v5271_v36  ;;  %v1899_v8 = vpack.c.bf16 %v5310_v4, %v5279_v52 }
 0x25a   : > { %v5449_v55 = vmul.f32 %v1682_v60, %v5350_v59  ;;  %v1683_v11 = vmul.f32 0.5, %v1547_v33  ;;  %v1283_v35 = vmul.f32 0.70710677, %v5442_v18  ;;  %v1896_v16 = vpack.c.bf16 %v5286_v26, %v5257_v38  ;;  %v5961_v38 = vld [vmem:[#allocation42_spill] sm:$0xff]  ;;  %v5962_v59 = vld [vmem:[#allocation43_spill] sm:$0xff] }
 0x25b   : > { %v5455_v39 = vmul.f32 %v1681_v63, %v5358_v51  ;;  %2296 = vmatprep.mubr.bf16.mxu1 %v1897_v31  ;;  %2465 = vmatprep.mubr.bf16.mxu0 %v1899_v8  ;;  %v1898_v36 = vpack.c.bf16 %v5291_v50, %v5265_v10  ;;  %v5461_v52 = vadd.f32 %v5038_v3, %v4308_v27  ;;  %v5963_v50 = vld [vmem:[#allocation44_spill] sm:$0xff] }
 0x25c   : > { %v3598_v48 = vpop.eup %3597  ;;  %v5464_v4 = vmul.f32 %v1683_v11, %v5366_v42  ;;  %3611 = verf.f32 %v1283_v35  ;;  %2297 = vmatmul.mubr.bf16.gmra.mrb[104].mxu1 %v1896_v16  ;;  %v5468_v26 = vadd.f32 %v5961_v38, %v4310_v28  ;;  %v5472_v51 = vadd.f32 %v5962_v59, %v4312_v1  ;;  %v5964_v42 = vld [vmem:[#allocation45_spill] sm:$0xff] }
 0x25d   : > { %v3600_v21 = vpop.eup %3599  ;;  %v1548_v10 = vadd.f32 1.0, %v3598_v48  ;;  %2466 = vmatmul.mubr.bf16.gmra.mrb[104].mxu0 %v1898_v36  ;;  %v1284_v3 = vmul.f32 0.70710677, %v5461_v52  ;;  %v5477_v20 = vadd.f32 %v5963_v50, %v4314_v29  ;;  %v5481_v17 = vadd.f32 %v5964_v42, %v4308_v27 }
 0x25e   : > { %v3602_v37 = vpop.eup %3601  ;;  %v1550_v56 = vadd.f32 1.0, %v3600_v21  ;;  %v1286_v24 = vmul.f32 0.70710677, %v5468_v26  ;;  %v1285_v2 = vmul.f32 0.70710677, %v5472_v51  ;;  %v5487_v15 = vadd.f32 %v5965_v6, %v4310_v28 }
 0x25f   : > { %v3604_v53 = vpop.eup %3603  ;;  %v1684_v7 = vmul.f32 0.5, %v1548_v10  ;;  %v1549_v60 = vadd.f32 1.0, %v3602_v37  ;;  %3613 = verf.f32 %v1284_v3  ;;  %v1287_v33 = vmul.f32 0.70710677, %v5477_v20 }
 0x260   : > { %v3606_v41 = vpop.eup %3605  ;;  %v1686_v63 = vmul.f32 0.5, %v1550_v56  ;;  %v1551_v31 = vadd.f32 1.0, %v3604_v53  ;;  %3615 = verf.f32 %v1286_v24  ;;  %v1288_v8 = vmul.f32 0.70710677, %v5481_v17  ;;  %v5966_v56 = vld [vmem:[#allocation47_spill] sm:$0xff] }
 0x261   : > { %v3608_v11 = vpop.eup %3607  ;;  %v5492_v35 = vmul.f32 %v1684_v7, %v5386_v43  ;;  %v1685_v16 = vmul.f32 0.5, %v1549_v60  ;;  %v1552_v36 = vadd.f32 1.0, %v3606_v41  ;;  %3617 = verf.f32 %v1285_v2 }
 0x262   : > { %v5495_v48 = vmul.f32 %v1686_v63, %v5390_v13  ;;  %v1687_v38 = vmul.f32 0.5, %v1551_v31  ;;  %v1554_v59 = vadd.f32 1.0, %v3608_v11  ;;  %3619 = verf.f32 %v1287_v33 }
 0x263   : > { %v3610_v21 = vpop.eup %3609  ;;  %v5498_v10 = vmul.f32 %v1685_v16, %v5394_v40  ;;  %v1688_v3 = vmul.f32 0.5, %v1552_v36  ;;  %3621 = verf.f32 %v1288_v8  ;;  %v1290_v50 = vmul.f32 0.70710677, %v5487_v15  ;;  %v5967_v40 = vld [vmem:[#allocation48_spill] sm:$0xff] }
 0x264   : > { %v5502_v43 = vmul.f32 %v1687_v38, %v5401_v12  ;;  %v1690_v42 = vmul.f32 0.5, %v1554_v59  ;;  %v1553_v37 = vadd.f32 1.0, %v3610_v21  ;;  %v5506_v13 = vadd.f32 %v5966_v56, %v4312_v1  ;;  %v5972_v59 = vld [vmem:[#allocation36_spill] sm:$0xff] }
 0x265   : > { %v5509_v24 = vmul.f32 %v1688_v3, %v5405_v30  ;;  %3623 = verf.f32 %v1290_v50  ;;  %v5513_v2 = vadd.f32 %v5967_v40, %v4314_v29  ;;  %v1901_v6 = vpack.c.bf16 %v5397_v46, %v5354_v54 }
 0x266   : > { %v3612_v53 = vpop.eup %3611  ;;  %v5518_v12 = vmul.f32 %v1690_v42, %v5411_v61  ;;  %v1689_v7 = vmul.f32 0.5, %v1553_v37  ;;  %v1289_v60 = vmul.f32 0.70710677, %v5506_v13  ;;  %v1903_v33 = vpack.c.bf16 %v5414_v57, %v5361_v25  ;;  %v5968_v61 = vld [vmem:[#allocation32_spill] sm:$0xff]  ;;  %v5969_v25 = vld [vmem:[#allocation33_spill] sm:$0xff] }
 0x267   : > { %v1555_v30 = vadd.f32 1.0, %v3612_v53  ;;  %v1291_v41 = vmul.f32 0.70710677, %v5513_v2  ;;  %2304 = vmatprep.mubr.bf16.mxu1 %v1901_v6  ;;  %v1900_v63 = vpack.c.bf16 %v5375_v23, %v5342_v34  ;;  %v1902_v54 = vpack.c.bf16 %v5382_v5, %v5346_v0  ;;  %v5970_v34 = vld [vmem:[#allocation34_spill] sm:$0xff]  ;;  %v5971_v23 = vld [vmem:[#allocation35_spill] sm:$0xff] }
 0x268   : > { %v5529_v46 = vmul.f32 %v1689_v7, %v5428_v58  ;;  %3625 = verf.f32 %v1289_v60  ;;  %2473 = vmatprep.mubr.bf16.mxu0 %v1903_v33  ;;  %v5533_v31 = vadd.f32 %v5968_v61, %v4308_v27  ;;  %v5537_v57 = vadd.f32 %v5969_v25, %v4310_v28 }
 0x269   : > { %v3614_v8 = vpop.eup %3613  ;;  %v1691_v11 = vmul.f32 0.5, %v1555_v30  ;;  %3627 = verf.f32 %v1291_v41  ;;  %2305 = vmatmul.mubr.bf16.gmra.mrb[108].mxu1 %v1900_v63  ;;  %2474 = vmatmul.mubr.bf16.gmra.mrb[108].mxu0 %v1902_v54  ;;  %v5541_v0 = vadd.f32 %v5970_v34, %v4312_v1  ;;  %v5545_v5 = vadd.f32 %v5971_v23, %v4314_v29  ;;  %v5973_v41 = vld [vmem:[#allocation19_spill] sm:$0xff] }
 0x26a   : > { %v3616_v58 = vpop.eup %3615  ;;  %v1556_v16 = vadd.f32 1.0, %v3614_v8  ;;  %v1292_v36 = vmul.f32 0.70710677, %v5533_v31  ;;  %v1294_v38 = vmul.f32 0.70710677, %v5537_v57  ;;  %v5551_v21 = vadd.f32 %v5972_v59, %v4308_v27 }
 0x26b   : > { %v3618_v3 = vpop.eup %3617  ;;  %v5554_v50 = vmul.f32 %v1691_v11, %v5442_v18  ;;  %v1558_v42 = vadd.f32 1.0, %v3616_v58  ;;  %v1293_v37 = vmul.f32 0.70710677, %v5541_v0  ;;  %v1295_v56 = vmul.f32 0.70710677, %v5545_v5 }
 0x26c   : > { %v3620_v40 = vpop.eup %3619  ;;  %v1692_v6 = vmul.f32 0.5, %v1556_v16  ;;  %v1557_v53 = vadd.f32 1.0, %v3618_v3  ;;  %3629 = verf.f32 %v1292_v36  ;;  %v1296_v7 = vmul.f32 0.70710677, %v5551_v21  ;;  %v5974_v36 = vld [vmem:[#allocation20_spill] sm:$0xff] }
 0x26d   : > { %v3622_v60 = vpop.eup %3621  ;;  %v1694_v33 = vmul.f32 0.5, %v1558_v42  ;;  %v1559_v30 = vadd.f32 1.0, %v3620_v40  ;;  %3631 = verf.f32 %v1294_v38  ;;  %v5561_v63 = vadd.f32 %v5973_v41, %v4310_v28 }
 0x26e   : > { %v5564_v18 = vmul.f32 %v1692_v6, %v5461_v52  ;;  %v1693_v54 = vmul.f32 0.5, %v1557_v53  ;;  %v1560_v61 = vadd.f32 1.0, %v3622_v60  ;;  %3633 = verf.f32 %v1293_v37 }
 0x26f   : > { %v3624_v25 = vpop.eup %3623  ;;  %v5567_v8 = vmul.f32 %v1694_v33, %v5468_v26  ;;  %v1695_v11 = vmul.f32 0.5, %v1559_v30  ;;  %3635 = verf.f32 %v1295_v56  ;;  %v1298_v34 = vmul.f32 0.70710677, %v5561_v63  ;;  %v5975_v26 = vld [vmem:[#allocation49_spill] sm:$0xff]  ;;  %v5977_v33 = vld [vmem:[#allocation22_spill] sm:$0xff] }
 0x270   : > { %v5571_v23 = vmul.f32 %v1693_v54, %v5472_v51  ;;  %v1696_v58 = vmul.f32 0.5, %v1560_v61  ;;  %v1562_v16 = vadd.f32 1.0, %v3624_v25  ;;  %3637 = verf.f32 %v1296_v7 }
 0x271   : > { %v5574_v52 = vmul.f32 %v1695_v11, %v5477_v20  ;;  %3639 = verf.f32 %v1298_v34  ;;  %v5578_v38 = vadd.f32 %v5974_v36, %v4312_v1  ;;  %v5582_v59 = vadd.f32 %v5975_v26, %v4314_v29 }
 0x272   : > { %v3626_v3 = vpop.eup %3625  ;;  %v5585_v42 = vmul.f32 %v1696_v58, %v5481_v17  ;;  %v1698_v51 = vmul.f32 0.5, %v1562_v16  ;;  %v1905_v37 = vpack.c.bf16 %v5455_v39, %v5431_v49  ;;  %v1907_v20 = vpack.c.bf16 %v5464_v4, %v5434_v44  ;;  %v5976_v44 = vld [vmem:[#allocation21_spill] sm:$0xff] }
 0x273   : > { %v3628_v56 = vpop.eup %3627  ;;  %v1561_v40 = vadd.f32 1.0, %v3626_v3  ;;  %v1297_v6 = vmul.f32 0.70710677, %v5578_v38  ;;  %v1299_v53 = vmul.f32 0.70710677, %v5582_v59  ;;  %v1904_v7 = vpack.c.bf16 %v5438_v62, %v5421_v45  ;;  %v5978_v45 = vld [vmem:[#allocation50_spill] sm:$0xff] }
 0x274   : > { %v5596_v60 = vmul.f32 %v1698_v51, %v5487_v15  ;;  %v1563_v17 = vadd.f32 1.0, %v3628_v56  ;;  %2312 = vmatprep.mubr.bf16.mxu1 %v1905_v37  ;;  %2481 = vmatprep.mubr.bf16.mxu0 %v1907_v20  ;;  %v1906_v49 = vpack.c.bf16 %v5449_v55, %v5424_v14  ;;  %v5602_v39 = vadd.f32 %v5976_v44, %v4308_v27  ;;  %v5979_v55 = vld [vmem:[#allocation51_spill] sm:$0xff] }
 0x275   : > { %v1697_v4 = vmul.f32 0.5, %v1561_v40  ;;  %3641 = verf.f32 %v1297_v6  ;;  %2313 = vmatmul.mubr.bf16.gmra.mrb[112].mxu1 %v1904_v7  ;;  %v5606_v30 = vadd.f32 %v5977_v33, %v4310_v28  ;;  %v5610_v62 = vadd.f32 %v5978_v45, %v4312_v1 }
 0x276   : > { %v3630_v15 = vpop.eup %3629  ;;  %v1699_v41 = vmul.f32 0.5, %v1563_v17  ;;  %3643 = verf.f32 %v1299_v53  ;;  %2482 = vmatmul.mubr.bf16.gmra.mrb[112].mxu0 %v1906_v49  ;;  %v1300_v14 = vmul.f32 0.70710677, %v5602_v39  ;;  %v5615_v54 = vadd.f32 %v5979_v55, %v4314_v29 }
 0x277   : > { %v3632_v61 = vpop.eup %3631  ;;  %v5618_v25 = vmul.f32 %v1697_v4, %v5506_v13  ;;  %v1564_v11 = vadd.f32 1.0, %v3630_v15  ;;  %v1302_v34 = vmul.f32 0.70710677, %v5606_v30  ;;  %v1301_v58 = vmul.f32 0.70710677, %v5610_v62 }
 0x278   : > { %v3634_v16 = vpop.eup %3633  ;;  %v5623_v36 = vmul.f32 %v1699_v41, %v5513_v2  ;;  %v1566_v26 = vadd.f32 1.0, %v3632_v61  ;;  %3645 = verf.f32 %v1300_v14  ;;  %v1303_v3 = vmul.f32 0.70710677, %v5615_v54 }
 0x279   : > { %v3636_v51 = vpop.eup %3635  ;;  %v1700_v37 = vmul.f32 0.5, %v1564_v11  ;;  %v1565_v20 = vadd.f32 1.0, %v3634_v16  ;;  %3647 = verf.f32 %v1302_v34  ;;  %v5628_v13 = vadd.f32 %v5192_v22, %v4308_v27 }
 0x27a   : > { %v3638_v56 = vpop.eup %3637  ;;  %v1702_v40 = vmul.f32 0.5, %v1566_v26  ;;  %v1567_v6 = vadd.f32 1.0, %v3636_v51  ;;  %3649 = verf.f32 %v1301_v58  ;;  %v5632_v2 = vadd.f32 %v5194_v32, %v4310_v28  ;;  %v5981_v51 = vld [vmem:[#allocation52_spill] sm:$0xff] }
 0x27b   : > { %v3640_v53 = vpop.eup %3639  ;;  %v5635_v7 = vmul.f32 %v1700_v37, %v5533_v31  ;;  %v1701_v17 = vmul.f32 0.5, %v1565_v20  ;;  %v1568_v49 = vadd.f32 1.0, %v3638_v56  ;;  %3651 = verf.f32 %v1303_v3 }
 0x27c   : > { %v5638_v44 = vmul.f32 %v1702_v40, %v5537_v57  ;;  %v1703_v22 = vmul.f32 0.5, %v1567_v6  ;;  %v1570_v4 = vadd.f32 1.0, %v3640_v53  ;;  %v1304_v33 = vmul.f32 0.70710677, %v5628_v13 }
 0x27d   : > { %v5642_v45 = vmul.f32 %v1701_v17, %v5541_v0  ;;  %v1704_v15 = vmul.f32 0.5, %v1568_v49  ;;  %v1306_v32 = vmul.f32 0.70710677, %v5632_v2  ;;  %v5647_v31 = vadd.f32 %v5198_v47, %v4312_v1 }
 0x27e   : > { %v5650_v41 = vmul.f32 %v1703_v22, %v5545_v5  ;;  %v1706_v14 = vmul.f32 0.5, %v1570_v4  ;;  %3653 = verf.f32 %v1304_v33  ;;  %v5654_v57 = vadd.f32 %v5200_v9, %v4314_v29 }
 0x27f   : > { %v3642_v55 = vpop.eup %3641  ;;  %v5657_v0 = vmul.f32 %v1704_v15, %v5551_v21  ;;  %3655 = verf.f32 %v1306_v32  ;;  %v1305_v61 = vmul.f32 0.70710677, %v5647_v31  ;;  %v1909_v47 = vpack.c.bf16 %v5529_v46, %v5498_v10 }
 0x280   : > { %v3644_v11 = vpop.eup %3643  ;;  %v5663_v5 = vmul.f32 %v1706_v14, %v5561_v63  ;;  %v1569_v34 = vadd.f32 1.0, %v3642_v55  ;;  %v1307_v58 = vmul.f32 0.70710677, %v5654_v57  ;;  %v1911_v9 = vpack.c.bf16 %v5554_v50, %v5502_v43  ;;  %v5980_v63 = vld [vmem:[#allocation23_spill] sm:$0xff] }
 0x281   : > { %v1571_v16 = vadd.f32 1.0, %v3644_v11  ;;  %3657 = verf.f32 %v1305_v61  ;;  %2320 = vmatprep.mubr.bf16.mxu1 %v1909_v47  ;;  %v1908_v21 = vpack.c.bf16 %v5509_v24, %v5492_v35  ;;  %v1910_v26 = vpack.c.bf16 %v5518_v12, %v5495_v48  ;;  %v5982_v35 = vld [vmem:[#allocation53_spill] sm:$0xff]  ;;  %v5983_v24 = vld [vmem:[#allocation54_spill] sm:$0xff]  ;;  %v5984_v47 = vld [vmem:[#allocation55_spill] sm:$0xff] }
 0x282   : > { %v3646_v10 = vpop.eup %3645  ;;  %v1705_v46 = vmul.f32 0.5, %v1569_v34  ;;  %3659 = verf.f32 %v1307_v58  ;;  %2489 = vmatprep.mubr.bf16.mxu0 %v1911_v9  ;;  %v5674_v3 = vadd.f32 %v5980_v63, %v4308_v27  ;;  %v5678_v43 = vadd.f32 %v5981_v51, %v4310_v28 }
 0x283   : > { %v3648_v50 = vpop.eup %3647  ;;  %v1707_v37 = vmul.f32 0.5, %v1571_v16  ;;  %v1572_v20 = vadd.f32 1.0, %v3646_v10  ;;  %2321 = vmatmul.mubr.bf16.gmra.mrb[116].mxu1 %v1908_v21  ;;  %2490 = vmatmul.mubr.bf16.gmra.mrb[116].mxu0 %v1910_v26  ;;  %v5682_v48 = vadd.f32 %v5982_v35, %v4312_v1  ;;  %v5686_v12 = vadd.f32 %v5983_v24, %v4314_v29 }
 0x284   : > { %v3650_v56 = vpop.eup %3649  ;;  %v5689_v40 = vmul.f32 %v1705_v46, %v5578_v38  ;;  %v1574_v6 = vadd.f32 1.0, %v3648_v50  ;;  %v1308_v53 = vmul.f32 0.70710677, %v5674_v3  ;;  %v1310_v17 = vmul.f32 0.70710677, %v5678_v43  ;;  %v5985_v46 = vld [vmem:[#allocation56_spill] sm:$0xff] }
 0x285   : > { %v3652_v49 = vpop.eup %3651  ;;  %v5694_v22 = vmul.f32 %v1707_v37, %v5582_v59  ;;  %v1708_v4 = vmul.f32 0.5, %v1572_v20  ;;  %v1573_v33 = vadd.f32 1.0, %v3650_v56  ;;  %v1309_v15 = vmul.f32 0.70710677, %v5682_v48 }
 0x286   : > { %v1710_v32 = vmul.f32 0.5, %v1574_v6  ;;  %v1575_v14 = vadd.f32 1.0, %v3652_v49  ;;  %3661 = verf.f32 %v1308_v53  ;;  %v1311_v55 = vmul.f32 0.70710677, %v5686_v12 }
 0x287   : > { %v5699_v38 = vmul.f32 %v1708_v4, %v5602_v39  ;;  %v1709_v61 = vmul.f32 0.5, %v1573_v33  ;;  %3663 = verf.f32 %v1310_v17  ;;  %v5703_v11 = vadd.f32 %v5984_v47, %v4308_v27 }
 0x288   : > { %v3654_v59 = vpop.eup %3653  ;;  %v5706_v34 = vmul.f32 %v1710_v32, %v5606_v30  ;;  %v1711_v58 = vmul.f32 0.5, %v1575_v14  ;;  %3665 = verf.f32 %v1309_v15  ;;  %v5710_v9 = vadd.f32 %v5259_v19, %v4310_v28 }
 0x289   : > { %v3656_v16 = vpop.eup %3655  ;;  %v5713_v39 = vmul.f32 %v1709_v61, %v5610_v62  ;;  %v1576_v21 = vadd.f32 1.0, %v3654_v59  ;;  %3667 = verf.f32 %v1311_v55  ;;  %v1312_v26 = vmul.f32 0.70710677, %v5703_v11  ;;  %v5986_v62 = vld [vmem:[#allocation57_spill] sm:$0xff] }
 0x28a   : > { %v5717_v27 = vmul.f32 %v1711_v58, %v5615_v54  ;;  %v1578_v10 = vadd.f32 1.0, %v3656_v16  ;;  %v1314_v30 = vmul.f32 0.70710677, %v5710_v9  ;;  %v5722_v63 = vadd.f32 %v5985_v46, %v4312_v1 }
 0x28b   : > { %v3658_v28 = vpop.eup %3657  ;;  %v1712_v19 = vmul.f32 0.5, %v1576_v21  ;;  %3669 = verf.f32 %v1312_v26  ;;  %v5726_v51 = vadd.f32 %v5986_v62, %v4314_v29  ;;  %v1913_v50 = vpack.c.bf16 %v5618_v25, %v5571_v23 }
 0x28c   : > { %v3660_v37 = vpop.eup %3659  ;;  %v1714_v54 = vmul.f32 0.5, %v1578_v10  ;;  %v1577_v20 = vadd.f32 1.0, %v3658_v28  ;;  %3671 = verf.f32 %v1314_v30  ;;  %v1313_v35 = vmul.f32 0.70710677, %v5722_v63 }
 0x28d   : > { %v5732_v24 = vmul.f32 %v1712_v19, %v5628_v13  ;;  %v1579_v1 = vadd.f32 1.0, %v3660_v37  ;;  %v1315_v56 = vmul.f32 0.70710677, %v5726_v51  ;;  %2328 = vmatprep.mubr.bf16.mxu1 %v1913_v50  ;;  %v1915_v29 = vpack.c.bf16 %v5623_v36, %v5574_v52 }
 0x28e   : > { %v5738_v6 = vmul.f32 %v1714_v54, %v5632_v2  ;;  %v1713_v23 = vmul.f32 0.5, %v1577_v20  ;;  %3673 = verf.f32 %v1313_v35  ;;  %v1912_v25 = vpack.c.bf16 %v5585_v42, %v5564_v18 }
 0x28f   : > { %v1715_v53 = vmul.f32 0.5, %v1579_v1  ;;  %3675 = verf.f32 %v1315_v56  ;;  %2497 = vmatprep.mubr.bf16.mxu0 %v1915_v29  ;;  %v1914_v13 = vpack.c.bf16 %v5596_v60, %v5567_v8  ;;  %v1917_v17 = vpack.c.bf16 %v5689_v40, %v5642_v45 }
 0x290   : > { %v3662_v49 = vpop.eup %3661  ;;  %v1849_v52 = vmul.f32 %v1713_v23, %v5647_v31  ;;  %2329 = vmatmul.mubr.bf16.gmra.mrb[120].mxu1 %v1912_v25  ;;  %v1919_v36 = vpack.c.bf16 %v5694_v22, %v5650_v41  ;;  %v1916_v2 = vpack.c.bf16 %v5657_v0, %v5635_v7  ;;  %v1918_v18 = vpack.c.bf16 %v5663_v5, %v5638_v44  ;;  %v2598_v23 = vld [vmem:[#allocation13] sm:$0xff] }
 0x291   : > { %v3664_v42 = vpop.eup %3663  ;;  %v1851_v4 = vmul.f32 %v1715_v53, %v5654_v57  ;;  %2498 = vmatmul.mubr.bf16.gmra.mrb[120].mxu0 %v1914_v13  ;;  %2336 = vmatprep.mubr.bf16.mxu1 %v1917_v17  ;;  %v1920_v8 = vpack.c.bf16 %v5732_v24, %v5699_v38  ;;  %v1922_v60 = vpack.c.bf16 %v5738_v6, %v5706_v34  ;;  %v1580_v31 = vadd.f32 1.0, %v3662_v49  ;;  %v2599_v17 = vld [vmem:[#allocation13 + $0x8] sm:$0xff] }
 0x292   : > { %v3666_v45 = vpop.eup %3665  ;;  %2505 = vmatprep.mubr.bf16.mxu0 %v1919_v36  ;;  %v1921_v41 = vpack.c.bf16 %v1849_v52, %v5713_v39  ;;  %v1582_v0 = vadd.f32 1.0, %v3664_v42 }
 0x293   : > { %v3668_v7 = vpop.eup %3667  ;;  %v1923_v44 = vpack.c.bf16 %v1851_v4, %v5717_v27  ;;  %v1581_v40 = vadd.f32 1.0, %v3666_v45  ;;  %v1716_v22 = vmul.f32 0.5, %v1580_v31 }
 0x294   : > { %v1583_v33 = vadd.f32 1.0, %v3668_v7  ;;  %v1718_v32 = vmul.f32 0.5, %v1582_v0 }
 0x295   : > { %v3670_v5 = vpop.eup %3669  ;;  %v1717_v47 = vmul.f32 0.5, %v1581_v40  ;;  %v1852_v58 = vmul.f32 %v1716_v22, %v5674_v3  ;;  %v2600_v22 = vld [vmem:[#allocation13 + $0x10] sm:$0xff] }
 0x296   : > { %v3672_v57 = vpop.eup %3671  ;;  %v1584_v15 = vadd.f32 1.0, %v3670_v5  ;;  %v1719_v16 = vmul.f32 0.5, %v1583_v33  ;;  %v1854_v26 = vmul.f32 %v1718_v32, %v5678_v43  ;;  %v5769_v43 = vld [vmem:[%s384_s14] ss:$0 sm:$0xff] }
 0x297   : > { %v1586_v14 = vadd.f32 1.0, %v3672_v57  ;;  %v1853_v28 = vmul.f32 %v1717_v47, %v5682_v48 }
 0x298   : > { %v3674_v55 = vpop.eup %3673  ;;  %v1720_v38 = vmul.f32 0.5, %v1584_v15  ;;  %2337 = vmatmul.mubr.bf16.gmra.mrb[124].mxu1 %v1916_v2  ;;  %v1855_v3 = vmul.f32 %v1719_v16, %v5686_v12  ;;  %v2601_v15 = vld [vmem:[#allocation13 + $0x18] sm:$0xff] }
 0x299   : > { %v3676_v61 = vpop.eup %3675  ;;  %v1722_v59 = vmul.f32 0.5, %v1586_v14  ;;  %v1585_v34 = vadd.f32 1.0, %v3674_v55  ;;  %2506 = vmatmul.mubr.bf16.gmra.mrb[124].mxu0 %v1918_v18  ;;  %2344 = vmatprep.mubr.bf16.mxu1 %v1921_v41  ;;  %v2645_v18 = vpop.permute.xlu1 %2644 }
 0x29a   : > { %v1856_v39 = vmul.f32 %v1720_v38, %v5703_v11  ;;  %v1587_v21 = vadd.f32 1.0, %v3676_v61  ;;  %2513 = vmatprep.mubr.bf16.mxu0 %v1923_v44 }
 0x29b   : > { %v1858_v27 = vmul.f32 %v1722_v59, %v5710_v9  ;;  %v1721_v10 = vmul.f32 0.5, %v1585_v34  ;;  %v2635_v9 = vpop.permute.xlu0 %2634 }
 0x29c   : > { %v1723_v30 = vmul.f32 0.5, %v1587_v21  ;;  %v1924_v46 = vpack.c.bf16 %v1856_v39, %v1852_v58 }
 0x29d   : > { %v1857_v19 = vmul.f32 %v1721_v10, %v5722_v63  ;;  %v1926_v62 = vpack.c.bf16 %v1858_v27, %v1854_v26  ;;  %v2650_v32 = vpop.permute.xlu1 %2649 }
 0x29e   : > { %v1859_v50 = vmul.f32 %v1723_v30, %v5726_v51 }
 0x29f   : > { %v1925_v11 = vpack.c.bf16 %v1857_v19, %v1853_v28  ;;  %v2640_v53 = vpop.permute.xlu0 %2639 }
 0x2a0   : > { %2345 = vmatmul.mubr.bf16.gmra.mrb[128].mxu1 %v1920_v8  ;;  %v1927_v37 = vpack.c.bf16 %v1859_v50, %v1855_v3 }
 0x2a1   : > { %2514 = vmatmul.mubr.bf16.gmra.mrb[128].mxu0 %v1922_v60  ;;  %2352 = vmatprep.mubr.bf16.mxu1 %v1925_v11  ;;  %v2660_v50 = vpop.permute.xlu1 %2659 }
 0x2a2   : > { %2521 = vmatprep.mubr.bf16.mxu0 %v1927_v37  ;;  %v2603_v37 = vld [vmem:[#allocation13 + $0x28] sm:$0xff] }
 0x2a3   : > { %v2655_v28 = vpop.permute.xlu0 %2654 }
 0x2a8   : > { %2353 = vmatmul.mubr.bf16.gmra.mrb[132].mxu1 %v1924_v46 }
 0x2a9   : > { %2522 = vmatmul.mubr.bf16.gmra.mrb[132].mxu0 %v1926_v62  ;;  %v2602_v62 = vld [vmem:[#allocation13 + $0x20] sm:$0xff] }
 0x2b3   : > { %v2226_v48 = vpop.f32.mrb[68].mxu1 }
 0x2b4   : > { %v2395_v54 = vpop.f32.mrb[68].mxu0  ;;  %v2227_v63 = vadd.f32 %v5769_v43, %v2226_v48  ;;  %v2228_v20 = vpop.f32.mrb[69].mxu1 }
 0x2b5   : > { %v2397_v12 = vpop.f32.mrb[69].mxu0  ;;  %v2229_v35 = vpop.f32.mrb[70].mxu1 }
 0x2b6   : > { %v2398_v51 = vpop.f32.mrb[70].mxu0  ;;  %v2396_v24 = vadd.f32 %v2395_v54, %v2227_v63  ;;  %v2230_v1 = vadd.f32 %v5769_v43, %v2229_v35  ;;  %v2231_v56 = vpop.f32.mrb[71].mxu1 }
 0x2b7   : > { %v2400_v29 = vpop.f32.mrb[71].mxu0 }
 0x2b8   : > { %v2399_v6 = vadd.f32 %v2398_v51, %v2230_v1  ;;  %vm2530_vm0 = vcmp.ne.f32.partialorder %v2396_v24, %v2396_v24 }
 0x2b9   : > { %v2564_v25 = vsel %vm2530_vm0, 0.0, %v2396_v24 }
 0x2ba   : > { %v2802_v13 = vmul.f32 %v2635_v9, %v2564_v25  ;;  %vm2531_vm1 = vcmp.ne.f32.partialorder %v2399_v6, %v2399_v6 }
 0x2bb   : > { %v2565_v49 = vsel %vm2531_vm1, 0.0, %v2399_v6 }
 0x2bc   : > { %v2836_v52 = vadd.f32 %v2802_v13, %v2598_v23  ;;  %v2803_v36 = vmul.f32 %v2640_v53, %v2565_v49  ;;  %v2665_v53 = vpop.permute.xlu0 %2664 }
 0x2be   : > { %2870 = vst [vmem:[#allocation13] sm:$0xff] %v2836_v52  ;;  %v2837_v2 = vadd.f32 %v2803_v36, %v2599_v17  ;;  %v2604_v17 = vld [vmem:[#allocation13 + $0x30] sm:$0xff]  ;;  %v2670_v52 = vpop.permute.xlu1 %2669 }
 0x2c0   : > { %2871 = vst [vmem:[#allocation13 + $0x8] sm:$0xff] %v2837_v2  ;;  %v2605_v2 = vld [vmem:[#allocation13 + $0x38] sm:$0xff] }
 0x2c6   : > { %v2234_v42 = vpop.f32.mrb[72].mxu1 }
 0x2c7   : > { %v2235_v4 = vadd.f32 %v5769_v43, %v2234_v42  ;;  %v2403_v8 = vpop.f32.mrb[72].mxu0  ;;  %v2236_v60 = vpop.f32.mrb[73].mxu1 }
 0x2c8   : > { %v2405_v45 = vpop.f32.mrb[73].mxu0  ;;  %v2237_v31 = vpop.f32.mrb[74].mxu1 }
 0x2c9   : > { %v2404_v41 = vadd.f32 %v2403_v8, %v2235_v4  ;;  %v2238_v7 = vadd.f32 %v5769_v43, %v2237_v31  ;;  %v2406_v0 = vpop.f32.mrb[74].mxu0  ;;  %v2239_v44 = vpop.f32.mrb[75].mxu1 }
 0x2ca   : > { %v2408_v5 = vpop.f32.mrb[75].mxu0 }
 0x2cb   : > { %vm2532_vm2 = vcmp.ne.f32.partialorder %v2404_v41, %v2404_v41  ;;  %v2407_v40 = vadd.f32 %v2406_v0, %v2238_v7 }
 0x2cc   : > { %v2566_v57 = vsel %vm2532_vm2, 0.0, %v2404_v41 }
 0x2cd   : > { %v2804_v33 = vmul.f32 %v2645_v18, %v2566_v57  ;;  %vm2533_vm3 = vcmp.ne.f32.partialorder %v2407_v40, %v2407_v40 }
 0x2ce   : > { %v2567_v14 = vsel %vm2533_vm3, 0.0, %v2407_v40 }
 0x2cf   : > { %v2838_v55 = vadd.f32 %v2804_v33, %v2600_v22  ;;  %v2805_v38 = vmul.f32 %v2650_v32, %v2567_v14  ;;  %v2675_v33 = vpop.permute.xlu0 %2674  ;;  %v2606_v32 = vld [vmem:[#allocation13 + $0x40] sm:$0xff] }
 0x2d1   : > { %2872 = vst [vmem:[#allocation13 + $0x10] sm:$0xff] %v2838_v55  ;;  %v2839_v61 = vadd.f32 %v2805_v38, %v2601_v15  ;;  %v2680_v55 = vpop.permute.xlu1 %2679 }
 0x2d3   : > { %v2242_v47 = vpop.f32.mrb[76].mxu1  ;;  %v2411_v59 = vpop.f32.mrb[76].mxu0  ;;  %2873 = vst [vmem:[#allocation13 + $0x18] sm:$0xff] %v2839_v61  ;;  %v2607_v61 = vld [vmem:[#allocation13 + $0x48] sm:$0xff] }
 0x2d4   : > { %v2243_v34 = vadd.f32 %v5769_v43, %v2242_v47  ;;  %v2244_v58 = vpop.f32.mrb[77].mxu1  ;;  %v2413_v16 = vpop.f32.mrb[77].mxu0 }
 0x2d5   : > { %v2245_v39 = vpop.f32.mrb[78].mxu1  ;;  %v2414_v21 = vpop.f32.mrb[78].mxu0 }
 0x2d6   : > { %v2412_v26 = vadd.f32 %v2411_v59, %v2243_v34  ;;  %v2246_v27 = vadd.f32 %v5769_v43, %v2245_v39  ;;  %v2247_v10 = vpop.f32.mrb[79].mxu1  ;;  %v2416_v30 = vpop.f32.mrb[79].mxu0 }
 0x2d8   : > { %vm2534_vm4 = vcmp.ne.f32.partialorder %v2412_v26, %v2412_v26  ;;  %v2415_v46 = vadd.f32 %v2414_v21, %v2246_v27 }
 0x2d9   : > { %v2568_v19 = vsel %vm2534_vm4, 0.0, %v2412_v26 }
 0x2da   : > { %v2806_v3 = vmul.f32 %v2655_v28, %v2568_v19  ;;  %vm2535_vm5 = vcmp.ne.f32.partialorder %v2415_v46, %v2415_v46 }
 0x2db   : > { %v2569_v11 = vsel %vm2535_vm5, 0.0, %v2415_v46  ;;  %v2250_v9 = vpop.f32.mrb[80].mxu1 }
 0x2dc   : > { %v2840_v48 = vadd.f32 %v2806_v3, %v2602_v62  ;;  %v2807_v54 = vmul.f32 %v2660_v50, %v2569_v11  ;;  %v2251_v63 = vadd.f32 %v5769_v43, %v2250_v9  ;;  %v2252_v20 = vpop.f32.mrb[81].mxu1  ;;  %v2685_v3 = vpop.permute.xlu0 %2684  ;;  %v2608_v11 = vld [vmem:[#allocation13 + $0x50] sm:$0xff] }
 0x2dd   : > { %v2419_v12 = vpop.f32.mrb[80].mxu0  ;;  %v2253_v35 = vpop.f32.mrb[82].mxu1 }
 0x2de   : > { %2874 = vst [vmem:[#allocation13 + $0x20] sm:$0xff] %v2840_v48  ;;  %v2841_v51 = vadd.f32 %v2807_v54, %v2603_v37  ;;  %v2420_v24 = vadd.f32 %v2419_v12, %v2251_v63  ;;  %v2421_v1 = vpop.f32.mrb[81].mxu0  ;;  %v2254_v56 = vadd.f32 %v5769_v43, %v2253_v35  ;;  %v2255_v29 = vpop.f32.mrb[83].mxu1  ;;  %v2609_v54 = vld [vmem:[#allocation13 + $0x58] sm:$0xff] }
 0x2df   : > { %v2422_v6 = vpop.f32.mrb[82].mxu0  ;;  %v2690_v9 = vpop.permute.xlu1 %2689 }
 0x2e0   : > { %2875 = vst [vmem:[#allocation13 + $0x28] sm:$0xff] %v2841_v51  ;;  %vm2536_vm6 = vcmp.ne.f32.partialorder %v2420_v24, %v2420_v24  ;;  %v2423_v23 = vadd.f32 %v2422_v6, %v2254_v56  ;;  %v2424_v25 = vpop.f32.mrb[83].mxu0 }
 0x2e1   : > { %v2570_v13 = vsel %vm2536_vm6, 0.0, %v2420_v24 }
 0x2e2   : > { %v2808_v49 = vmul.f32 %v2665_v53, %v2570_v13  ;;  %vm2537_vm7 = vcmp.ne.f32.partialorder %v2423_v23, %v2423_v23 }
 0x2e3   : > { %v2571_v36 = vsel %vm2537_vm7, 0.0, %v2423_v23 }
 0x2e4   : > { %v2842_v18 = vadd.f32 %v2808_v49, %v2604_v17  ;;  %v2809_v42 = vmul.f32 %v2670_v52, %v2571_v36  ;;  %v2695_v49 = vpop.permute.xlu0 %2694  ;;  %v2610_v36 = vld [vmem:[#allocation13 + $0x60] sm:$0xff] }
 0x2e6   : > { %2876 = vst [vmem:[#allocation13 + $0x30] sm:$0xff] %v2842_v18  ;;  %v2843_v4 = vadd.f32 %v2809_v42, %v2605_v2  ;;  %v2700_v18 = vpop.permute.xlu1 %2699 }
 0x2e8   : > { %2877 = vst [vmem:[#allocation13 + $0x38] sm:$0xff] %v2843_v4  ;;  %v2611_v4 = vld [vmem:[#allocation13 + $0x68] sm:$0xff] }
 0x2ed   : > { %v2258_v8 = vpop.f32.mrb[84].mxu1 }
 0x2ee   : > { %v2259_v60 = vadd.f32 %v5769_v43, %v2258_v8  ;;  %v2427_v45 = vpop.f32.mrb[84].mxu0  ;;  %v2260_v31 = vpop.f32.mrb[85].mxu1 }
 0x2ef   : > { %v2429_v41 = vpop.f32.mrb[85].mxu0  ;;  %v2261_v7 = vpop.f32.mrb[86].mxu1 }
 0x2f0   : > { %v2428_v0 = vadd.f32 %v2427_v45, %v2259_v60  ;;  %v2262_v44 = vadd.f32 %v5769_v43, %v2261_v7  ;;  %v2430_v5 = vpop.f32.mrb[86].mxu0  ;;  %v2263_v40 = vpop.f32.mrb[87].mxu1 }
 0x2f1   : > { %v2432_v57 = vpop.f32.mrb[87].mxu0 }
 0x2f2   : > { %vm2538_vm8 = vcmp.ne.f32.partialorder %v2428_v0, %v2428_v0  ;;  %v2431_v22 = vadd.f32 %v2430_v5, %v2262_v44 }
 0x2f3   : > { %v2572_v15 = vsel %vm2538_vm8, 0.0, %v2428_v0 }
 0x2f4   : > { %v2810_v14 = vmul.f32 %v2675_v33, %v2572_v15  ;;  %vm2539_vm9 = vcmp.ne.f32.partialorder %v2431_v22, %v2431_v22 }
 0x2f5   : > { %v2573_v38 = vsel %vm2539_vm9, 0.0, %v2431_v22 }
 0x2f6   : > { %v2844_v47 = vadd.f32 %v2810_v14, %v2606_v32  ;;  %v2811_v59 = vmul.f32 %v2680_v55, %v2573_v38  ;;  %v2705_v14 = vpop.permute.xlu0 %2704  ;;  %v2612_v38 = vld [vmem:[#allocation13 + $0x70] sm:$0xff] }
 0x2f8   : > { %2878 = vst [vmem:[#allocation13 + $0x40] sm:$0xff] %v2844_v47  ;;  %v2845_v34 = vadd.f32 %v2811_v59, %v2607_v61  ;;  %v2710_v47 = vpop.permute.xlu1 %2709 }
 0x2f9   : > { %v2266_v58 = vpop.f32.mrb[88].mxu1  ;;  %v2435_v16 = vpop.f32.mrb[88].mxu0 }
 0x2fa   : > { %2879 = vst [vmem:[#allocation13 + $0x48] sm:$0xff] %v2845_v34  ;;  %v2267_v39 = vadd.f32 %v5769_v43, %v2266_v58  ;;  %v2268_v21 = vpop.f32.mrb[89].mxu1  ;;  %v2437_v26 = vpop.f32.mrb[89].mxu0  ;;  %v2613_v34 = vld [vmem:[#allocation13 + $0x78] sm:$0xff] }
 0x2fb   : > { %v2269_v27 = vpop.f32.mrb[90].mxu1  ;;  %v2438_v10 = vpop.f32.mrb[90].mxu0 }
 0x2fc   : > { %v2436_v30 = vadd.f32 %v2435_v16, %v2267_v39  ;;  %v2270_v46 = vadd.f32 %v5769_v43, %v2269_v27  ;;  %v2271_v28 = vpop.f32.mrb[91].mxu1  ;;  %v2440_v19 = vpop.f32.mrb[91].mxu0 }
 0x2fe   : > { %vm2540_vm10 = vcmp.ne.f32.partialorder %v2436_v30, %v2436_v30  ;;  %v2439_v62 = vadd.f32 %v2438_v10, %v2270_v46 }
 0x2ff   : > { %v2574_v50 = vsel %vm2540_vm10, 0.0, %v2436_v30 }
 0x300   : > { %v2812_v37 = vmul.f32 %v2685_v3, %v2574_v50  ;;  %vm2541_vm11 = vcmp.ne.f32.partialorder %v2439_v62, %v2439_v62 }
 0x301   : > { %v2575_v48 = vsel %vm2541_vm11, 0.0, %v2439_v62 }
 0x302   : > { %v2846_v63 = vadd.f32 %v2812_v37, %v2608_v11  ;;  %v2813_v20 = vmul.f32 %v2690_v9, %v2575_v48  ;;  %v2715_v37 = vpop.permute.xlu0 %2714  ;;  %v2614_v48 = vld [vmem:[#allocation13 + $0x80] sm:$0xff] }
 0x304   : > { %2880 = vst [vmem:[#allocation13 + $0x50] sm:$0xff] %v2846_v63  ;;  %v2847_v12 = vadd.f32 %v2813_v20, %v2609_v54  ;;  %v2720_v63 = vpop.permute.xlu1 %2719 }
 0x306   : > { %2881 = vst [vmem:[#allocation13 + $0x58] sm:$0xff] %v2847_v12  ;;  %v2615_v12 = vld [vmem:[#allocation13 + $0x88] sm:$0xff] }
 0x307   : > { %v2274_v35 = vpop.f32.mrb[92].mxu1 }
 0x308   : > { %v2275_v51 = vadd.f32 %v5769_v43, %v2274_v35  ;;  %v2443_v24 = vpop.f32.mrb[92].mxu0  ;;  %v2276_v1 = vpop.f32.mrb[93].mxu1 }
 0x309   : > { %v2445_v56 = vpop.f32.mrb[93].mxu0  ;;  %v2277_v29 = vpop.f32.mrb[94].mxu1 }
 0x30a   : > { %v2444_v6 = vadd.f32 %v2443_v24, %v2275_v51  ;;  %v2278_v23 = vadd.f32 %v5769_v43, %v2277_v29  ;;  %v2446_v25 = vpop.f32.mrb[94].mxu0  ;;  %v2279_v53 = vpop.f32.mrb[95].mxu1 }
 0x30b   : > { %v2448_v13 = vpop.f32.mrb[95].mxu0 }
 0x30c   : > { %vm2542_vm12 = vcmp.ne.f32.partialorder %v2444_v6, %v2444_v6  ;;  %v2447_v17 = vadd.f32 %v2446_v25, %v2278_v23 }
 0x30d   : > { %v2576_v52 = vsel %vm2542_vm12, 0.0, %v2444_v6 }
 0x30e   : > { %v2814_v2 = vmul.f32 %v2695_v49, %v2576_v52  ;;  %vm2543_vm13 = vcmp.ne.f32.partialorder %v2447_v17, %v2447_v17 }
 0x30f   : > { %v2577_v42 = vsel %vm2543_vm13, 0.0, %v2447_v17 }
 0x310   : > { %v2848_v8 = vadd.f32 %v2814_v2, %v2610_v36  ;;  %v2815_v60 = vmul.f32 %v2700_v18, %v2577_v42  ;;  %v2725_v2 = vpop.permute.xlu0 %2724  ;;  %v2616_v42 = vld [vmem:[#allocation13 + $0x90] sm:$0xff] }
 0x312   : > { %2882 = vst [vmem:[#allocation13 + $0x60] sm:$0xff] %v2848_v8  ;;  %v2849_v45 = vadd.f32 %v2815_v60, %v2611_v4  ;;  %v2730_v8 = vpop.permute.xlu1 %2729 }
 0x314   : > { %2883 = vst [vmem:[#allocation13 + $0x68] sm:$0xff] %v2849_v45  ;;  %v2282_v31 = vpop.f32.mrb[96].mxu1  ;;  %v2617_v45 = vld [vmem:[#allocation13 + $0x98] sm:$0xff] }
 0x315   : > { %v2283_v41 = vadd.f32 %v5769_v43, %v2282_v31  ;;  %v2451_v7 = vpop.f32.mrb[96].mxu0  ;;  %v2284_v0 = vpop.f32.mrb[97].mxu1 }
 0x316   : > { %v2453_v44 = vpop.f32.mrb[97].mxu0  ;;  %v2285_v5 = vpop.f32.mrb[98].mxu1 }
 0x317   : > { %v2452_v40 = vadd.f32 %v2451_v7, %v2283_v41  ;;  %v2286_v57 = vadd.f32 %v5769_v43, %v2285_v5  ;;  %v2454_v22 = vpop.f32.mrb[98].mxu0  ;;  %v2287_v33 = vpop.f32.mrb[99].mxu1 }
 0x318   : > { %v2456_v15 = vpop.f32.mrb[99].mxu0 }
 0x319   : > { %vm2544_vm14 = vcmp.ne.f32.partialorder %v2452_v40, %v2452_v40  ;;  %v2455_v32 = vadd.f32 %v2454_v22, %v2286_v57 }
 0x31a   : > { %v2578_v55 = vsel %vm2544_vm14, 0.0, %v2452_v40 }
 0x31b   : > { %v2816_v61 = vmul.f32 %v2705_v14, %v2578_v55  ;;  %vm2545_vm15 = vcmp.ne.f32.partialorder %v2455_v32, %v2455_v32 }
 0x31c   : > { %v2579_v59 = vsel %vm2545_vm15, 0.0, %v2455_v32 }
 0x31d   : > { %v2850_v58 = vadd.f32 %v2816_v61, %v2612_v38  ;;  %v2817_v16 = vmul.f32 %v2710_v47, %v2579_v59  ;;  %v2735_v61 = vpop.permute.xlu0 %2734  ;;  %v2618_v59 = vld [vmem:[#allocation13 + $0xa0] sm:$0xff] }
 0x31f   : > { %2884 = vst [vmem:[#allocation13 + $0x70] sm:$0xff] %v2850_v58  ;;  %v2851_v39 = vadd.f32 %v2817_v16, %v2613_v34  ;;  %v2740_v58 = vpop.permute.xlu1 %2739 }
 0x321   : > { %v2290_v21 = vpop.f32.mrb[100].mxu1  ;;  %2885 = vst [vmem:[#allocation13 + $0x78] sm:$0xff] %v2851_v39  ;;  %v2459_v27 = vpop.f32.mrb[100].mxu0  ;;  %v2619_v39 = vld [vmem:[#allocation13 + $0xa8] sm:$0xff] }
 0x322   : > { %v2291_v26 = vadd.f32 %v5769_v43, %v2290_v21  ;;  %v2292_v10 = vpop.f32.mrb[101].mxu1  ;;  %v2461_v30 = vpop.f32.mrb[101].mxu0 }
 0x323   : > { %v2293_v46 = vpop.f32.mrb[102].mxu1  ;;  %v2462_v62 = vpop.f32.mrb[102].mxu0 }
 0x324   : > { %v2460_v28 = vadd.f32 %v2459_v27, %v2291_v26  ;;  %v2294_v19 = vadd.f32 %v5769_v43, %v2293_v46  ;;  %v2295_v3 = vpop.f32.mrb[103].mxu1  ;;  %v2464_v50 = vpop.f32.mrb[103].mxu0 }
 0x326   : > { %vm2546_vm0 = vcmp.ne.f32.partialorder %v2460_v28, %v2460_v28  ;;  %v2463_v11 = vadd.f32 %v2462_v62, %v2294_v19 }
 0x327   : > { %v2580_v9 = vsel %vm2546_vm0, 0.0, %v2460_v28 }
 0x328   : > { %v2818_v54 = vmul.f32 %v2715_v37, %v2580_v9  ;;  %vm2547_vm1 = vcmp.ne.f32.partialorder %v2463_v11, %v2463_v11 }
 0x329   : > { %v2581_v20 = vsel %vm2547_vm1, 0.0, %v2463_v11 }
 0x32a   : > { %v2852_v35 = vadd.f32 %v2818_v54, %v2614_v48  ;;  %v2819_v51 = vmul.f32 %v2720_v63, %v2581_v20  ;;  %v2745_v54 = vpop.permute.xlu0 %2744  ;;  %v2620_v20 = vld [vmem:[#allocation13 + $0xb0] sm:$0xff] }
 0x32c   : > { %2886 = vst [vmem:[#allocation13 + $0x80] sm:$0xff] %v2852_v35  ;;  %v2853_v24 = vadd.f32 %v2819_v51, %v2615_v12  ;;  %v2750_v35 = vpop.permute.xlu1 %2749 }
 0x32e   : > { %2887 = vst [vmem:[#allocation13 + $0x88] sm:$0xff] %v2853_v24  ;;  %v2621_v24 = vld [vmem:[#allocation13 + $0xb8] sm:$0xff] }
 0x32f   : > { %v2298_v1 = vpop.f32.mrb[104].mxu1 }
 0x330   : > { %v2299_v56 = vadd.f32 %v5769_v43, %v2298_v1  ;;  %v2467_v29 = vpop.f32.mrb[104].mxu0  ;;  %v2300_v6 = vpop.f32.mrb[105].mxu1 }
 0x331   : > { %v2469_v23 = vpop.f32.mrb[105].mxu0  ;;  %v2301_v25 = vpop.f32.mrb[106].mxu1 }
 0x332   : > { %v2468_v53 = vadd.f32 %v2467_v29, %v2299_v56  ;;  %v2302_v13 = vadd.f32 %v5769_v43, %v2301_v25  ;;  %v2470_v17 = vpop.f32.mrb[106].mxu0  ;;  %v2303_v49 = vpop.f32.mrb[107].mxu1 }
 0x333   : > { %v2472_v52 = vpop.f32.mrb[107].mxu0 }
 0x334   : > { %vm2548_vm2 = vcmp.ne.f32.partialorder %v2468_v53, %v2468_v53  ;;  %v2471_v36 = vadd.f32 %v2470_v17, %v2302_v13 }
 0x335   : > { %v2582_v18 = vsel %vm2548_vm2, 0.0, %v2468_v53 }
 0x336   : > { %v2820_v4 = vmul.f32 %v2725_v2, %v2582_v18  ;;  %vm2549_vm3 = vcmp.ne.f32.partialorder %v2471_v36, %v2471_v36 }
 0x337   : > { %v2583_v60 = vsel %vm2549_vm3, 0.0, %v2471_v36 }
 0x338   : > { %v2854_v31 = vadd.f32 %v2820_v4, %v2616_v42  ;;  %v2821_v41 = vmul.f32 %v2730_v8, %v2583_v60  ;;  %v2755_v4 = vpop.permute.xlu0 %2754  ;;  %v2622_v60 = vld [vmem:[#allocation13 + $0xc0] sm:$0xff] }
 0x33a   : > { %2888 = vst [vmem:[#allocation13 + $0x90] sm:$0xff] %v2854_v31  ;;  %v2855_v7 = vadd.f32 %v2821_v41, %v2617_v45  ;;  %v2760_v31 = vpop.permute.xlu1 %2759 }
 0x33c   : > { %2889 = vst [vmem:[#allocation13 + $0x98] sm:$0xff] %v2855_v7  ;;  %v2306_v0 = vpop.f32.mrb[108].mxu1  ;;  %v2475_v44 = vpop.f32.mrb[108].mxu0  ;;  %v2623_v7 = vld [vmem:[#allocation13 + $0xc8] sm:$0xff] }
 0x33d   : > { %v2307_v5 = vadd.f32 %v5769_v43, %v2306_v0  ;;  %v2308_v40 = vpop.f32.mrb[109].mxu1  ;;  %v2477_v57 = vpop.f32.mrb[109].mxu0 }
 0x33e   : > { %v2309_v22 = vpop.f32.mrb[110].mxu1  ;;  %v2478_v33 = vpop.f32.mrb[110].mxu0 }
 0x33f   : > { %v2476_v15 = vadd.f32 %v2475_v44, %v2307_v5  ;;  %v2310_v32 = vadd.f32 %v5769_v43, %v2309_v22  ;;  %v2311_v14 = vpop.f32.mrb[111].mxu1  ;;  %v2480_v55 = vpop.f32.mrb[111].mxu0 }
 0x341   : > { %vm2550_vm4 = vcmp.ne.f32.partialorder %v2476_v15, %v2476_v15  ;;  %v2479_v38 = vadd.f32 %v2478_v33, %v2310_v32 }
 0x342   : > { %v2584_v47 = vsel %vm2550_vm4, 0.0, %v2476_v15 }
 0x343   : > { %v2822_v34 = vmul.f32 %v2735_v61, %v2584_v47  ;;  %vm2551_vm5 = vcmp.ne.f32.partialorder %v2479_v38, %v2479_v38 }
 0x344   : > { %v2585_v16 = vsel %vm2551_vm5, 0.0, %v2479_v38 }
 0x345   : > { %v2856_v21 = vadd.f32 %v2822_v34, %v2618_v59  ;;  %v2823_v26 = vmul.f32 %v2740_v58, %v2585_v16  ;;  %v2765_v34 = vpop.permute.xlu0 %2764  ;;  %v2624_v16 = vld [vmem:[#allocation13 + $0xd0] sm:$0xff] }
 0x347   : > { %2890 = vst [vmem:[#allocation13 + $0xa0] sm:$0xff] %v2856_v21  ;;  %v2857_v27 = vadd.f32 %v2823_v26, %v2619_v39  ;;  %v2770_v21 = vpop.permute.xlu1 %2769 }
 0x348   : > { %v2314_v10 = vpop.f32.mrb[112].mxu1 }
 0x349   : > { %2891 = vst [vmem:[#allocation13 + $0xa8] sm:$0xff] %v2857_v27  ;;  %v2315_v30 = vadd.f32 %v5769_v43, %v2314_v10  ;;  %v2483_v46 = vpop.f32.mrb[112].mxu0  ;;  %v2316_v28 = vpop.f32.mrb[113].mxu1  ;;  %v2625_v27 = vld [vmem:[#allocation13 + $0xd8] sm:$0xff] }
 0x34a   : > { %v2485_v19 = vpop.f32.mrb[113].mxu0  ;;  %v2317_v62 = vpop.f32.mrb[114].mxu1 }
 0x34b   : > { %v2484_v3 = vadd.f32 %v2483_v46, %v2315_v30  ;;  %v2318_v50 = vadd.f32 %v5769_v43, %v2317_v62  ;;  %v2486_v11 = vpop.f32.mrb[114].mxu0  ;;  %v2319_v37 = vpop.f32.mrb[115].mxu1 }
 0x34c   : > { %v2488_v9 = vpop.f32.mrb[115].mxu0 }
 0x34d   : > { %vm2552_vm6 = vcmp.ne.f32.partialorder %v2484_v3, %v2484_v3  ;;  %v2487_v48 = vadd.f32 %v2486_v11, %v2318_v50 }
 0x34e   : > { %v2586_v63 = vsel %vm2552_vm6, 0.0, %v2484_v3 }
 0x34f   : > { %v2824_v12 = vmul.f32 %v2745_v54, %v2586_v63  ;;  %vm2553_vm7 = vcmp.ne.f32.partialorder %v2487_v48, %v2487_v48 }
 0x350   : > { %v2587_v51 = vsel %vm2553_vm7, 0.0, %v2487_v48 }
 0x351   : > { %v2858_v1 = vadd.f32 %v2824_v12, %v2620_v20  ;;  %v2825_v56 = vmul.f32 %v2750_v35, %v2587_v51  ;;  %v2775_v12 = vpop.permute.xlu0 %2774  ;;  %v2626_v51 = vld [vmem:[#allocation13 + $0xe0] sm:$0xff] }
 0x353   : > { %2892 = vst [vmem:[#allocation13 + $0xb0] sm:$0xff] %v2858_v1  ;;  %v2859_v29 = vadd.f32 %v2825_v56, %v2621_v24  ;;  %v2780_v1 = vpop.permute.xlu1 %2779 }
 0x355   : > { %2893 = vst [vmem:[#allocation13 + $0xb8] sm:$0xff] %v2859_v29  ;;  %v2627_v29 = vld [vmem:[#allocation13 + $0xe8] sm:$0xff] }
 0x356   : > { %v2322_v6 = vpop.f32.mrb[116].mxu1  ;;  %v2491_v23 = vpop.f32.mrb[116].mxu0 }
 0x357   : > { %v2323_v25 = vadd.f32 %v5769_v43, %v2322_v6  ;;  %v2324_v53 = vpop.f32.mrb[117].mxu1  ;;  %v2493_v13 = vpop.f32.mrb[117].mxu0 }
 0x358   : > { %v2325_v17 = vpop.f32.mrb[118].mxu1  ;;  %v2494_v49 = vpop.f32.mrb[118].mxu0 }
 0x359   : > { %v2492_v52 = vadd.f32 %v2491_v23, %v2323_v25  ;;  %v2326_v36 = vadd.f32 %v5769_v43, %v2325_v17  ;;  %v2327_v2 = vpop.f32.mrb[119].mxu1  ;;  %v2496_v18 = vpop.f32.mrb[119].mxu0 }
 0x35b   : > { %vm2554_vm8 = vcmp.ne.f32.partialorder %v2492_v52, %v2492_v52  ;;  %v2495_v42 = vadd.f32 %v2494_v49, %v2326_v36 }
 0x35c   : > { %v2588_v8 = vsel %vm2554_vm8, 0.0, %v2492_v52 }
 0x35d   : > { %v2826_v45 = vmul.f32 %v2755_v4, %v2588_v8  ;;  %vm2555_vm9 = vcmp.ne.f32.partialorder %v2495_v42, %v2495_v42 }
 0x35e   : > { %v2589_v41 = vsel %vm2555_vm9, 0.0, %v2495_v42 }
 0x35f   : > { %v2860_v0 = vadd.f32 %v2826_v45, %v2622_v60  ;;  %v2827_v44 = vmul.f32 %v2760_v31, %v2589_v41  ;;  %v2785_v45 = vpop.permute.xlu0 %2784  ;;  %v2628_v41 = vld [vmem:[#allocation13 + $0xf0] sm:$0xff] }
 0x361   : > { %2894 = vst [vmem:[#allocation13 + $0xc0] sm:$0xff] %v2860_v0  ;;  %v2861_v5 = vadd.f32 %v2827_v44, %v2623_v7  ;;  %v2790_v0 = vpop.permute.xlu1 %2789 }
 0x363   : > { %2895 = vst [vmem:[#allocation13 + $0xc8] sm:$0xff] %v2861_v5  ;;  %v2330_v40 = vpop.f32.mrb[120].mxu1  ;;  %v2629_v5 = vld [vmem:[#allocation13 + $0xf8] sm:$0xff] }
 0x364   : > { %v2331_v57 = vadd.f32 %v5769_v43, %v2330_v40  ;;  %v2499_v22 = vpop.f32.mrb[120].mxu0  ;;  %v2332_v33 = vpop.f32.mrb[121].mxu1 }
 0x365   : > { %v2501_v15 = vpop.f32.mrb[121].mxu0  ;;  %v2333_v32 = vpop.f32.mrb[122].mxu1 }
 0x366   : > { %v2500_v14 = vadd.f32 %v2499_v22, %v2331_v57  ;;  %v2334_v55 = vadd.f32 %v5769_v43, %v2333_v32  ;;  %v2502_v38 = vpop.f32.mrb[122].mxu0  ;;  %v2335_v61 = vpop.f32.mrb[123].mxu1 }
 0x367   : > { %v2504_v47 = vpop.f32.mrb[123].mxu0 }
 0x368   : > { %vm2556_vm10 = vcmp.ne.f32.partialorder %v2500_v14, %v2500_v14  ;;  %v2503_v59 = vadd.f32 %v2502_v38, %v2334_v55 }
 0x369   : > { %v2590_v58 = vsel %vm2556_vm10, 0.0, %v2500_v14 }
 0x36a   : > { %v2828_v39 = vmul.f32 %v2765_v34, %v2590_v58  ;;  %vm2557_vm11 = vcmp.ne.f32.partialorder %v2503_v59, %v2503_v59 }
 0x36b   : > { %v2591_v26 = vsel %vm2557_vm11, 0.0, %v2503_v59  ;;  %v2338_v10 = vpop.f32.mrb[124].mxu1 }
 0x36c   : > { %v2862_v30 = vadd.f32 %v2828_v39, %v2624_v16  ;;  %v2829_v46 = vmul.f32 %v2770_v21, %v2591_v26  ;;  %v2339_v28 = vadd.f32 %v5769_v43, %v2338_v10  ;;  %v2507_v19 = vpop.f32.mrb[124].mxu0  ;;  %v2340_v62 = vpop.f32.mrb[125].mxu1  ;;  %v2630_v26 = vld [vmem:[#allocation13 + $0x100] sm:$0xff] }
 0x36d   : > { %v2509_v3 = vpop.f32.mrb[125].mxu0  ;;  %v2341_v50 = vpop.f32.mrb[126].mxu1 }
 0x36e   : > { %2896 = vst [vmem:[#allocation13 + $0xd0] sm:$0xff] %v2862_v30  ;;  %v2863_v11 = vadd.f32 %v2829_v46, %v2625_v27  ;;  %v2508_v37 = vadd.f32 %v2507_v19, %v2339_v28  ;;  %v2342_v9 = vadd.f32 %v5769_v43, %v2341_v50  ;;  %v2510_v48 = vpop.f32.mrb[126].mxu0  ;;  %v2343_v54 = vpop.f32.mrb[127].mxu1  ;;  %v2631_v46 = vld [vmem:[#allocation13 + $0x108] sm:$0xff] }
 0x36f   : > { %v2512_v63 = vpop.f32.mrb[127].mxu0  ;;  %v2795_v39 = vpop.permute.xlu0 %2794 }
 0x370   : > { %2897 = vst [vmem:[#allocation13 + $0xd8] sm:$0xff] %v2863_v11  ;;  %vm2558_vm12 = vcmp.ne.f32.partialorder %v2508_v37, %v2508_v37  ;;  %v2511_v20 = vadd.f32 %v2510_v48, %v2342_v9  ;;  %v2800_v10 = vpop.permute.xlu1 %2799 }
 0x371   : > { %v2592_v35 = vsel %vm2558_vm12, 0.0, %v2508_v37 }
 0x372   : > { %v2830_v24 = vmul.f32 %v2775_v12, %v2592_v35  ;;  %vm2559_vm13 = vcmp.ne.f32.partialorder %v2511_v20, %v2511_v20 }
 0x373   : > { %v2593_v56 = vsel %vm2559_vm13, 0.0, %v2511_v20  ;;  %v2346_v6 = vpop.f32.mrb[128].mxu1 }
 0x374   : > { %v2864_v23 = vadd.f32 %v2830_v24, %v2626_v51  ;;  %v2831_v25 = vmul.f32 %v2780_v1, %v2593_v56  ;;  %v2347_v53 = vadd.f32 %v5769_v43, %v2346_v6  ;;  %v2515_v13 = vpop.f32.mrb[128].mxu0  ;;  %v2348_v17 = vpop.f32.mrb[129].mxu1 }
 0x375   : > { %v2517_v49 = vpop.f32.mrb[129].mxu0  ;;  %v2349_v52 = vpop.f32.mrb[130].mxu1 }
 0x376   : > { %2898 = vst [vmem:[#allocation13 + $0xe0] sm:$0xff] %v2864_v23  ;;  %v2865_v36 = vadd.f32 %v2831_v25, %v2627_v29  ;;  %v2516_v2 = vadd.f32 %v2515_v13, %v2347_v53  ;;  %v2350_v18 = vadd.f32 %v5769_v43, %v2349_v52  ;;  %v2518_v42 = vpop.f32.mrb[130].mxu0  ;;  %v2351_v4 = vpop.f32.mrb[131].mxu1 }
 0x377   : > { %v2520_v8 = vpop.f32.mrb[131].mxu0 }
 0x378   : > { %2899 = vst [vmem:[#allocation13 + $0xe8] sm:$0xff] %v2865_v36  ;;  %vm2560_vm14 = vcmp.ne.f32.partialorder %v2516_v2, %v2516_v2  ;;  %v2519_v60 = vadd.f32 %v2518_v42, %v2350_v18 }
 0x379   : > { %v2594_v31 = vsel %vm2560_vm14, 0.0, %v2516_v2 }
 0x37a   : > { %v2832_v7 = vmul.f32 %v2785_v45, %v2594_v31  ;;  %vm2561_vm15 = vcmp.ne.f32.partialorder %v2519_v60, %v2519_v60 }
 0x37b   : > { %v2595_v44 = vsel %vm2561_vm15, 0.0, %v2519_v60  ;;  %v2354_v40 = vpop.f32.mrb[132].mxu1 }
 0x37c   : > { %v2866_v57 = vadd.f32 %v2832_v7, %v2628_v41  ;;  %v2833_v22 = vmul.f32 %v2790_v0, %v2595_v44  ;;  %v2355_v33 = vadd.f32 %v5769_v43, %v2354_v40  ;;  %v2523_v15 = vpop.f32.mrb[132].mxu0  ;;  %v2356_v32 = vpop.f32.mrb[133].mxu1 }
 0x37d   : > { %v2525_v14 = vpop.f32.mrb[133].mxu0  ;;  %v2357_v55 = vpop.f32.mrb[134].mxu1 }
 0x37e   : > { %2900 = vst [vmem:[#allocation13 + $0xf0] sm:$0xff] %v2866_v57  ;;  %v2867_v38 = vadd.f32 %v2833_v22, %v2629_v5  ;;  %v2524_v61 = vadd.f32 %v2523_v15, %v2355_v33  ;;  %v2358_v47 = vadd.f32 %v5769_v43, %v2357_v55  ;;  %v2526_v59 = vpop.f32.mrb[134].mxu0  ;;  %v2359_v34 = vpop.f32.mrb[135].mxu1 }
 0x37f   : > { %v2528_v58 = vpop.f32.mrb[135].mxu0 }
 0x380   : > { %2901 = vst [vmem:[#allocation13 + $0xf8] sm:$0xff] %v2867_v38  ;;  %vm2562_vm0 = vcmp.ne.f32.partialorder %v2524_v61, %v2524_v61  ;;  %v2527_v16 = vadd.f32 %v2526_v59, %v2358_v47 }
 0x381   : > { %v2596_v21 = vsel %vm2562_vm0, 0.0, %v2524_v61 }
 0x382   : > { %v2834_v27 = vmul.f32 %v2795_v39, %v2596_v21  ;;  %vm2563_vm1 = vcmp.ne.f32.partialorder %v2527_v16, %v2527_v16 }
 0x383   : > { %v2597_v30 = vsel %vm2563_vm1, 0.0, %v2527_v16 }
 0x384   : > { %v2868_v28 = vadd.f32 %v2834_v27, %v2630_v26  ;;  %v2835_v19 = vmul.f32 %v2800_v10, %v2597_v30 }
 0x386   : > { %2902 = vst [vmem:[#allocation13 + $0x100] sm:$0xff] %v2868_v28  ;;  %v2869_v43 = vadd.f32 %v2835_v19, %v2631_v46 }
 0x388   : > { %2903 = vst [vmem:[#allocation13 + $0x108] sm:$0xff] %v2869_v43 }
 0x389   : > { %3858 = shalt.err (!%p3855_p8)
}
 0x38a   : > { %s3859_s12 = scalar_lea.hbm %s5848_s6, 4352 }
 0x38b   : > { %p3860_p9 = scmp.ne.s32.totalorder %s5848_s6, %s3859_s12  ;;  %p3865_p2 = scmp.lt.u32.totalorder %s3859_s12, %s5848_s6 }
 0x38d   : > { %p3861_p10 = pnand %p3860_p9, %p5807_p3 }
 0x38f   : > { %p3862_p11 = pneg %p3861_p10 }
 0x391   : > { %p3867_p7 = pnand %p3865_p2, %p3862_p11 }
 0x393   : > { %3870 = shalt.err (!%p3867_p7)
}
 0x394   : > { %s3931_s26 = smov 128   ;;  %s3932_s27 = smov 8  }
 0x395   : > { %3228 = dma.vmem_to_hbm [thread:$0]  (%p5807_p3), %s2914_s15, 4352, %s5848_s6, [#allocation4], %s3931_s26, %s3931_s26, %s3932_s27  }
 0x396   : > { %3900 = dma.done.wait (%p5807_p3), [#allocation4], 4352  }
 0x397   : > { %3902 = vsyncadd (%p5807_p3), [#allocation4], 4294962944 }
 0x398 PF: > { %s21_s23 = sadd.s32 1, %s3913_s23   ;;  %s5989_s21 = smov %s3909_s22 }
 0x399   : > { %p18_p5 = scmp.ge.s32.totalorder %s21_s23, 6   ;;  %s5990_s22 = smov %s5992_s18 }
 0x39b   :  { %20 = sbr.rel (!%p18_p5) target bundleno = 6 (0x6), region = 105 }
 0x3a2   :  { %2929 = vsyncpa [#allocation3], 1 }
 0x3a3   :  { %2931 = vsyncpa [#allocation3 + $0x1], 1 }
 0x3a4   :  { %2932 = vsyncpa [#allocation6], 1 }
 0x3a5   :  { %2933 = vsyncpa [#allocation9], 1 }
 0x3a6   :  { %2934 = vsyncpa [#allocation12], 1 }
 0x3a7   :  { %2935 = vsyncpa [#allocation4], 1 }
 0x3a8   :  { %2937 = vsyncpa [#allocation4 + $0x1], 1 }

</bundles_post_ra>
